<compile_context>
chip_gen: v6e
topology: v6e:2x2x1
jax: 0.10.0
libtpu: 0.0.40
codegen_flags: <defaults>
</compile_context>

<pallas_src>
import functools

import jax
import jax.numpy as jnp
from jax.experimental import pallas as pl
from jax.experimental.pallas import tpu as pltpu


def _lif_kernel(ff_ref, wT_ref, consts_ref, out_ref,
                volt_ref, rec_ref, spk_ref, mv_ref, cb_ref,
                *, v_thresh, v_rest, n_steady, n_window, t_blk, syn_dyn):
    g = pl.program_id(0)
    _, n_b, n_n = cb_ref.shape

    # --- initialization (torch: initialization()) ---------------------------
    @pl.when(g == 0)
    def _init():
        init_fires = (0.0 >= v_thresh)            # static python bool
        volt_ref[...] = jnp.full(volt_ref.shape, v_rest if init_fires else 0.0,
                                 volt_ref.dtype)
        rec_ref[...] = jnp.zeros(rec_ref.shape, rec_ref.dtype)
        spk_ref[...] = jnp.full(spk_ref.shape, 1.0 if init_fires else 0.0,
                                spk_ref.dtype)
        mv_ref[...] = jnp.zeros(mv_ref.shape, mv_ref.dtype)
        # Pre-broadcast per-neuron constants to (B, N) once (hoisted out of the
        # time loop; JAX does not CSE broadcast_in_dim across iterations).
        for i in range(4):
            cb_ref[i, :, :] = jnp.broadcast_to(consts_ref[i:i + 1, :], (n_b, n_n))

    exp_tau = cb_ref[0]
    dt_tau = cb_ref[1]
    if syn_dyn:
        exp_syn = cb_ref[2]
        dt_syn = cb_ref[3]

    zero_t = n_steady - n_window - 1              # torch: mv_rates *= 0 at this step

    # --- T_BLK unrolled timesteps per grid iteration -------------------------
    for s in range(t_blk):
        # update_dynamics: hidden = spikes @ Wab_T  (bf16 x bf16 -> f32 on the MXU)
        hidden = jnp.dot(spk_ref[...], wT_ref[...],
                         preferred_element_type=jnp.float32)
        if syn_dyn:
            rec = exp_syn * rec_ref[...] + dt_syn * hidden
            rec_ref[...] = rec
        else:
            rec = hidden          # rec_input store is dead when SYN_DYN=False: skip it

        net = ff_ref[s] + rec
        volt = volt_ref[...] * exp_tau + dt_tau * net
        fired = volt >= v_thresh
        volt_ref[...] = jnp.where(fired, v_rest, volt)        # volt[spikes] = V_REST
        spk_ref[...] = fired.astype(spk_ref.dtype)             # {0,1}, exact in bf16
        mv_ref[...] = mv_ref[...] + fired.astype(jnp.float32)  # mv_rates += spikes

        # pre-first-window reset (torch: after accumulating this step's spikes)
        if zero_t >= 0 and (zero_t % t_blk) == s:
            @pl.when(g == zero_t // t_blk)
            def _reset_before_first_window():
                mv_ref[...] = jnp.zeros(mv_ref.shape, mv_ref.dtype)

        # windowed readout: emit raw spike count, then reset the accumulator
        if t_blk % n_window == 0:
            # emits can only land on local steps that are multiples of n_window,
            # and the ">= n_steady" test reduces to a static grid-index threshold
            if s % n_window == 0:
                g_first = -(-(n_steady - s) // t_blk)          # ceil division
                @pl.when(g >= g_first)
                def _emit():
                    out_ref[...] = mv_ref[...]
                    mv_ref[...] = jnp.zeros(mv_ref.shape, mv_ref.dtype)
        else:
            t_abs = g * t_blk + s
            @pl.when(jnp.logical_and(t_abs >= n_steady, t_abs % n_window == 0))
            def _emit():
                out_ref[...] = mv_ref[...]
                mv_ref[...] = jnp.zeros(mv_ref.shape, mv_ref.dtype)


def lif_forward(ff_input, wab_T, exp_dt_tau, dt_tau, exp_dt_tau_syn, dt_tau_syn,
                *, v_thresh=1.0, v_rest=0.0, n_steady=16, n_window=4,
                syn_dyn=True, matmul_dtype=jnp.bfloat16):
    """ff_input: (N_BATCH, N_STEPS, N_NEURON) float32.
    Returns windowed spike counts: (N_BATCH, N_WINDOWS, N_NEURON) float32
    (the REC_LAST_ONLY=0 / LR_TRAIN=False path of LIFNetwork.forward)."""
    n_batch, n_steps, n_neuron = ff_input.shape
    ff_tbn = jnp.transpose(ff_input, (1, 0, 2)).astype(jnp.float32)

    window_steps = [t for t in range(n_steps) if t >= n_steady and t % n_window == 0]
    n_win = len(window_steps)
    assert n_win >= 1, "n_steps too short: no recorded windows"
    first_window = window_steps[0]

    # block several timesteps per grid iteration when shapes allow
    t_blk = n_window if (n_window > 1 and n_steps % n_window == 0) else 1
    n_grid = n_steps // t_blk

    if t_blk % n_window == 0:
        first_block = first_window // t_blk
        def out_index_map(g):
            return (jnp.clip(g - first_block, 0, n_win - 1), 0, 0)
    else:
        def out_index_map(g):
            return (jnp.clip((g - first_window) // n_window, 0, n_win - 1), 0, 0)

    # fuse the four per-neuron constants into one (4, N) resident input
    consts = jnp.stack([
        jnp.asarray(exp_dt_tau, jnp.float32).reshape(n_neuron),
        jnp.asarray(dt_tau, jnp.float32).reshape(n_neuron),
        jnp.asarray(exp_dt_tau_syn, jnp.float32).reshape(n_neuron),
        jnp.asarray(dt_tau_syn, jnp.float32).reshape(n_neuron)], axis=0)

    w = jnp.asarray(wab_T, jnp.float32).astype(matmul_dtype)

    kernel = functools.partial(
        _lif_kernel,
        v_thresh=float(v_thresh), v_rest=float(v_rest),
        n_steady=int(n_steady), n_window=int(n_window),
        t_blk=int(t_blk), syn_dyn=bool(syn_dyn))

    # VMEM budget: resident W + double-buffered ff/out blocks + consts + state scratch
    w_bytes = n_neuron * n_neuron * jnp.dtype(matmul_dtype).itemsize
    need = (2 * w_bytes
            + 2 * t_blk * n_batch * n_neuron * 4        # ff in (double buffered)
            + 2 * n_batch * n_neuron * 4                # out (double buffered)
            + 2 * 4 * n_neuron * 4                      # fused constants
            + 8 * n_batch * n_neuron * 4)               # persistent state scratch
    vmem_limit = int(min(64 * 2 ** 20, max(16 * 2 ** 20, 2 * need)))

    def _call(use_buffered):
        # constant-index-map inputs: request single buffering (no point double
        # buffering something that is never re-fetched; halves W's VMEM footprint)
        resident = dict(pipeline_mode=pl.Buffered(1)) if use_buffered else {}
        grid_spec = pltpu.PrefetchScalarGridSpec(
            num_scalar_prefetch=0,
            grid=(n_grid,),
            in_specs=[
                # T_BLK timesteps of ff input per grid step -> kernel sees (T_BLK, B, N)
                pl.BlockSpec((t_blk, n_batch, n_neuron), lambda g: (g, 0, 0)),
                # recurrent weight matrix, resident every step (bf16)
                pl.BlockSpec((n_neuron, n_neuron), lambda g: (0, 0), **resident),
                # fused per-neuron constants (exp_dt_tau, dt_tau, exp_syn, dt_syn)
                pl.BlockSpec((4, n_neuron), lambda g: (0, 0), **resident),
            ],
            out_specs=pl.BlockSpec((pl.Squeezed(), n_batch, n_neuron), out_index_map),
            scratch_shapes=[
                pltpu.VMEM((n_batch, n_neuron), jnp.float32),    # volt
                pltpu.VMEM((n_batch, n_neuron), jnp.float32),    # rec_input
                pltpu.VMEM((n_batch, n_neuron), matmul_dtype),   # spikes (matmul LHS)
                pltpu.VMEM((n_batch, n_neuron), jnp.float32),    # moving rates
                pltpu.VMEM((4, n_batch, n_neuron), jnp.float32), # broadcast constants
            ],
        )
        return pl.pallas_call(
            kernel,
            out_shape=jax.ShapeDtypeStruct((n_win, n_batch, n_neuron), jnp.float32),
            grid_spec=grid_spec,
            compiler_params=pltpu.CompilerParams(
                dimension_semantics=("arbitrary",),    # time recurrence is sequential
                vmem_limit_bytes=vmem_limit),
        )(ff_tbn, w, consts)

    try:
        out_tbn = _call(True)
    except Exception:
        # graceful fallback for jax versions without BlockSpec(pipeline_mode=...)
        out_tbn = _call(False)

    return jnp.transpose(out_tbn, (1, 0, 2))   # (B, N_WIN, N)


if __name__ == "__main__":
    key = jax.random.PRNGKey(0)

    # ---- synthetic, deterministic "config" (small shapes) -----------------
    N_POP = 2
    N_NEURON = 256
    N_BATCH = 8
    frac = [0.5, 0.5]
    Na = [int(N_NEURON * f) for f in frac]
    csum = [0, Na[0], N_NEURON]
    K = 32.0
    Ka = [K * f for f in frac]
    DT = 1e-3
    TAU = [20e-3, 10e-3]
    TAU_SYN = [4e-3, 2e-3]
    V_THRESH, V_REST = 1.0, 0.0
    GAIN, M0 = 1.0, 1.0
    N_STEADY = 16
    N_WINDOW = 4
    N_DUR = 16
    N_STEPS = N_DUR + N_STEADY + N_WINDOW      # 36

    def per_neuron(vals):
        return jnp.concatenate(
            [jnp.full((Na[i],), float(vals[i]), jnp.float32) for i in range(N_POP)])

    # ---- initConst: per-neuron time constants ------------------------------
    exp_dt_tau = per_neuron([jnp.exp(-DT / TAU[i]) for i in range(N_POP)])
    dt_tau = per_neuron([DT / TAU[i] for i in range(N_POP)])
    exp_dt_tau_syn = per_neuron([jnp.exp(-DT / TAU_SYN[i]) for i in range(N_POP)])
    dt_tau_syn = per_neuron([DT / TAU_SYN[i] for i in range(N_POP)])

    # ---- scaleParam ---------------------------------------------------------
    Jab = jnp.array([[1.0, -1.5], [1.0, -1.0]], jnp.float32) * GAIN * (V_THRESH - V_REST)
    Jab = Jab * (jnp.sqrt(Ka[0]) / jnp.array(Ka) / jnp.array(TAU_SYN))[None, :]

    # ---- initWeights: block-structured sparse Bernoulli connectivity -------
    # TODO(synk): Connectivity() also supports cosine / low-rank probability
    # profiles; here we use the plain sparse (Bernoulli K/N) variant, seeded.
    kw, kff = jax.random.split(key)
    kblocks = jax.random.split(kw, N_POP * N_POP)
    wab = jnp.zeros((N_NEURON, N_NEURON), jnp.float32)
    for i in range(N_POP):
        for j in range(N_POP):
            kb = kblocks[i * N_POP + j]
            p = Ka[j] / Na[j]
            blk = (jax.random.uniform(kb, (Na[i], Na[j])) < p).astype(jnp.float32)
            wab = wab.at[csum[i]:csum[i + 1], csum[j]:csum[j + 1]].set(Jab[i, j] * blk)
    wab_T = wab.T

    # ---- ff input (init_ff_input with TASK='None', no bump switch) ---------
    Ja0 = jnp.array([2.0, 1.0], jnp.float32) * (V_THRESH - V_REST)
    VAR_FF = jnp.sqrt(jnp.array([1.0, 1.0], jnp.float32))
    noise = jax.random.normal(kff, (N_BATCH, N_STEPS, N_NEURON), jnp.float32)
    scale = per_neuron([VAR_FF[i] / jnp.sqrt(Ka[0]) for i in range(N_POP)])
    drive = per_neuron([Ja0[i] for i in range(N_POP)])
    ff_input = (noise * scale[None, None, :] + drive[None, None, :]) * jnp.sqrt(Ka[0]) * M0

    # ---- run kernel ---------------------------------------------------------
    rates = lif_forward(ff_input, wab_T, exp_dt_tau, dt_tau,
                        exp_dt_tau_syn, dt_tau_syn,
                        v_thresh=V_THRESH, v_rest=V_REST,
                        n_steady=N_STEADY, n_window=N_WINDOW, syn_dyn=True)
    rates = jax.block_until_ready(rates)

    n_win_expected = len([t for t in range(N_STEPS) if t >= N_STEADY and t % N_WINDOW == 0])
    assert rates.shape == (N_BATCH, n_win_expected, N_NEURON), rates.shape
    assert bool(jnp.all(jnp.isfinite(rates)))
    # window spike counts are bounded by the window length (+1 for the first window)
    assert bool(jnp.all(rates >= 0.0)) and bool(jnp.all(rates <= N_WINDOW + 1))
    print("KERNEL_OK")
</pallas_src>

<mosaic_0001>
module attributes {stable_mosaic.version = 11 : i64} {
  func.func @_lif_kernel(%arg0: i32, %arg1: memref<4x8x256xf32, #tpu.memory_space<vmem>>, %arg2: memref<256x256xbf16, #tpu.memory_space<vmem>>, %arg3: memref<4x256xf32, #tpu.memory_space<vmem>>, %arg4: memref<1x8x256xf32, #tpu.memory_space<vmem>>, %arg5: memref<8x256xf32, #tpu.memory_space<vmem>>, %arg6: memref<8x256xf32, #tpu.memory_space<vmem>>, %arg7: memref<8x256xbf16, #tpu.memory_space<vmem>>, %arg8: memref<8x256xf32, #tpu.memory_space<vmem>>, %arg9: memref<4x8x256xf32, #tpu.memory_space<vmem>>) attributes {dimension_semantics = [#tpu.dimension_semantics<arbitrary>], iteration_bounds = array<i64: 9>, scalar_prefetch = 0 : i64, scratch_operands = 5 : i64, tpu.core_type = #tpu.core_type<tc>, window_params = [{transform_indices = @transform_0, window_bounds = array<i64: 4, 8, 256>}, {pipeline_mode = #tpu.pipeline_mode<synchronous>, transform_indices = @transform_1, window_bounds = array<i64: 256, 256>}, {pipeline_mode = #tpu.pipeline_mode<synchronous>, transform_indices = @transform_2, window_bounds = array<i64: 4, 256>}, {transform_indices = @transform_3, window_bounds = array<i64: 1, 8, 256>}]} {
    %c0_i32 = arith.constant 0 : i32
    %0 = arith.cmpi eq, %arg0, %c0_i32 : i32
    %1 = arith.extui %0 : i1 to i32
    %c0_i32_0 = arith.constant 0 : i32
    %2 = arith.cmpi ne, %1, %c0_i32_0 : i32
    scf.if %2 {
      %cst_106 = arith.constant 0.000000e+00 : f32
      %133 = vector.broadcast %cst_106 : f32 to vector<8x256xf32>
      %c0_107 = arith.constant 0 : index
      %c0_108 = arith.constant 0 : index
      %134 = vector.load %arg5[%c0_107, %c0_108] : memref<8x256xf32, #tpu.memory_space<vmem>>, vector<8x256xf32>
      tpu.vector_store %arg5[%c0_107, %c0_108], %133 {strides = array<i32>} : memref<8x256xf32, #tpu.memory_space<vmem>>, vector<8x256xf32>,
      %cst_109 = arith.constant 0.000000e+00 : f32
      %135 = vector.broadcast %cst_109 : f32 to vector<8x256xf32>
      %c0_110 = arith.constant 0 : index
      %c0_111 = arith.constant 0 : index
      %136 = vector.load %arg6[%c0_110, %c0_111] : memref<8x256xf32, #tpu.memory_space<vmem>>, vector<8x256xf32>
      tpu.vector_store %arg6[%c0_110, %c0_111], %135 {strides = array<i32>} : memref<8x256xf32, #tpu.memory_space<vmem>>, vector<8x256xf32>,
      %cst_112 = arith.constant 0.000000e+00 : bf16
      %137 = vector.broadcast %cst_112 : bf16 to vector<8x256xbf16>
      %c0_113 = arith.constant 0 : index
      %c0_114 = arith.constant 0 : index
      %138 = vector.load %arg7[%c0_113, %c0_114] : memref<8x256xbf16, #tpu.memory_space<vmem>>, vector<8x256xbf16>
      tpu.vector_store %arg7[%c0_113, %c0_114], %137 {strides = array<i32>} : memref<8x256xbf16, #tpu.memory_space<vmem>>, vector<8x256xbf16>,
      %cst_115 = arith.constant 0.000000e+00 : f32
      %139 = vector.broadcast %cst_115 : f32 to vector<8x256xf32>
      %c0_116 = arith.constant 0 : index
      %c0_117 = arith.constant 0 : index
      %140 = vector.load %arg8[%c0_116, %c0_117] : memref<8x256xf32, #tpu.memory_space<vmem>>, vector<8x256xf32>
      tpu.vector_store %arg8[%c0_116, %c0_117], %139 {strides = array<i32>} : memref<8x256xf32, #tpu.memory_space<vmem>>, vector<8x256xf32>,
      %c0_118 = arith.constant 0 : index
      %c0_119 = arith.constant 0 : index
      %141 = vector.load %arg3[%c0_118, %c0_119] : memref<4x256xf32, #tpu.memory_space<vmem>>, vector<1x256xf32>
      %142 = vector.shape_cast %141 : vector<1x256xf32> to vector<1x256xf32>
      %143 = vector.broadcast %142 : vector<1x256xf32> to vector<8x256xf32>
      %c0_120 = arith.constant 0 : index
      %c0_121 = arith.constant 0 : index
      %c0_122 = arith.constant 0 : index
      %144 = vector.load %arg9[%c0_120, %c0_121, %c0_122] : memref<4x8x256xf32, #tpu.memory_space<vmem>>, vector<1x8x256xf32>
      %145 = vector.shape_cast %144 : vector<1x8x256xf32> to vector<8x256xf32>
      %146 = vector.shape_cast %143 : vector<8x256xf32> to vector<1x8x256xf32>
      tpu.vector_store %arg9[%c0_120, %c0_121, %c0_122], %146 {strides = array<i32>} : memref<4x8x256xf32, #tpu.memory_space<vmem>>, vector<1x8x256xf32>,
      %c1_123 = arith.constant 1 : index
      %c0_124 = arith.constant 0 : index
      %147 = vector.load %arg3[%c1_123, %c0_124] : memref<4x256xf32, #tpu.memory_space<vmem>>, vector<1x256xf32>
      %148 = vector.shape_cast %147 : vector<1x256xf32> to vector<1x256xf32>
      %149 = vector.broadcast %148 : vector<1x256xf32> to vector<8x256xf32>
      %c1_125 = arith.constant 1 : index
      %c0_126 = arith.constant 0 : index
      %c0_127 = arith.constant 0 : index
      %150 = vector.load %arg9[%c1_125, %c0_126, %c0_127] : memref<4x8x256xf32, #tpu.memory_space<vmem>>, vector<1x8x256xf32>
      %151 = vector.shape_cast %150 : vector<1x8x256xf32> to vector<8x256xf32>
      %152 = vector.shape_cast %149 : vector<8x256xf32> to vector<1x8x256xf32>
      tpu.vector_store %arg9[%c1_125, %c0_126, %c0_127], %152 {strides = array<i32>} : memref<4x8x256xf32, #tpu.memory_space<vmem>>, vector<1x8x256xf32>,
      %c2_128 = arith.constant 2 : index
      %c0_129 = arith.constant 0 : index
      %153 = vector.load %arg3[%c2_128, %c0_129] : memref<4x256xf32, #tpu.memory_space<vmem>>, vector<1x256xf32>
      %154 = vector.shape_cast %153 : vector<1x256xf32> to vector<1x256xf32>
      %155 = vector.broadcast %154 : vector<1x256xf32> to vector<8x256xf32>
      %c2_130 = arith.constant 2 : index
      %c0_131 = arith.constant 0 : index
      %c0_132 = arith.constant 0 : index
      %156 = vector.load %arg9[%c2_130, %c0_131, %c0_132] : memref<4x8x256xf32, #tpu.memory_space<vmem>>, vector<1x8x256xf32>
      %157 = vector.shape_cast %156 : vector<1x8x256xf32> to vector<8x256xf32>
      %158 = vector.shape_cast %155 : vector<8x256xf32> to vector<1x8x256xf32>
      tpu.vector_store %arg9[%c2_130, %c0_131, %c0_132], %158 {strides = array<i32>} : memref<4x8x256xf32, #tpu.memory_space<vmem>>, vector<1x8x256xf32>,
      %c3_133 = arith.constant 3 : index
      %c0_134 = arith.constant 0 : index
      %159 = vector.load %arg3[%c3_133, %c0_134] : memref<4x256xf32, #tpu.memory_space<vmem>>, vector<1x256xf32>
      %160 = vector.shape_cast %159 : vector<1x256xf32> to vector<1x256xf32>
      %161 = vector.broadcast %160 : vector<1x256xf32> to vector<8x256xf32>
      %c3_135 = arith.constant 3 : index
      %c0_136 = arith.constant 0 : index
      %c0_137 = arith.constant 0 : index
      %162 = vector.load %arg9[%c3_135, %c0_136, %c0_137] : memref<4x8x256xf32, #tpu.memory_space<vmem>>, vector<1x8x256xf32>
      %163 = vector.shape_cast %162 : vector<1x8x256xf32> to vector<8x256xf32>
      %164 = vector.shape_cast %161 : vector<8x256xf32> to vector<1x8x256xf32>
      tpu.vector_store %arg9[%c3_135, %c0_136, %c0_137], %164 {strides = array<i32>} : memref<4x8x256xf32, #tpu.memory_space<vmem>>, vector<1x8x256xf32>,
    } else {
    }
    %c0 = arith.constant 0 : index
    %c0_1 = arith.constant 0 : index
    %c0_2 = arith.constant 0 : index
    %3 = vector.load %arg9[%c0, %c0_1, %c0_2] : memref<4x8x256xf32, #tpu.memory_space<vmem>>, vector<1x8x256xf32>
    %4 = vector.shape_cast %3 : vector<1x8x256xf32> to vector<8x256xf32>
    %c1 = arith.constant 1 : index
    %c0_3 = arith.constant 0 : index
    %c0_4 = arith.constant 0 : index
    %5 = vector.load %arg9[%c1, %c0_3, %c0_4] : memref<4x8x256xf32, #tpu.memory_space<vmem>>, vector<1x8x256xf32>
    %6 = vector.shape_cast %5 : vector<1x8x256xf32> to vector<8x256xf32>
    %c2 = arith.constant 2 : index
    %c0_5 = arith.constant 0 : index
    %c0_6 = arith.constant 0 : index
    %7 = vector.load %arg9[%c2, %c0_5, %c0_6] : memref<4x8x256xf32, #tpu.memory_space<vmem>>, vector<1x8x256xf32>
    %8 = vector.shape_cast %7 : vector<1x8x256xf32> to vector<8x256xf32>
    %c3 = arith.constant 3 : index
    %c0_7 = arith.constant 0 : index
    %c0_8 = arith.constant 0 : index
    %9 = vector.load %arg9[%c3, %c0_7, %c0_8] : memref<4x8x256xf32, #tpu.memory_space<vmem>>, vector<1x8x256xf32>
    %10 = vector.shape_cast %9 : vector<1x8x256xf32> to vector<8x256xf32>
    %c0_9 = arith.constant 0 : index
    %c0_10 = arith.constant 0 : index
    %11 = vector.load %arg7[%c0_9, %c0_10] : memref<8x256xbf16, #tpu.memory_space<vmem>>, vector<8x256xbf16>
    %c0_11 = arith.constant 0 : index
    %c0_12 = arith.constant 0 : index
    %12 = vector.load %arg2[%c0_11, %c0_12] : memref<256x256xbf16, #tpu.memory_space<vmem>>, vector<256x256xbf16>
    %cst = arith.constant dense<0.000000e+00> : vector<8x256xf32>
    %13 = tpu.matmul %11, %12, %cst {dimension_numbers = #tpu.dot_dimension_numbers<[1], [0], [0], [1], [0, 0, 1, 1], [], []>} : vector<8x256xbf16>, vector<256x256xbf16>, vector<8x256xf32> -> vector<8x256xf32>
    %c0_13 = arith.constant 0 : index
    %c0_14 = arith.constant 0 : index
    %14 = vector.load %arg6[%c0_13, %c0_14] : memref<8x256xf32, #tpu.memory_space<vmem>>, vector<8x256xf32>
    %15 = arith.mulf %8, %14 : vector<8x256xf32>
    %16 = arith.mulf %10, %13 : vector<8x256xf32>
    %17 = arith.addf %15, %16 : vector<8x256xf32>
    %c0_15 = arith.constant 0 : index
    %c0_16 = arith.constant 0 : index
    %18 = vector.load %arg6[%c0_15, %c0_16] : memref<8x256xf32, #tpu.memory_space<vmem>>, vector<8x256xf32>
    tpu.vector_store %arg6[%c0_15, %c0_16], %17 {strides = array<i32>} : memref<8x256xf32, #tpu.memory_space<vmem>>, vector<8x256xf32>,
    %c0_17 = arith.constant 0 : index
    %c0_18 = arith.constant 0 : index
    %c0_19 = arith.constant 0 : index
    %19 = vector.load %arg1[%c0_17, %c0_18, %c0_19] : memref<4x8x256xf32, #tpu.memory_space<vmem>>, vector<1x8x256xf32>
    %20 = vector.shape_cast %19 : vector<1x8x256xf32> to vector<8x256xf32>
    %21 = arith.addf %20, %17 : vector<8x256xf32>
    %c0_20 = arith.constant 0 : index
    %c0_21 = arith.constant 0 : index
    %22 = vector.load %arg5[%c0_20, %c0_21] : memref<8x256xf32, #tpu.memory_space<vmem>>, vector<8x256xf32>
    %23 = arith.mulf %22, %4 : vector<8x256xf32>
    %24 = arith.mulf %6, %21 : vector<8x256xf32>
    %25 = arith.addf %23, %24 : vector<8x256xf32>
    %cst_22 = arith.constant 1.000000e+00 : f32
    %26 = vector.broadcast %cst_22 : f32 to vector<8x256xf32>
    %27 = arith.cmpf oge, %25, %26 : vector<8x256xf32>
    %cst_23 = arith.constant 0.000000e+00 : f32
    %28 = vector.broadcast %cst_23 : f32 to vector<8x256xf32>
    %29 = arith.select %27, %28, %25 : vector<8x256xi1>, vector<8x256xf32>
    %c0_24 = arith.constant 0 : index
    %c0_25 = arith.constant 0 : index
    %30 = vector.load %arg5[%c0_24, %c0_25] : memref<8x256xf32, #tpu.memory_space<vmem>>, vector<8x256xf32>
    tpu.vector_store %arg5[%c0_24, %c0_25], %29 {strides = array<i32>} : memref<8x256xf32, #tpu.memory_space<vmem>>, vector<8x256xf32>,
    %31 = arith.extui %27 : vector<8x256xi1> to vector<8x256xi32>
    %32 = arith.sitofp %31 : vector<8x256xi32> to vector<8x256xf32>
    %33 = arith.truncf %32 : vector<8x256xf32> to vector<8x256xbf16>
    %c0_26 = arith.constant 0 : index
    %c0_27 = arith.constant 0 : index
    %34 = vector.load %arg7[%c0_26, %c0_27] : memref<8x256xbf16, #tpu.memory_space<vmem>>, vector<8x256xbf16>
    tpu.vector_store %arg7[%c0_26, %c0_27], %33 {strides = array<i32>} : memref<8x256xbf16, #tpu.memory_space<vmem>>, vector<8x256xbf16>,
    %c0_28 = arith.constant 0 : index
    %c0_29 = arith.constant 0 : index
    %35 = vector.load %arg8[%c0_28, %c0_29] : memref<8x256xf32, #tpu.memory_space<vmem>>, vector<8x256xf32>
    %36 = arith.extui %27 : vector<8x256xi1> to vector<8x256xi32>
    %37 = arith.sitofp %36 : vector<8x256xi32> to vector<8x256xf32>
    %38 = arith.addf %35, %37 : vector<8x256xf32>
    %c0_30 = arith.constant 0 : index
    %c0_31 = arith.constant 0 : index
    %39 = vector.load %arg8[%c0_30, %c0_31] : memref<8x256xf32, #tpu.memory_space<vmem>>, vector<8x256xf32>
    tpu.vector_store %arg8[%c0_30, %c0_31], %38 {strides = array<i32>} : memref<8x256xf32, #tpu.memory_space<vmem>>, vector<8x256xf32>,
    %c4_i32 = arith.constant 4 : i32
    %40 = arith.cmpi sge, %arg0, %c4_i32 : i32
    %41 = arith.extui %40 : i1 to i32
    %c0_i32_32 = arith.constant 0 : i32
    %42 = arith.cmpi ne, %41, %c0_i32_32 : i32
    scf.if %42 {
      %c0_106 = arith.constant 0 : index
      %c0_107 = arith.constant 0 : index
      %133 = vector.load %arg8[%c0_106, %c0_107] : memref<8x256xf32, #tpu.memory_space<vmem>>, vector<8x256xf32>
      %c0_108 = arith.constant 0 : index
      %c0_109 = arith.constant 0 : index
      %c0_110 = arith.constant 0 : index
      %134 = vector.load %arg4[%c0_108, %c0_109, %c0_110] : memref<1x8x256xf32, #tpu.memory_space<vmem>>, vector<1x8x256xf32>
      %135 = vector.shape_cast %134 : vector<1x8x256xf32> to vector<8x256xf32>
      %136 = vector.shape_cast %133 : vector<8x256xf32> to vector<1x8x256xf32>
      tpu.vector_store %arg4[%c0_108, %c0_109, %c0_110], %136 {strides = array<i32>} : memref<1x8x256xf32, #tpu.memory_space<vmem>>, vector<1x8x256xf32>,
      %cst_111 = arith.constant 0.000000e+00 : f32
      %137 = vector.broadcast %cst_111 : f32 to vector<8x256xf32>
      %c0_112 = arith.constant 0 : index
      %c0_113 = arith.constant 0 : index
      %138 = vector.load %arg8[%c0_112, %c0_113] : memref<8x256xf32, #tpu.memory_space<vmem>>, vector<8x256xf32>
      tpu.vector_store %arg8[%c0_112, %c0_113], %137 {strides = array<i32>} : memref<8x256xf32, #tpu.memory_space<vmem>>, vector<8x256xf32>,
    } else {
    }
    %c0_33 = arith.constant 0 : index
    %c0_34 = arith.constant 0 : index
    %43 = vector.load %arg7[%c0_33, %c0_34] : memref<8x256xbf16, #tpu.memory_space<vmem>>, vector<8x256xbf16>
    %c0_35 = arith.constant 0 : index
    %c0_36 = arith.constant 0 : index
    %44 = vector.load %arg2[%c0_35, %c0_36] : memref<256x256xbf16, #tpu.memory_space<vmem>>, vector<256x256xbf16>
    %cst_37 = arith.constant dense<0.000000e+00> : vector<8x256xf32>
    %45 = tpu.matmul %43, %44, %cst_37 {dimension_numbers = #tpu.dot_dimension_numbers<[1], [0], [0], [1], [0, 0, 1, 1], [], []>} : vector<8x256xbf16>, vector<256x256xbf16>, vector<8x256xf32> -> vector<8x256xf32>
    %c0_38 = arith.constant 0 : index
    %c0_39 = arith.constant 0 : index
    %46 = vector.load %arg6[%c0_38, %c0_39] : memref<8x256xf32, #tpu.memory_space<vmem>>, vector<8x256xf32>
    %47 = arith.mulf %8, %46 : vector<8x256xf32>
    %48 = arith.mulf %10, %45 : vector<8x256xf32>
    %49 = arith.addf %47, %48 : vector<8x256xf32>
    %c0_40 = arith.constant 0 : index
    %c0_41 = arith.constant 0 : index
    %50 = vector.load %arg6[%c0_40, %c0_41] : memref<8x256xf32, #tpu.memory_space<vmem>>, vector<8x256xf32>
    tpu.vector_store %arg6[%c0_40, %c0_41], %49 {strides = array<i32>} : memref<8x256xf32, #tpu.memory_space<vmem>>, vector<8x256xf32>,
    %c1_42 = arith.constant 1 : index
    %c0_43 = arith.constant 0 : index
    %c0_44 = arith.constant 0 : index
    %51 = vector.load %arg1[%c1_42, %c0_43, %c0_44] : memref<4x8x256xf32, #tpu.memory_space<vmem>>, vector<1x8x256xf32>
    %52 = vector.shape_cast %51 : vector<1x8x256xf32> to vector<8x256xf32>
    %53 = arith.addf %52, %49 : vector<8x256xf32>
    %c0_45 = arith.constant 0 : index
    %c0_46 = arith.constant 0 : index
    %54 = vector.load %arg5[%c0_45, %c0_46] : memref<8x256xf32, #tpu.memory_space<vmem>>, vector<8x256xf32>
    %55 = arith.mulf %54, %4 : vector<8x256xf32>
    %56 = arith.mulf %6, %53 : vector<8x256xf32>
    %57 = arith.addf %55, %56 : vector<8x256xf32>
    %cst_47 = arith.constant 1.000000e+00 : f32
    %58 = vector.broadcast %cst_47 : f32 to vector<8x256xf32>
    %59 = arith.cmpf oge, %57, %58 : vector<8x256xf32>
    %cst_48 = arith.constant 0.000000e+00 : f32
    %60 = vector.broadcast %cst_48 : f32 to vector<8x256xf32>
    %61 = arith.select %59, %60, %57 : vector<8x256xi1>, vector<8x256xf32>
    %c0_49 = arith.constant 0 : index
    %c0_50 = arith.constant 0 : index
    %62 = vector.load %arg5[%c0_49, %c0_50] : memref<8x256xf32, #tpu.memory_space<vmem>>, vector<8x256xf32>
    tpu.vector_store %arg5[%c0_49, %c0_50], %61 {strides = array<i32>} : memref<8x256xf32, #tpu.memory_space<vmem>>, vector<8x256xf32>,
    %63 = arith.extui %59 : vector<8x256xi1> to vector<8x256xi32>
    %64 = arith.sitofp %63 : vector<8x256xi32> to vector<8x256xf32>
    %65 = arith.truncf %64 : vector<8x256xf32> to vector<8x256xbf16>
    %c0_51 = arith.constant 0 : index
    %c0_52 = arith.constant 0 : index
    %66 = vector.load %arg7[%c0_51, %c0_52] : memref<8x256xbf16, #tpu.memory_space<vmem>>, vector<8x256xbf16>
    tpu.vector_store %arg7[%c0_51, %c0_52], %65 {strides = array<i32>} : memref<8x256xbf16, #tpu.memory_space<vmem>>, vector<8x256xbf16>,
    %c0_53 = arith.constant 0 : index
    %c0_54 = arith.constant 0 : index
    %67 = vector.load %arg8[%c0_53, %c0_54] : memref<8x256xf32, #tpu.memory_space<vmem>>, vector<8x256xf32>
    %68 = arith.extui %59 : vector<8x256xi1> to vector<8x256xi32>
    %69 = arith.sitofp %68 : vector<8x256xi32> to vector<8x256xf32>
    %70 = arith.addf %67, %69 : vector<8x256xf32>
    %c0_55 = arith.constant 0 : index
    %c0_56 = arith.constant 0 : index
    %71 = vector.load %arg8[%c0_55, %c0_56] : memref<8x256xf32, #tpu.memory_space<vmem>>, vector<8x256xf32>
    tpu.vector_store %arg8[%c0_55, %c0_56], %70 {strides = array<i32>} : memref<8x256xf32, #tpu.memory_space<vmem>>, vector<8x256xf32>,
    %c0_57 = arith.constant 0 : index
    %c0_58 = arith.constant 0 : index
    %72 = vector.load %arg7[%c0_57, %c0_58] : memref<8x256xbf16, #tpu.memory_space<vmem>>, vector<8x256xbf16>
    %c0_59 = arith.constant 0 : index
    %c0_60 = arith.constant 0 : index
    %73 = vector.load %arg2[%c0_59, %c0_60] : memref<256x256xbf16, #tpu.memory_space<vmem>>, vector<256x256xbf16>
    %cst_61 = arith.constant dense<0.000000e+00> : vector<8x256xf32>
    %74 = tpu.matmul %72, %73, %cst_61 {dimension_numbers = #tpu.dot_dimension_numbers<[1], [0], [0], [1], [0, 0, 1, 1], [], []>} : vector<8x256xbf16>, vector<256x256xbf16>, vector<8x256xf32> -> vector<8x256xf32>
    %c0_62 = arith.constant 0 : index
    %c0_63 = arith.constant 0 : index
    %75 = vector.load %arg6[%c0_62, %c0_63] : memref<8x256xf32, #tpu.memory_space<vmem>>, vector<8x256xf32>
    %76 = arith.mulf %8, %75 : vector<8x256xf32>
    %77 = arith.mulf %10, %74 : vector<8x256xf32>
    %78 = arith.addf %76, %77 : vector<8x256xf32>
    %c0_64 = arith.constant 0 : index
    %c0_65 = arith.constant 0 : index
    %79 = vector.load %arg6[%c0_64, %c0_65] : memref<8x256xf32, #tpu.memory_space<vmem>>, vector<8x256xf32>
    tpu.vector_store %arg6[%c0_64, %c0_65], %78 {strides = array<i32>} : memref<8x256xf32, #tpu.memory_space<vmem>>, vector<8x256xf32>,
    %c2_66 = arith.constant 2 : index
    %c0_67 = arith.constant 0 : index
    %c0_68 = arith.constant 0 : index
    %80 = vector.load %arg1[%c2_66, %c0_67, %c0_68] : memref<4x8x256xf32, #tpu.memory_space<vmem>>, vector<1x8x256xf32>
    %81 = vector.shape_cast %80 : vector<1x8x256xf32> to vector<8x256xf32>
    %82 = arith.addf %81, %78 : vector<8x256xf32>
    %c0_69 = arith.constant 0 : index
    %c0_70 = arith.constant 0 : index
    %83 = vector.load %arg5[%c0_69, %c0_70] : memref<8x256xf32, #tpu.memory_space<vmem>>, vector<8x256xf32>
    %84 = arith.mulf %83, %4 : vector<8x256xf32>
    %85 = arith.mulf %6, %82 : vector<8x256xf32>
    %86 = arith.addf %84, %85 : vector<8x256xf32>
    %cst_71 = arith.constant 1.000000e+00 : f32
    %87 = vector.broadcast %cst_71 : f32 to vector<8x256xf32>
    %88 = arith.cmpf oge, %86, %87 : vector<8x256xf32>
    %cst_72 = arith.constant 0.000000e+00 : f32
    %89 = vector.broadcast %cst_72 : f32 to vector<8x256xf32>
    %90 = arith.select %88, %89, %86 : vector<8x256xi1>, vector<8x256xf32>
    %c0_73 = arith.constant 0 : index
    %c0_74 = arith.constant 0 : index
    %91 = vector.load %arg5[%c0_73, %c0_74] : memref<8x256xf32, #tpu.memory_space<vmem>>, vector<8x256xf32>
    tpu.vector_store %arg5[%c0_73, %c0_74], %90 {strides = array<i32>} : memref<8x256xf32, #tpu.memory_space<vmem>>, vector<8x256xf32>,
    %92 = arith.extui %88 : vector<8x256xi1> to vector<8x256xi32>
    %93 = arith.sitofp %92 : vector<8x256xi32> to vector<8x256xf32>
    %94 = arith.truncf %93 : vector<8x256xf32> to vector<8x256xbf16>
    %c0_75 = arith.constant 0 : index
    %c0_76 = arith.constant 0 : index
    %95 = vector.load %arg7[%c0_75, %c0_76] : memref<8x256xbf16, #tpu.memory_space<vmem>>, vector<8x256xbf16>
    tpu.vector_store %arg7[%c0_75, %c0_76], %94 {strides = array<i32>} : memref<8x256xbf16, #tpu.memory_space<vmem>>, vector<8x256xbf16>,
    %c0_77 = arith.constant 0 : index
    %c0_78 = arith.constant 0 : index
    %96 = vector.load %arg8[%c0_77, %c0_78] : memref<8x256xf32, #tpu.memory_space<vmem>>, vector<8x256xf32>
    %97 = arith.extui %88 : vector<8x256xi1> to vector<8x256xi32>
    %98 = arith.sitofp %97 : vector<8x256xi32> to vector<8x256xf32>
    %99 = arith.addf %96, %98 : vector<8x256xf32>
    %c0_79 = arith.constant 0 : index
    %c0_80 = arith.constant 0 : index
    %100 = vector.load %arg8[%c0_79, %c0_80] : memref<8x256xf32, #tpu.memory_space<vmem>>, vector<8x256xf32>
    tpu.vector_store %arg8[%c0_79, %c0_80], %99 {strides = array<i32>} : memref<8x256xf32, #tpu.memory_space<vmem>>, vector<8x256xf32>,
    %c0_81 = arith.constant 0 : index
    %c0_82 = arith.constant 0 : index
    %101 = vector.load %arg7[%c0_81, %c0_82] : memref<8x256xbf16, #tpu.memory_space<vmem>>, vector<8x256xbf16>
    %c0_83 = arith.constant 0 : index
    %c0_84 = arith.constant 0 : index
    %102 = vector.load %arg2[%c0_83, %c0_84] : memref<256x256xbf16, #tpu.memory_space<vmem>>, vector<256x256xbf16>
    %cst_85 = arith.constant dense<0.000000e+00> : vector<8x256xf32>
    %103 = tpu.matmul %101, %102, %cst_85 {dimension_numbers = #tpu.dot_dimension_numbers<[1], [0], [0], [1], [0, 0, 1, 1], [], []>} : vector<8x256xbf16>, vector<256x256xbf16>, vector<8x256xf32> -> vector<8x256xf32>
    %c0_86 = arith.constant 0 : index
    %c0_87 = arith.constant 0 : index
    %104 = vector.load %arg6[%c0_86, %c0_87] : memref<8x256xf32, #tpu.memory_space<vmem>>, vector<8x256xf32>
    %105 = arith.mulf %8, %104 : vector<8x256xf32>
    %106 = arith.mulf %10, %103 : vector<8x256xf32>
    %107 = arith.addf %105, %106 : vector<8x256xf32>
    %c0_88 = arith.constant 0 : index
    %c0_89 = arith.constant 0 : index
    %108 = vector.load %arg6[%c0_88, %c0_89] : memref<8x256xf32, #tpu.memory_space<vmem>>, vector<8x256xf32>
    tpu.vector_store %arg6[%c0_88, %c0_89], %107 {strides = array<i32>} : memref<8x256xf32, #tpu.memory_space<vmem>>, vector<8x256xf32>,
    %c3_90 = arith.constant 3 : index
    %c0_91 = arith.constant 0 : index
    %c0_92 = arith.constant 0 : index
    %109 = vector.load %arg1[%c3_90, %c0_91, %c0_92] : memref<4x8x256xf32, #tpu.memory_space<vmem>>, vector<1x8x256xf32>
    %110 = vector.shape_cast %109 : vector<1x8x256xf32> to vector<8x256xf32>
    %111 = arith.addf %110, %107 : vector<8x256xf32>
    %c0_93 = arith.constant 0 : index
    %c0_94 = arith.constant 0 : index
    %112 = vector.load %arg5[%c0_93, %c0_94] : memref<8x256xf32, #tpu.memory_space<vmem>>, vector<8x256xf32>
    %113 = arith.mulf %112, %4 : vector<8x256xf32>
    %114 = arith.mulf %6, %111 : vector<8x256xf32>
    %115 = arith.addf %113, %114 : vector<8x256xf32>
    %cst_95 = arith.constant 1.000000e+00 : f32
    %116 = vector.broadcast %cst_95 : f32 to vector<8x256xf32>
    %117 = arith.cmpf oge, %115, %116 : vector<8x256xf32>
    %cst_96 = arith.constant 0.000000e+00 : f32
    %118 = vector.broadcast %cst_96 : f32 to vector<8x256xf32>
    %119 = arith.select %117, %118, %115 : vector<8x256xi1>, vector<8x256xf32>
    %c0_97 = arith.constant 0 : index
    %c0_98 = arith.constant 0 : index
    %120 = vector.load %arg5[%c0_97, %c0_98] : memref<8x256xf32, #tpu.memory_space<vmem>>, vector<8x256xf32>
    tpu.vector_store %arg5[%c0_97, %c0_98], %119 {strides = array<i32>} : memref<8x256xf32, #tpu.memory_space<vmem>>, vector<8x256xf32>,
    %121 = arith.extui %117 : vector<8x256xi1> to vector<8x256xi32>
    %122 = arith.sitofp %121 : vector<8x256xi32> to vector<8x256xf32>
    %123 = arith.truncf %122 : vector<8x256xf32> to vector<8x256xbf16>
    %c0_99 = arith.constant 0 : index
    %c0_100 = arith.constant 0 : index
    %124 = vector.load %arg7[%c0_99, %c0_100] : memref<8x256xbf16, #tpu.memory_space<vmem>>, vector<8x256xbf16>
    tpu.vector_store %arg7[%c0_99, %c0_100], %123 {strides = array<i32>} : memref<8x256xbf16, #tpu.memory_space<vmem>>, vector<8x256xbf16>,
    %c0_101 = arith.constant 0 : index
    %c0_102 = arith.constant 0 : index
    %125 = vector.load %arg8[%c0_101, %c0_102] : memref<8x256xf32, #tpu.memory_space<vmem>>, vector<8x256xf32>
    %126 = arith.extui %117 : vector<8x256xi1> to vector<8x256xi32>
    %127 = arith.sitofp %126 : vector<8x256xi32> to vector<8x256xf32>
    %128 = arith.addf %125, %127 : vector<8x256xf32>
    %c0_103 = arith.constant 0 : index
    %c0_104 = arith.constant 0 : index
    %129 = vector.load %arg8[%c0_103, %c0_104] : memref<8x256xf32, #tpu.memory_space<vmem>>, vector<8x256xf32>
    tpu.vector_store %arg8[%c0_103, %c0_104], %128 {strides = array<i32>} : memref<8x256xf32, #tpu.memory_space<vmem>>, vector<8x256xf32>,
    %c2_i32 = arith.constant 2 : i32
    %130 = arith.cmpi eq, %arg0, %c2_i32 : i32
    %131 = arith.extui %130 : i1 to i32
    %c0_i32_105 = arith.constant 0 : i32
    %132 = arith.cmpi ne, %131, %c0_i32_105 : i32
    scf.if %132 {
      %cst_106 = arith.constant 0.000000e+00 : f32
      %133 = vector.broadcast %cst_106 : f32 to vector<8x256xf32>
      %c0_107 = arith.constant 0 : index
      %c0_108 = arith.constant 0 : index
      %134 = vector.load %arg8[%c0_107, %c0_108] : memref<8x256xf32, #tpu.memory_space<vmem>>, vector<8x256xf32>
      tpu.vector_store %arg8[%c0_107, %c0_108], %133 {strides = array<i32>} : memref<8x256xf32, #tpu.memory_space<vmem>>, vector<8x256xf32>,
    } else {
    }
    return
  }
  func.func @transform_0(%arg0: i32) -> (i32, i32, i32) {
    %c0_i32 = arith.constant 0 : i32
    %c0_i32_0 = arith.constant 0 : i32
    %c0_i32_1 = arith.constant 0 : i32
    return %arg0, %c0_i32, %c0_i32_0 : i32, i32, i32
  }
  func.func @transform_1(%arg0: i32) -> (i32, i32) {
    %c0_i32 = arith.constant 0 : i32
    %c0_i32_0 = arith.constant 0 : i32
    %c0_i32_1 = arith.constant 0 : i32
    return %c0_i32, %c0_i32_0 : i32, i32
  }
  func.func @transform_2(%arg0: i32) -> (i32, i32) {
    %c0_i32 = arith.constant 0 : i32
    %c0_i32_0 = arith.constant 0 : i32
    %c0_i32_1 = arith.constant 0 : i32
    return %c0_i32, %c0_i32_0 : i32, i32
  }
  func.func @transform_3(%arg0: i32) -> (i32, i32, i32) {
    %c4_i32 = arith.constant 4 : i32
    %0 = arith.subi %arg0, %c4_i32 : i32
    %c0_i32 = arith.constant 0 : i32
    %c4_i32_0 = arith.constant 4 : i32
    %1 = arith.maxsi %c0_i32, %0 : i32
    %2 = arith.minsi %c4_i32_0, %1 : i32
    %c0_i32_1 = arith.constant 0 : i32
    %c0_i32_2 = arith.constant 0 : i32
    %c0_i32_3 = arith.constant 0 : i32
    return %2, %c0_i32_1, %c0_i32_2 : i32, i32, i32
  }
}

module attributes {stable_mosaic.version = 11 : i64} {
  func.func @_lif_kernel(%arg0: i32, %arg1: memref<4x8x256xf32, #tpu.memory_space<vmem>>, %arg2: memref<256x256xbf16, #tpu.memory_space<vmem>>, %arg3: memref<4x256xf32, #tpu.memory_space<vmem>>, %arg4: memref<1x8x256xf32, #tpu.memory_space<vmem>>, %arg5: memref<8x256xf32, #tpu.memory_space<vmem>>, %arg6: memref<8x256xf32, #tpu.memory_space<vmem>>, %arg7: memref<8x256xbf16, #tpu.memory_space<vmem>>, %arg8: memref<8x256xf32, #tpu.memory_space<vmem>>, %arg9: memref<4x8x256xf32, #tpu.memory_space<vmem>>) attributes {dimension_semantics = [#tpu.dimension_semantics<arbitrary>], iteration_bounds = array<i64: 9>, scalar_prefetch = 0 : i64, scratch_operands = 5 : i64, tpu.core_type = #tpu.core_type<tc>, window_params = [{transform_indices = @transform_0, window_bounds = array<i64: 4, 8, 256>}, {pipeline_mode = #tpu.pipeline_mode<synchronous>, transform_indices = @transform_1, window_bounds = array<i64: 256, 256>}, {pipeline_mode = #tpu.pipeline_mode<synchronous>, transform_indices = @transform_2, window_bounds = array<i64: 4, 256>}, {transform_indices = @transform_3, window_bounds = array<i64: 1, 8, 256>}]} {
    %c0_i32 = arith.constant 0 : i32
    %0 = arith.cmpi eq, %arg0, %c0_i32 : i32
    %1 = arith.extui %0 : i1 to i32
    %c0_i32_0 = arith.constant 0 : i32
    %2 = arith.cmpi ne, %1, %c0_i32_0 : i32
    scf.if %2 {
      %cst_106 = arith.constant 0.000000e+00 : f32
      %133 = vector.broadcast %cst_106 : f32 to vector<8x256xf32>
      %c0_107 = arith.constant 0 : index
      %c0_108 = arith.constant 0 : index
      %134 = vector.load %arg5[%c0_107, %c0_108] : memref<8x256xf32, #tpu.memory_space<vmem>>, vector<8x256xf32>
      tpu.vector_store %arg5[%c0_107, %c0_108], %133 {strides = array<i32>} : memref<8x256xf32, #tpu.memory_space<vmem>>, vector<8x256xf32>,
      %cst_109 = arith.constant 0.000000e+00 : f32
      %135 = vector.broadcast %cst_109 : f32 to vector<8x256xf32>
      %c0_110 = arith.constant 0 : index
      %c0_111 = arith.constant 0 : index
      %136 = vector.load %arg6[%c0_110, %c0_111] : memref<8x256xf32, #tpu.memory_space<vmem>>, vector<8x256xf32>
      tpu.vector_store %arg6[%c0_110, %c0_111], %135 {strides = array<i32>} : memref<8x256xf32, #tpu.memory_space<vmem>>, vector<8x256xf32>,
      %cst_112 = arith.constant 0.000000e+00 : bf16
      %137 = vector.broadcast %cst_112 : bf16 to vector<8x256xbf16>
      %c0_113 = arith.constant 0 : index
      %c0_114 = arith.constant 0 : index
      %138 = vector.load %arg7[%c0_113, %c0_114] : memref<8x256xbf16, #tpu.memory_space<vmem>>, vector<8x256xbf16>
      tpu.vector_store %arg7[%c0_113, %c0_114], %137 {strides = array<i32>} : memref<8x256xbf16, #tpu.memory_space<vmem>>, vector<8x256xbf16>,
      %cst_115 = arith.constant 0.000000e+00 : f32
      %139 = vector.broadcast %cst_115 : f32 to vector<8x256xf32>
      %c0_116 = arith.constant 0 : index
      %c0_117 = arith.constant 0 : index
      %140 = vector.load %arg8[%c0_116, %c0_117] : memref<8x256xf32, #tpu.memory_space<vmem>>, vector<8x256xf32>
      tpu.vector_store %arg8[%c0_116, %c0_117], %139 {strides = array<i32>} : memref<8x256xf32, #tpu.memory_space<vmem>>, vector<8x256xf32>,
      %c0_118 = arith.constant 0 : index
      %c0_119 = arith.constant 0 : index
      %141 = vector.load %arg3[%c0_118, %c0_119] : memref<4x256xf32, #tpu.memory_space<vmem>>, vector<1x256xf32>
      %142 = vector.shape_cast %141 : vector<1x256xf32> to vector<1x256xf32>
      %143 = vector.broadcast %142 : vector<1x256xf32> to vector<8x256xf32>
      %c0_120 = arith.constant 0 : index
      %c0_121 = arith.constant 0 : index
      %c0_122 = arith.constant 0 : index
      %144 = vector.load %arg9[%c0_120, %c0_121, %c0_122] : memref<4x8x256xf32, #tpu.memory_space<vmem>>, vector<1x8x256xf32>
      %145 = vector.shape_cast %144 : vector<1x8x256xf32> to vector<8x256xf32>
      %146 = vector.shape_cast %143 : vector<8x256xf32> to vector<1x8x256xf32>
      tpu.vector_store %arg9[%c0_120, %c0_121, %c0_122], %146 {strides = array<i32>} : memref<4x8x256xf32, #tpu.memory_space<vmem>>, vector<1x8x256xf32>,
      %c1_123 = arith.constant 1 : index
      %c0_124 = arith.constant 0 : index
      %147 = vector.load %arg3[%c1_123, %c0_124] : memref<4x256xf32, #tpu.memory_space<vmem>>, vector<1x256xf32>
      %148 = vector.shape_cast %147 : vector<1x256xf32> to vector<1x256xf32>
      %149 = vector.broadcast %148 : vector<1x256xf32> to vector<8x256xf32>
      %c1_125 = arith.constant 1 : index
      %c0_126 = arith.constant 0 : index
      %c0_127 = arith.constant 0 : index
      %150 = vector.load %arg9[%c1_125, %c0_126, %c0_127] : memref<4x8x256xf32, #tpu.memory_space<vmem>>, vector<1x8x256xf32>
      %151 = vector.shape_cast %150 : vector<1x8x256xf32> to vector<8x256xf32>
      %152 = vector.shape_cast %149 : vector<8x256xf32> to vector<1x8x256xf32>
      tpu.vector_store %arg9[%c1_125, %c0_126, %c0_127], %152 {strides = array<i32>} : memref<4x8x256xf32, #tpu.memory_space<vmem>>, vector<1x8x256xf32>,
      %c2_128 = arith.constant 2 : index
      %c0_129 = arith.constant 0 : index
      %153 = vector.load %arg3[%c2_128, %c0_129] : memref<4x256xf32, #tpu.memory_space<vmem>>, vector<1x256xf32>
      %154 = vector.shape_cast %153 : vector<1x256xf32> to vector<1x256xf32>
      %155 = vector.broadcast %154 : vector<1x256xf32> to vector<8x256xf32>
      %c2_130 = arith.constant 2 : index
      %c0_131 = arith.constant 0 : index
      %c0_132 = arith.constant 0 : index
      %156 = vector.load %arg9[%c2_130, %c0_131, %c0_132] : memref<4x8x256xf32, #tpu.memory_space<vmem>>, vector<1x8x256xf32>
      %157 = vector.shape_cast %156 : vector<1x8x256xf32> to vector<8x256xf32>
      %158 = vector.shape_cast %155 : vector<8x256xf32> to vector<1x8x256xf32>
      tpu.vector_store %arg9[%c2_130, %c0_131, %c0_132], %158 {strides = array<i32>} : memref<4x8x256xf32, #tpu.memory_space<vmem>>, vector<1x8x256xf32>,
      %c3_133 = arith.constant 3 : index
      %c0_134 = arith.constant 0 : index
      %159 = vector.load %arg3[%c3_133, %c0_134] : memref<4x256xf32, #tpu.memory_space<vmem>>, vector<1x256xf32>
      %160 = vector.shape_cast %159 : vector<1x256xf32> to vector<1x256xf32>
      %161 = vector.broadcast %160 : vector<1x256xf32> to vector<8x256xf32>
      %c3_135 = arith.constant 3 : index
      %c0_136 = arith.constant 0 : index
      %c0_137 = arith.constant 0 : index
      %162 = vector.load %arg9[%c3_135, %c0_136, %c0_137] : memref<4x8x256xf32, #tpu.memory_space<vmem>>, vector<1x8x256xf32>
      %163 = vector.shape_cast %162 : vector<1x8x256xf32> to vector<8x256xf32>
      %164 = vector.shape_cast %161 : vector<8x256xf32> to vector<1x8x256xf32>
      tpu.vector_store %arg9[%c3_135, %c0_136, %c0_137], %164 {strides = array<i32>} : memref<4x8x256xf32, #tpu.memory_space<vmem>>, vector<1x8x256xf32>,
    } else {
    }
    %c0 = arith.constant 0 : index
    %c0_1 = arith.constant 0 : index
    %c0_2 = arith.constant 0 : index
    %3 = vector.load %arg9[%c0, %c0_1, %c0_2] : memref<4x8x256xf32, #tpu.memory_space<vmem>>, vector<1x8x256xf32>
    %4 = vector.shape_cast %3 : vector<1x8x256xf32> to vector<8x256xf32>
    %c1 = arith.constant 1 : index
    %c0_3 = arith.constant 0 : index
    %c0_4 = arith.constant 0 : index
    %5 = vector.load %arg9[%c1, %c0_3, %c0_4] : memref<4x8x256xf32, #tpu.memory_space<vmem>>, vector<1x8x256xf32>
    %6 = vector.shape_cast %5 : vector<1x8x256xf32> to vector<8x256xf32>
    %c2 = arith.constant 2 : index
    %c0_5 = arith.constant 0 : index
    %c0_6 = arith.constant 0 : index
    %7 = vector.load %arg9[%c2, %c0_5, %c0_6] : memref<4x8x256xf32, #tpu.memory_space<vmem>>, vector<1x8x256xf32>
    %8 = vector.shape_cast %7 : vector<1x8x256xf32> to vector<8x256xf32>
    %c3 = arith.constant 3 : index
    %c0_7 = arith.constant 0 : index
    %c0_8 = arith.constant 0 : index
    %9 = vector.load %arg9[%c3, %c0_7, %c0_8] : memref<4x8x256xf32, #tpu.memory_space<vmem>>, vector<1x8x256xf32>
    %10 = vector.shape_cast %9 : vector<1x8x256xf32> to vector<8x256xf32>
    %c0_9 = arith.constant 0 : index
    %c0_10 = arith.constant 0 : index
    %11 = vector.load %arg7[%c0_9, %c0_10] : memref<8x256xbf16, #tpu.memory_space<vmem>>, vector<8x256xbf16>
    %c0_11 = arith.constant 0 : index
    %c0_12 = arith.constant 0 : index
    %12 = vector.load %arg2[%c0_11, %c0_12] : memref<256x256xbf16, #tpu.memory_space<vmem>>, vector<256x256xbf16>
    %cst = arith.constant dense<0.000000e+00> : vector<8x256xf32>
    %13 = tpu.matmul %11, %12, %cst {dimension_numbers = #tpu.dot_dimension_numbers<[1], [0], [0], [1], [0, 0, 1, 1], [], []>} : vector<8x256xbf16>, vector<256x256xbf16>, vector<8x256xf32> -> vector<8x256xf32>
    %c0_13 = arith.constant 0 : index
    %c0_14 = arith.constant 0 : index
    %14 = vector.load %arg6[%c0_13, %c0_14] : memref<8x256xf32, #tpu.memory_space<vmem>>, vector<8x256xf32>
    %15 = arith.mulf %8, %14 : vector<8x256xf32>
    %16 = arith.mulf %10, %13 : vector<8x256xf32>
    %17 = arith.addf %15, %16 : vector<8x256xf32>
    %c0_15 = arith.constant 0 : index
    %c0_16 = arith.constant 0 : index
    %18 = vector.load %arg6[%c0_15, %c0_16] : memref<8x256xf32, #tpu.memory_space<vmem>>, vector<8x256xf32>
    tpu.vector_store %arg6[%c0_15, %c0_16], %17 {strides = array<i32>} : memref<8x256xf32, #tpu.memory_space<vmem>>, vector<8x256xf32>,
    %c0_17 = arith.constant 0 : index
    %c0_18 = arith.constant 0 : index
    %c0_19 = arith.constant 0 : index
    %19 = vector.load %arg1[%c0_17, %c0_18, %c0_19] : memref<4x8x256xf32, #tpu.memory_space<vmem>>, vector<1x8x256xf32>
    %20 = vector.shape_cast %19 : vector<1x8x256xf32> to vector<8x256xf32>
    %21 = arith.addf %20, %17 : vector<8x256xf32>
    %c0_20 = arith.constant 0 : index
    %c0_21 = arith.constant 0 : index
    %22 = vector.load %arg5[%c0_20, %c0_21] : memref<8x256xf32, #tpu.memory_space<vmem>>, vector<8x256xf32>
    %23 = arith.mulf %22, %4 : vector<8x256xf32>
    %24 = arith.mulf %6, %21 : vector<8x256xf32>
    %25 = arith.addf %23, %24 : vector<8x256xf32>
    %cst_22 = arith.constant 1.000000e+00 : f32
    %26 = vector.broadcast %cst_22 : f32 to vector<8x256xf32>
    %27 = arith.cmpf oge, %25, %26 : vector<8x256xf32>
    %cst_23 = arith.constant 0.000000e+00 : f32
    %28 = vector.broadcast %cst_23 : f32 to vector<8x256xf32>
    %29 = arith.select %27, %28, %25 : vector<8x256xi1>, vector<8x256xf32>
    %c0_24 = arith.constant 0 : index
    %c0_25 = arith.constant 0 : index
    %30 = vector.load %arg5[%c0_24, %c0_25] : memref<8x256xf32, #tpu.memory_space<vmem>>, vector<8x256xf32>
    tpu.vector_store %arg5[%c0_24, %c0_25], %29 {strides = array<i32>} : memref<8x256xf32, #tpu.memory_space<vmem>>, vector<8x256xf32>,
    %31 = arith.extui %27 : vector<8x256xi1> to vector<8x256xi32>
    %32 = arith.sitofp %31 : vector<8x256xi32> to vector<8x256xf32>
    %33 = arith.truncf %32 : vector<8x256xf32> to vector<8x256xbf16>
    %c0_26 = arith.constant 0 : index
    %c0_27 = arith.constant 0 : index
    %34 = vector.load %arg7[%c0_26, %c0_27] : memref<8x256xbf16, #tpu.memory_space<vmem>>, vector<8x256xbf16>
    tpu.vector_store %arg7[%c0_26, %c0_27], %33 {strides = array<i32>} : memref<8x256xbf16, #tpu.memory_space<vmem>>, vector<8x256xbf16>,
    %c0_28 = arith.constant 0 : index
    %c0_29 = arith.constant 0 : index
    %35 = vector.load %arg8[%c0_28, %c0_29] : memref<8x256xf32, #tpu.memory_space<vmem>>, vector<8x256xf32>
    %36 = arith.extui %27 : vector<8x256xi1> to vector<8x256xi32>
    %37 = arith.sitofp %36 : vector<8x256xi32> to vector<8x256xf32>
    %38 = arith.addf %35, %37 : vector<8x256xf32>
    %c0_30 = arith.constant 0 : index
    %c0_31 = arith.constant 0 : index
    %39 = vector.load %arg8[%c0_30, %c0_31] : memref<8x256xf32, #tpu.memory_space<vmem>>, vector<8x256xf32>
    tpu.vector_store %arg8[%c0_30, %c0_31], %38 {strides = array<i32>} : memref<8x256xf32, #tpu.memory_space<vmem>>, vector<8x256xf32>,
    %c4_i32 = arith.constant 4 : i32
    %40 = arith.cmpi sge, %arg0, %c4_i32 : i32
    %41 = arith.extui %40 : i1 to i32
    %c0_i32_32 = arith.constant 0 : i32
    %42 = arith.cmpi ne, %41, %c0_i32_32 : i32
    scf.if %42 {
      %c0_106 = arith.constant 0 : index
      %c0_107 = arith.constant 0 : index
      %133 = vector.load %arg8[%c0_106, %c0_107] : memref<8x256xf32, #tpu.memory_space<vmem>>, vector<8x256xf32>
      %c0_108 = arith.constant 0 : index
      %c0_109 = arith.constant 0 : index
      %c0_110 = arith.constant 0 : index
      %134 = vector.load %arg4[%c0_108, %c0_109, %c0_110] : memref<1x8x256xf32, #tpu.memory_space<vmem>>, vector<1x8x256xf32>
      %135 = vector.shape_cast %134 : vector<1x8x256xf32> to vector<8x256xf32>
      %136 = vector.shape_cast %133 : vector<8x256xf32> to vector<1x8x256xf32>
      tpu.vector_store %arg4[%c0_108, %c0_109, %c0_110], %136 {strides = array<i32>} : memref<1x8x256xf32, #tpu.memory_space<vmem>>, vector<1x8x256xf32>,
      %cst_111 = arith.constant 0.000000e+00 : f32
      %137 = vector.broadcast %cst_111 : f32 to vector<8x256xf32>
      %c0_112 = arith.constant 0 : index
      %c0_113 = arith.constant 0 : index
      %138 = vector.load %arg8[%c0_112, %c0_113] : memref<8x256xf32, #tpu.memory_space<vmem>>, vector<8x256xf32>
      tpu.vector_store %arg8[%c0_112, %c0_113], %137 {strides = array<i32>} : memref<8x256xf32, #tpu.memory_space<vmem>>, vector<8x256xf32>,
    } else {
    }
    %c0_33 = arith.constant 0 : index
    %c0_34 = arith.constant 0 : index
    %43 = vector.load %arg7[%c0_33, %c0_34] : memref<8x256xbf16, #tpu.memory_space<vmem>>, vector<8x256xbf16>
    %c0_35 = arith.constant 0 : index
    %c0_36 = arith.constant 0 : index
    %44 = vector.load %arg2[%c0_35, %c0_36] : memref<256x256xbf16, #tpu.memory_space<vmem>>, vector<256x256xbf16>
    %cst_37 = arith.constant dense<0.000000e+00> : vector<8x256xf32>
    %45 = tpu.matmul %43, %44, %cst_37 {dimension_numbers = #tpu.dot_dimension_numbers<[1], [0], [0], [1], [0, 0, 1, 1], [], []>} : vector<8x256xbf16>, vector<256x256xbf16>, vector<8x256xf32> -> vector<8x256xf32>
    %c0_38 = arith.constant 0 : index
    %c0_39 = arith.constant 0 : index
    %46 = vector.load %arg6[%c0_38, %c0_39] : memref<8x256xf32, #tpu.memory_space<vmem>>, vector<8x256xf32>
    %47 = arith.mulf %8, %46 : vector<8x256xf32>
    %48 = arith.mulf %10, %45 : vector<8x256xf32>
    %49 = arith.addf %47, %48 : vector<8x256xf32>
    %c0_40 = arith.constant 0 : index
    %c0_41 = arith.constant 0 : index
    %50 = vector.load %arg6[%c0_40, %c0_41] : memref<8x256xf32, #tpu.memory_space<vmem>>, vector<8x256xf32>
    tpu.vector_store %arg6[%c0_40, %c0_41], %49 {strides = array<i32>} : memref<8x256xf32, #tpu.memory_space<vmem>>, vector<8x256xf32>,
    %c1_42 = arith.constant 1 : index
    %c0_43 = arith.constant 0 : index
    %c0_44 = arith.constant 0 : index
    %51 = vector.load %arg1[%c1_42, %c0_43, %c0_44] : memref<4x8x256xf32, #tpu.memory_space<vmem>>, vector<1x8x256xf32>
    %52 = vector.shape_cast %51 : vector<1x8x256xf32> to vector<8x256xf32>
    %53 = arith.addf %52, %49 : vector<8x256xf32>
    %c0_45 = arith.constant 0 : index
    %c0_46 = arith.constant 0 : index
    %54 = vector.load %arg5[%c0_45, %c0_46] : memref<8x256xf32, #tpu.memory_space<vmem>>, vector<8x256xf32>
    %55 = arith.mulf %54, %4 : vector<8x256xf32>
    %56 = arith.mulf %6, %53 : vector<8x256xf32>
    %57 = arith.addf %55, %56 : vector<8x256xf32>
    %cst_47 = arith.constant 1.000000e+00 : f32
    %58 = vector.broadcast %cst_47 : f32 to vector<8x256xf32>
    %59 = arith.cmpf oge, %57, %58 : vector<8x256xf32>
    %cst_48 = arith.constant 0.000000e+00 : f32
    %60 = vector.broadcast %cst_48 : f32 to vector<8x256xf32>
    %61 = arith.select %59, %60, %57 : vector<8x256xi1>, vector<8x256xf32>
    %c0_49 = arith.constant 0 : index
    %c0_50 = arith.constant 0 : index
    %62 = vector.load %arg5[%c0_49, %c0_50] : memref<8x256xf32, #tpu.memory_space<vmem>>, vector<8x256xf32>
    tpu.vector_store %arg5[%c0_49, %c0_50], %61 {strides = array<i32>} : memref<8x256xf32, #tpu.memory_space<vmem>>, vector<8x256xf32>,
    %63 = arith.extui %59 : vector<8x256xi1> to vector<8x256xi32>
    %64 = arith.sitofp %63 : vector<8x256xi32> to vector<8x256xf32>
    %65 = arith.truncf %64 : vector<8x256xf32> to vector<8x256xbf16>
    %c0_51 = arith.constant 0 : index
    %c0_52 = arith.constant 0 : index
    %66 = vector.load %arg7[%c0_51, %c0_52] : memref<8x256xbf16, #tpu.memory_space<vmem>>, vector<8x256xbf16>
    tpu.vector_store %arg7[%c0_51, %c0_52], %65 {strides = array<i32>} : memref<8x256xbf16, #tpu.memory_space<vmem>>, vector<8x256xbf16>,
    %c0_53 = arith.constant 0 : index
    %c0_54 = arith.constant 0 : index
    %67 = vector.load %arg8[%c0_53, %c0_54] : memref<8x256xf32, #tpu.memory_space<vmem>>, vector<8x256xf32>
    %68 = arith.extui %59 : vector<8x256xi1> to vector<8x256xi32>
    %69 = arith.sitofp %68 : vector<8x256xi32> to vector<8x256xf32>
    %70 = arith.addf %67, %69 : vector<8x256xf32>
    %c0_55 = arith.constant 0 : index
    %c0_56 = arith.constant 0 : index
    %71 = vector.load %arg8[%c0_55, %c0_56] : memref<8x256xf32, #tpu.memory_space<vmem>>, vector<8x256xf32>
    tpu.vector_store %arg8[%c0_55, %c0_56], %70 {strides = array<i32>} : memref<8x256xf32, #tpu.memory_space<vmem>>, vector<8x256xf32>,
    %c0_57 = arith.constant 0 : index
    %c0_58 = arith.constant 0 : index
    %72 = vector.load %arg7[%c0_57, %c0_58] : memref<8x256xbf16, #tpu.memory_space<vmem>>, vector<8x256xbf16>
    %c0_59 = arith.constant 0 : index
    %c0_60 = arith.constant 0 : index
    %73 = vector.load %arg2[%c0_59, %c0_60] : memref<256x256xbf16, #tpu.memory_space<vmem>>, vector<256x256xbf16>
    %cst_61 = arith.constant dense<0.000000e+00> : vector<8x256xf32>
    %74 = tpu.matmul %72, %73, %cst_61 {dimension_numbers = #tpu.dot_dimension_numbers<[1], [0], [0], [1], [0, 0, 1, 1], [], []>} : vector<8x256xbf16>, vector<256x256xbf16>, vector<8x256xf32> -> vector<8x256xf32>
    %c0_62 = arith.constant 0 : index
    %c0_63 = arith.constant 0 : index
    %75 = vector.load %arg6[%c0_62, %c0_63] : memref<8x256xf32, #tpu.memory_space<vmem>>, vector<8x256xf32>
    %76 = arith.mulf %8, %75 : vector<8x256xf32>
    %77 = arith.mulf %10, %74 : vector<8x256xf32>
    %78 = arith.addf %76, %77 : vector<8x256xf32>
    %c0_64 = arith.constant 0 : index
    %c0_65 = arith.constant 0 : index
    %79 = vector.load %arg6[%c0_64, %c0_65] : memref<8x256xf32, #tpu.memory_space<vmem>>, vector<8x256xf32>
    tpu.vector_store %arg6[%c0_64, %c0_65], %78 {strides = array<i32>} : memref<8x256xf32, #tpu.memory_space<vmem>>, vector<8x256xf32>,
    %c2_66 = arith.constant 2 : index
    %c0_67 = arith.constant 0 : index
    %c0_68 = arith.constant 0 : index
    %80 = vector.load %arg1[%c2_66, %c0_67, %c0_68] : memref<4x8x256xf32, #tpu.memory_space<vmem>>, vector<1x8x256xf32>
    %81 = vector.shape_cast %80 : vector<1x8x256xf32> to vector<8x256xf32>
    %82 = arith.addf %81, %78 : vector<8x256xf32>
    %c0_69 = arith.constant 0 : index
    %c0_70 = arith.constant 0 : index
    %83 = vector.load %arg5[%c0_69, %c0_70] : memref<8x256xf32, #tpu.memory_space<vmem>>, vector<8x256xf32>
    %84 = arith.mulf %83, %4 : vector<8x256xf32>
    %85 = arith.mulf %6, %82 : vector<8x256xf32>
    %86 = arith.addf %84, %85 : vector<8x256xf32>
    %cst_71 = arith.constant 1.000000e+00 : f32
    %87 = vector.broadcast %cst_71 : f32 to vector<8x256xf32>
    %88 = arith.cmpf oge, %86, %87 : vector<8x256xf32>
    %cst_72 = arith.constant 0.000000e+00 : f32
    %89 = vector.broadcast %cst_72 : f32 to vector<8x256xf32>
    %90 = arith.select %88, %89, %86 : vector<8x256xi1>, vector<8x256xf32>
    %c0_73 = arith.constant 0 : index
    %c0_74 = arith.constant 0 : index
    %91 = vector.load %arg5[%c0_73, %c0_74] : memref<8x256xf32, #tpu.memory_space<vmem>>, vector<8x256xf32>
    tpu.vector_store %arg5[%c0_73, %c0_74], %90 {strides = array<i32>} : memref<8x256xf32, #tpu.memory_space<vmem>>, vector<8x256xf32>,
    %92 = arith.extui %88 : vector<8x256xi1> to vector<8x256xi32>
    %93 = arith.sitofp %92 : vector<8x256xi32> to vector<8x256xf32>
    %94 = arith.truncf %93 : vector<8x256xf32> to vector<8x256xbf16>
    %c0_75 = arith.constant 0 : index
    %c0_76 = arith.constant 0 : index
    %95 = vector.load %arg7[%c0_75, %c0_76] : memref<8x256xbf16, #tpu.memory_space<vmem>>, vector<8x256xbf16>
    tpu.vector_store %arg7[%c0_75, %c0_76], %94 {strides = array<i32>} : memref<8x256xbf16, #tpu.memory_space<vmem>>, vector<8x256xbf16>,
    %c0_77 = arith.constant 0 : index
    %c0_78 = arith.constant 0 : index
    %96 = vector.load %arg8[%c0_77, %c0_78] : memref<8x256xf32, #tpu.memory_space<vmem>>, vector<8x256xf32>
    %97 = arith.extui %88 : vector<8x256xi1> to vector<8x256xi32>
    %98 = arith.sitofp %97 : vector<8x256xi32> to vector<8x256xf32>
    %99 = arith.addf %96, %98 : vector<8x256xf32>
    %c0_79 = arith.constant 0 : index
    %c0_80 = arith.constant 0 : index
    %100 = vector.load %arg8[%c0_79, %c0_80] : memref<8x256xf32, #tpu.memory_space<vmem>>, vector<8x256xf32>
    tpu.vector_store %arg8[%c0_79, %c0_80], %99 {strides = array<i32>} : memref<8x256xf32, #tpu.memory_space<vmem>>, vector<8x256xf32>,
    %c0_81 = arith.constant 0 : index
    %c0_82 = arith.constant 0 : index
    %101 = vector.load %arg7[%c0_81, %c0_82] : memref<8x256xbf16, #tpu.memory_space<vmem>>, vector<8x256xbf16>
    %c0_83 = arith.constant 0 : index
    %c0_84 = arith.constant 0 : index
    %102 = vector.load %arg2[%c0_83, %c0_84] : memref<256x256xbf16, #tpu.memory_space<vmem>>, vector<256x256xbf16>
    %cst_85 = arith.constant dense<0.000000e+00> : vector<8x256xf32>
    %103 = tpu.matmul %101, %102, %cst_85 {dimension_numbers = #tpu.dot_dimension_numbers<[1], [0], [0], [1], [0, 0, 1, 1], [], []>} : vector<8x256xbf16>, vector<256x256xbf16>, vector<8x256xf32> -> vector<8x256xf32>
    %c0_86 = arith.constant 0 : index
    %c0_87 = arith.constant 0 : index
    %104 = vector.load %arg6[%c0_86, %c0_87] : memref<8x256xf32, #tpu.memory_space<vmem>>, vector<8x256xf32>
    %105 = arith.mulf %8, %104 : vector<8x256xf32>
    %106 = arith.mulf %10, %103 : vector<8x256xf32>
    %107 = arith.addf %105, %106 : vector<8x256xf32>
    %c0_88 = arith.constant 0 : index
    %c0_89 = arith.constant 0 : index
    %108 = vector.load %arg6[%c0_88, %c0_89] : memref<8x256xf32, #tpu.memory_space<vmem>>, vector<8x256xf32>
    tpu.vector_store %arg6[%c0_88, %c0_89], %107 {strides = array<i32>} : memref<8x256xf32, #tpu.memory_space<vmem>>, vector<8x256xf32>,
    %c3_90 = arith.constant 3 : index
    %c0_91 = arith.constant 0 : index
    %c0_92 = arith.constant 0 : index
    %109 = vector.load %arg1[%c3_90, %c0_91, %c0_92] : memref<4x8x256xf32, #tpu.memory_space<vmem>>, vector<1x8x256xf32>
    %110 = vector.shape_cast %109 : vector<1x8x256xf32> to vector<8x256xf32>
    %111 = arith.addf %110, %107 : vector<8x256xf32>
    %c0_93 = arith.constant 0 : index
    %c0_94 = arith.constant 0 : index
    %112 = vector.load %arg5[%c0_93, %c0_94] : memref<8x256xf32, #tpu.memory_space<vmem>>, vector<8x256xf32>
    %113 = arith.mulf %112, %4 : vector<8x256xf32>
    %114 = arith.mulf %6, %111 : vector<8x256xf32>
    %115 = arith.addf %113, %114 : vector<8x256xf32>
    %cst_95 = arith.constant 1.000000e+00 : f32
    %116 = vector.broadcast %cst_95 : f32 to vector<8x256xf32>
    %117 = arith.cmpf oge, %115, %116 : vector<8x256xf32>
    %cst_96 = arith.constant 0.000000e+00 : f32
    %118 = vector.broadcast %cst_96 : f32 to vector<8x256xf32>
    %119 = arith.select %117, %118, %115 : vector<8x256xi1>, vector<8x256xf32>
    %c0_97 = arith.constant 0 : index
    %c0_98 = arith.constant 0 : index
    %120 = vector.load %arg5[%c0_97, %c0_98] : memref<8x256xf32, #tpu.memory_space<vmem>>, vector<8x256xf32>
    tpu.vector_store %arg5[%c0_97, %c0_98], %119 {strides = array<i32>} : memref<8x256xf32, #tpu.memory_space<vmem>>, vector<8x256xf32>,
    %121 = arith.extui %117 : vector<8x256xi1> to vector<8x256xi32>
    %122 = arith.sitofp %121 : vector<8x256xi32> to vector<8x256xf32>
    %123 = arith.truncf %122 : vector<8x256xf32> to vector<8x256xbf16>
    %c0_99 = arith.constant 0 : index
    %c0_100 = arith.constant 0 : index
    %124 = vector.load %arg7[%c0_99, %c0_100] : memref<8x256xbf16, #tpu.memory_space<vmem>>, vector<8x256xbf16>
    tpu.vector_store %arg7[%c0_99, %c0_100], %123 {strides = array<i32>} : memref<8x256xbf16, #tpu.memory_space<vmem>>, vector<8x256xbf16>,
    %c0_101 = arith.constant 0 : index
    %c0_102 = arith.constant 0 : index
    %125 = vector.load %arg8[%c0_101, %c0_102] : memref<8x256xf32, #tpu.memory_space<vmem>>, vector<8x256xf32>
    %126 = arith.extui %117 : vector<8x256xi1> to vector<8x256xi32>
    %127 = arith.sitofp %126 : vector<8x256xi32> to vector<8x256xf32>
    %128 = arith.addf %125, %127 : vector<8x256xf32>
    %c0_103 = arith.constant 0 : index
    %c0_104 = arith.constant 0 : index
    %129 = vector.load %arg8[%c0_103, %c0_104] : memref<8x256xf32, #tpu.memory_space<vmem>>, vector<8x256xf32>
    tpu.vector_store %arg8[%c0_103, %c0_104], %128 {strides = array<i32>} : memref<8x256xf32, #tpu.memory_space<vmem>>, vector<8x256xf32>,
    %c2_i32 = arith.constant 2 : i32
    %130 = arith.cmpi eq, %arg0, %c2_i32 : i32
    %131 = arith.extui %130 : i1 to i32
    %c0_i32_105 = arith.constant 0 : i32
    %132 = arith.cmpi ne, %131, %c0_i32_105 : i32
    scf.if %132 {
      %cst_106 = arith.constant 0.000000e+00 : f32
      %133 = vector.broadcast %cst_106 : f32 to vector<8x256xf32>
      %c0_107 = arith.constant 0 : index
      %c0_108 = arith.constant 0 : index
      %134 = vector.load %arg8[%c0_107, %c0_108] : memref<8x256xf32, #tpu.memory_space<vmem>>, vector<8x256xf32>
      tpu.vector_store %arg8[%c0_107, %c0_108], %133 {strides = array<i32>} : memref<8x256xf32, #tpu.memory_space<vmem>>, vector<8x256xf32>,
    } else {
    }
    return
  }
  func.func @transform_0(%arg0: i32) -> (i32, i32, i32) {
    %c0_i32 = arith.constant 0 : i32
    %c0_i32_0 = arith.constant 0 : i32
    %c0_i32_1 = arith.constant 0 : i32
    return %arg0, %c0_i32, %c0_i32_0 : i32, i32, i32
  }
  func.func @transform_1(%arg0: i32) -> (i32, i32) {
    %c0_i32 = arith.constant 0 : i32
    %c0_i32_0 = arith.constant 0 : i32
    %c0_i32_1 = arith.constant 0 : i32
    return %c0_i32, %c0_i32_0 : i32, i32
  }
  func.func @transform_2(%arg0: i32) -> (i32, i32) {
    %c0_i32 = arith.constant 0 : i32
    %c0_i32_0 = arith.constant 0 : i32
    %c0_i32_1 = arith.constant 0 : i32
    return %c0_i32, %c0_i32_0 : i32, i32
  }
  func.func @transform_3(%arg0: i32) -> (i32, i32, i32) {
    %c4_i32 = arith.constant 4 : i32
    %0 = arith.subi %arg0, %c4_i32 : i32
    %c0_i32 = arith.constant 0 : i32
    %c4_i32_0 = arith.constant 4 : i32
    %1 = arith.maxsi %c0_i32, %0 : i32
    %2 = arith.minsi %c4_i32_0, %1 : i32
    %c0_i32_1 = arith.constant 0 : i32
    %c0_i32_2 = arith.constant 0 : i32
    %c0_i32_3 = arith.constant 0 : i32
    return %2, %c0_i32_1, %c0_i32_2 : i32, i32, i32
  }
}

</mosaic_0001>

<bundles_post_ra>
// kernel: tpu_custom_call.1
= control target key start
LH: loop header
LB: loop body
LE: loop exit
PB: predicated region body
PF: predicated region fallthrough
CT: control target
= control target key end

     0   :  { %8 = vsyncpa [#allocation8], 0  ;;  %s2603_s0 = inlined_call_operand.hbm [shape: f32[36,8,256], index: 0, kind: input, shape index: {}]   ;;  %s2604_s1 = inlined_call_operand.hbm [shape: bf16[256,256], index: 1, kind: input, shape index: {}]   ;;  %s2605_s2 = inlined_call_operand.hbm [shape: f32[4,256], index: 2, kind: input, shape index: {}]   ;;  %s2606_s3 = inlined_call_operand.hbm [shape: f32[5,8,256], index: 3, kind: output, shape index: {}]  }
   0x1   :  { %10 = vsyncpa [#allocation8 + $0x1], 0 }
   0x2   :  { %11 = vsyncpa [#allocation11], 0 }
   0x3   :  { %12 = vsyncpa [#allocation9], 0 }
   0x4   :  { %14 = vsyncpa [#allocation9 + $0x1], 0  ;;  %s2225_s12 = smov 0   ;;  %s2227_s13 = smov 0  }
   0x5   :  { %s2229_s14 = smov 0   ;;  %s2231_s15 = smov 0  }
   0x6   :  { %s2233_s16 = smov 0   ;;  %s2235_s17 = smov 0  }
   0x7   :  { %s2237_s18 = smov 0  }
   0x8 LB: > { %s2259_s19 = sadd.s32 4294967295, %s2189_s18   ;;  %s1598_s20 = sadd.s32 4294967294, %s2189_s18   ;;  %s2189_s18 = sphi %s2237_s18, %s2630_s18   ;;  %s2185_s17 = sphi %s2235_s17, %s2629_s17   ;;  %s2181_s16 = sphi %s2233_s16, %s2628_s16   ;;  %s2177_s15 = sphi %s2231_s15, %s2627_s15   ;;  %s2173_s14 = sphi %s2229_s14, %s2626_s14   ;;  %s2169_s13 = sphi %s2227_s13, %s2625_s13   ;;  %s2165_s12 = sphi %s2225_s12, %s2624_s12  }
   0x9   : > { %s2263_s21 = sadd.s32 1, %s2189_s18   ;;  %p40_p0 = scmp.ne.s32.totalorder %s2181_s16, %s2177_s15 }
   0xa   : > { %p2607_p1 = scmp.eq.s32.totalorder %s2259_s19, 0  ;;  %s1599_s22 = sadd.s32 4294967292, %s2189_s18 }
   0xb   : > { %p93_p2 = scmp.gt.s32.totalorder %s1599_s22, 0  ;;  %p1600_p3 = scmp.lt.s32.totalorder %s1599_s22, 4 }
   0xc   : > { %p2270_p4 = por %p2607_p1, %p40_p0  ;;  %s1605_s24 = sadd.s32 4294967292, %s2263_s21 }
   0xd   : > { %s2632_s22 = smov (!%p93_p2, %s1599_s22), 0  ;;  %p98_p5 = scmp.gt.s32.totalorder %s1605_s24, 0 }
   0xe   : > { %s2611_s23 = scalar_select %p2270_p4, 1, 0 }
   0xf   : > { %p1606_p6 = scmp.lt.s32.totalorder %s1605_s24, 4  ;;  %s2634_s22 = smov (!%p1600_p3, %s2632_s22), 4 }
  0x10   : > { %s2636_s24 = smov (!%p98_p5, %s1605_s24), 0  ;;  %s105_s25 = sadd.s32 1, %s2173_s14 }
  0x11   : > { %p115_p7 = scmp.ne.s32.totalorder %s2173_s14, %s2169_s13  ;;  %s2638_s24 = smov (!%p1606_p6, %s2636_s24), 4 }
  0x12   : > { %p116_p8 = scmp.eq.s32.totalorder %s2259_s19, 8  ;;  %p121_p9 = scmp.ne.s32.totalorder %s2169_s13, %s2165_s12 }
  0x13   : > { %s102_s26 = ssub.s32 %s2634_s22, %s2638_s24  ;;  %p122_p10 = scmp.eq.s32.totalorder %s1598_s20, 8 }
  0x14   : > { %p103_p11 = scmp.eq.s32.totalorder %s102_s26, 0  ;;  %p2281_p12 = por %p116_p8, %p115_p7 }
  0x15   : > { %p2285_p13 = por %p122_p10, %p121_p9  ;;  %p1611_p0 = scmp.ge.s32.totalorder %s2189_s18, 1 }
  0x16   : > { %s2612_s27 = scalar_select %p2281_p12, 1, 0 }
  0x17   : > { %s2613_s28 = scalar_select %p2285_p13, 1, 0 }
  0x18   : > { %s2291_s29 = scalar_select %p103_p11, %s2173_s14, %s105_s25  }
  0x19   : > { %p129_p2 = scmp.lt.s32.totalorder %s2189_s18, 10  ;;  %s2191_s4 = smov [#allocation10]  }
  0x1a   : > { %s141_s5 = sshll.u32 %s2191_s4, 4  ;;  %s2192_s7 = smov [#allocation12]   ;;  %s142_s5 = int_to_ptr.vmem [resolvable:$true] %s141_s5 }
  0x1b   : > { %p2295_p5 = pnand %p1611_p0, %p129_p2  ;;  %s155_s8 = sshll.u32 %s2192_s7, 4  ;;  %s156_s8 = int_to_ptr.vmem [resolvable:$true] %s155_s8 }
  0x1c   : > { %s24_s9 = ssub.s32 %s2189_s18, %s2263_s21  ;;  %s2028_s10 = scalar_lea.vmem %s142_s5, 4096 }
  0x1d   : > { %s2614_s30 = scalar_select %p2295_p5, 1, 0 }
  0x1e   : > { %p1817_p6 = pneg %p2295_p5  ;;  %p2029_p9 = scmp.ne.s32.totalorder %s142_s5, %s2028_s10 }
  0x1f   : > { %p2036_p0 = scmp.lt.s32.totalorder %s142_s5, %s142_s5  ;;  %p2037_p2 = scmp.lt.s32.totalorder %s2028_s10, %s2028_s10 }
  0x20   : > { %p2303_p7 = pnand %p1817_p6, %p2607_p1 }
  0x21   : > { %p2038_p6 = por %p2037_p2, %p2036_p0 }
  0x22   : > { %p2019_p8 = pneg %p2303_p7 }
  0x24   : > { %p2031_p10 = pnand %p2029_p9, %p2019_p8 }
  0x26   : > { %p2032_p11 = pneg %p2031_p10 }
  0x28   : > { %p2039_p3 = pnand %p2038_p6, %p2032_p11 }
  0x2a   : > { %2042 = shalt.err (!%p2039_p3)
}
  0x2b   : > { %s2193_s11 = smov 128   ;;  %s2194_s15 = smov 8  }
  0x2c   : > { %1820 = dma.hbm_to_vmem [thread:$0]  (!%p2303_p7), %s2604_s1, 4096, %s142_s5, [#allocation11], %s2193_s11, %s2193_s11, %s2194_s15  }
  0x2d   : > { %s2054_s24 = scalar_lea.vmem %s156_s8, 128  ;;  %p2062_p13 = scmp.lt.s32.totalorder %s156_s8, %s156_s8 }
  0x2e   : > { %p2055_p1 = scmp.ne.s32.totalorder %s156_s8, %s2054_s24  ;;  %p2063_p12 = scmp.lt.s32.totalorder %s2054_s24, %s2054_s24 }
  0x30   : > { %p2057_p9 = pnand %p2055_p1, %p2019_p8  ;;  %p2064_p0 = por %p2063_p12, %p2062_p13 }
  0x32   : > { %p2058_p10 = pneg %p2057_p9 }
  0x34   : > { %p2065_p11 = pnand %p2064_p0, %p2058_p10 }
  0x36   : > { %2068 = shalt.err (!%p2065_p11)
}
  0x37   : > { %1823 = dma.hbm_to_vmem [thread:$0]  (!%p2303_p7), %s2605_s2, 128, %s156_s8, [#allocation11]  }
  0x38   : > { %p25_p1 = scmp.eq.s32.totalorder %s24_s9, 0  ;;  %s27_s4 = sadd.s32 1, %s2185_s17 }
  0x39   : > { %p34_p3 = scmp.ne.s32.totalorder %s2185_s17, %s2181_s16  ;;  %p35_p12 = scmp.eq.s32.totalorder %s2189_s18, 0 }
  0x3a   : > { %s2332_s5 = scalar_select %p25_p1, %s2185_s17, %s27_s4  }
  0x3b   : > { %p36_p13 = por %p35_p12, %p34_p3  ;;  %p1834_p8 = scmp.lt.s32.totalorder %s2189_s18, 9 }
  0x3c   : > { %s166_s6 = sand.u32 1, %s2185_s17   ;;  %s1797_s7 = sshll.u32 %s2189_s18, 10 }
  0x3d   : > { %s1615_s10 = sshll.u32 %s166_s6, 6  ;;  %s2340_s20 = scalar_lea.hbm %s2603_s0, %s1797_s7 }
  0x3e   : > { %s170_s8 = scalar_lea.vmem [#allocation7], %s1615_s10  ;;  %p2342_p7 = pnand %p1834_p8, %p36_p13 }
  0x3f   : > { %s178_s9 = sshll.u32 %s170_s8, 4  ;;  %s2348_s24 = scalar_lea.sflag [#allocation8], %s166_s6  ;;  %s2346_s9 = int_to_ptr.vmem [resolvable:$true] %s178_s9 }
  0x40   : > { %s2069_s25 = scalar_lea.hbm %s2340_s20, 1024  ;;  %p2071_p6 = pneg %p2342_p7 }
  0x41   : > { %p2070_p2 = scmp.ne.s32.totalorder %s2340_s20, %s2069_s25  ;;  %s2074_s7 = scalar_lea.hbm %s2603_s0, 9216 }
  0x42   : > { %p2075_p0 = scmp.lt.s32.totalorder %s2340_s20, %s2603_s0  ;;  %p2076_p11 = scmp.lt.s32.totalorder %s2074_s7, %s2069_s25 }
  0x43   : > { %p2072_p9 = pnand %p2071_p6, %p2070_p2 }
  0x44   : > { %p2077_p1 = por %p2076_p11, %p2075_p0 }
  0x45   : > { %p2073_p10 = pneg %p2072_p9 }
  0x47   : > { %p2078_p3 = pnand %p2077_p1, %p2073_p10 }
  0x49   : > { %2081 = shalt.err (!%p2078_p3)
}
  0x4a   : > { %s2082_s6 = scalar_lea.vmem %s2346_s9, 1024  ;;  %s2195_s15 = smov [#allocation7]  }
  0x4b   : > { %p2083_p12 = scmp.ne.s32.totalorder %s2346_s9, %s2082_s6  ;;  %s2087_s8 = sshll.u32 %s2195_s15, 4  ;;  %s2088_s8 = int_to_ptr.vmem [resolvable:$false] %s2087_s8 }
  0x4c   : > { %s2089_s26 = scalar_lea.vmem %s2088_s8, 2048  ;;  %p2090_p2 = scmp.lt.s32.totalorder %s2346_s9, %s2088_s8 }
  0x4d   : > { %p2085_p13 = pnand %p2083_p12, %p2071_p6  ;;  %p2091_p9 = scmp.lt.s32.totalorder %s2089_s26, %s2082_s6 }
  0x4f   : > { %p2086_p8 = pneg %p2085_p13  ;;  %p2092_p4 = por %p2091_p9, %p2090_p2 }
  0x51   : > { %p2093_p5 = pnand %p2092_p4, %p2086_p8 }
  0x53   : > { %2096 = shalt.err (!%p2093_p5)
}
  0x54   : > { %s2196_s25 = smov 256   ;;  %s2197_s4 = smov 16  }
  0x55   : > { %1827 = dma.hbm_to_vmem [thread:$0]  (!%p2342_p7), %s2340_s20, 1024, %s2346_s9, %s2348_s24, %s2196_s25, %s2196_s25, %s2197_s4  }
  0x56   : > { %p2617_p6 = scmp.ne.s32.totalorder %s2614_s30, 0 }
  0x57   : > { %s192_s7 = sand.u32 (!%p2617_p6), 1, %s2181_s16   ;;  %p2618_p4 = scmp.ne.s32.totalorder (!%p2617_p6), %s2611_s23, 0 }
  0x58   : > { %190 = sbr.rel (%p2617_p6) target bundleno = 1119 (0x45f), region = 32  ;;  %s1620_s10 = sshll.u32 (!%p2617_p6), %s192_s7, 6 }
  0x59   : > { %s193_s11 = scalar_lea.sflag (!%p2617_p6), [#allocation8], %s192_s7  ;;  %s2372_s6 = scalar_lea.vmem (!%p2617_p6), [#allocation7], %s1620_s10 }
  0x5d   : > { %2152 = dma.done.wait (%p2618_p4), %s193_s11, 1024  }
  0x5e   : > { %2154 = vsyncadd (%p2618_p4), %s193_s11, 4294966272  ;;  %p2619_p5 = scmp.eq.s32.totalorder %s2259_s19, 0 }
  0x60   : > { %2156 = dma.done.wait (%p2619_p5), [#allocation11], 4224   ;;  %p2620_p7 = pmov %p2619_p5 }
  0x61   : > { %s224_s30 = sand.u32 1, %s2169_s13   ;;  %p2621_p10 = scmp.ne.s32.totalorder %s2259_s19, 0 }
  0x62   : > { %2158 = vsyncadd (%p2620_p7), [#allocation11], 4294963072  ;;  %s1623_s20 = sshll.u32 %s224_s30, 4 }
  0x63   : > { %s2385_s9 = scalar_lea.vmem [#allocation13], %s1623_s20  ;;  %237 = sbr.rel (%p2621_p10) target bundleno = 116 (0x74), region = 48 }
  0x68   : > { %v247_v0 = vlaneseq  ;;  %v2198_v1 = vmov 0.0   ;;  %v2199_v2 = vmov 0   ;;  %v245_v3 = vld [vmem:[#allocation12] ss:$4 sm:$0x3] }
  0x69   : > { %238 = vst [vmem:[#allocation2] sm:$0xff] %v2198_v1  ;;  %239 = vst [vmem:[#allocation2 + $0x8] sm:$0xff] %v2198_v1  ;;  %v260_v5 = vld [vmem:[#allocation12 + $0x1] ss:$4 sm:$0x3] }
  0x6a   : > { %240 = vst [vmem:[#allocation3 + $0x8] sm:$0xff] %v2198_v1  ;;  %241 = vst [vmem:[#allocation3] sm:$0xff] %v2198_v1  ;;  %v248_v4 = vshrl.u32 %v247_v0, 7  ;;  %v276_v6 = vld [vmem:[#allocation12 + $0x2] ss:$4 sm:$0x3] }
  0x6b   : > { %243 = vst [vmem:[#allocation5 + $0x8] sm:$0xff] %v2198_v1  ;;  %244 = vst [vmem:[#allocation5] sm:$0xff] %v2198_v1  ;;  %v292_v9 = vld [vmem:[#allocation12 + $0x3] ss:$4 sm:$0x3] }
  0x6c   : > { %242 = vst [vmem:[#allocation4] sm:$0xff] %v2199_v2  ;;  %v249_v7 = vsub.s32 0, %v248_v4  ;;  %v253_v8 = vsub.s32 1, %v248_v4 }
  0x6e   : > { %v250_v10 = vrot.slane %v245_v3, %v249_v7  ;;  %v254_v11 = vrot.slane %v245_v3, %v253_v8  ;;  %v265_v12 = vrot.slane %v260_v5, %v249_v7  ;;  %v269_v13 = vrot.slane %v260_v5, %v253_v8 }
  0x6f   : > { %v281_v14 = vrot.slane %v276_v6, %v249_v7  ;;  %v285_v15 = vrot.slane %v276_v6, %v253_v8  ;;  %v297_v16 = vrot.slane %v292_v9, %v249_v7  ;;  %v301_v17 = vrot.slane %v292_v9, %v253_v8 }
  0x70   : > { %257 = vst [vmem:[#allocation6] sm:$0xff] %v250_v10  ;;  %258 = vst [vmem:[#allocation6 + $0x38] sm:$0xff] %v254_v11 }
  0x71   : > { %273 = vst [vmem:[#allocation6 + $0x8] sm:$0xff] %v265_v12  ;;  %274 = vst [vmem:[#allocation6 + $0x18] sm:$0xff] %v269_v13 }
  0x72   : > { %289 = vst [vmem:[#allocation6 + $0x20] sm:$0xff] %v281_v14  ;;  %290 = vst [vmem:[#allocation6 + $0x10] sm:$0xff] %v285_v15 }
  0x73   : > { %305 = vst [vmem:[#allocation6 + $0x30] sm:$0xff] %v297_v16  ;;  %306 = vst [vmem:[#allocation6 + $0x28] sm:$0xff] %v301_v17 }
  0x74 PF: > { %v1905_v18 = vld [vmem:[#allocation10 + $0x74] ss:$8 sps:$4 sm:$0xff]   ;;  %v1907_v19 = vld [vmem:[#allocation10 + $0x70] ss:$8 sps:$4 sm:$0xff]   ;;  %v1908_v20 = vld [vmem:[#allocation10 + $0x64] ss:$8 sps:$4 sm:$0xff]  }
  0x75   : > { %518 = vmatprep.subr.bf16.mxu0 %v1905_v18  ;;  %v1910_v21 = vld [vmem:[#allocation10 + $0x60] ss:$8 sps:$4 sm:$0xff]   ;;  %v1911_v22 = vld [vmem:[#allocation10 + $0x54] ss:$8 sps:$4 sm:$0xff]   ;;  %v1913_v23 = vld [vmem:[#allocation10 + $0x50] ss:$8 sps:$4 sm:$0xff]  }
  0x76   : > { %519 = vmatpush1.bf16.msra.mxu0 %v1907_v19  ;;  %v1914_v24 = vld [vmem:[#allocation10 + $0x44] ss:$8 sps:$4 sm:$0xff]   ;;  %v1916_v25 = vld [vmem:[#allocation10 + $0x40] ss:$8 sps:$4 sm:$0xff]   ;;  %v1917_v26 = vld [vmem:[#allocation10 + $0x34] ss:$8 sps:$4 sm:$0xff]  }
  0x77   : > { %520 = vmatprep.subr.bf16.mxu0 %v1908_v20  ;;  %v1919_v27 = vld [vmem:[#allocation10 + $0x30] ss:$8 sps:$4 sm:$0xff]   ;;  %v1920_v28 = vld [vmem:[#allocation10 + $0x24] ss:$8 sps:$4 sm:$0xff]   ;;  %v1922_v29 = vld [vmem:[#allocation10 + $0x20] ss:$8 sps:$4 sm:$0xff]  }
  0x78   : > { %v1923_v30 = vld [vmem:[#allocation10 + $0x14] ss:$8 sps:$4 sm:$0xff]   ;;  %v318_v31 = vld [vmem:[#allocation4] sm:$0xff]  ;;  %v1925_v33 = vld [vmem:[#allocation10 + $0x10] ss:$8 sps:$4 sm:$0xff]   ;;  %p1662_p0 = scmp.lt.s32.totalorder %s2259_s19, 4 }
  0x79   : > { %v1626_v32 = vcombine.high %v318_v31, %v318_v31  ;;  %v1926_v34 = vld [vmem:[#allocation10 + $0x4] ss:$8 sps:$4 sm:$0xff]   ;;  %v1928_v35 = vld [vmem:[#allocation10] ss:$8 sps:$4 sm:$0xff]   ;;  %v1929_v36 = vld [vmem:[#allocation10 + $0xf4] ss:$8 sps:$4 sm:$0xff]   ;;  %v1625_v52 = vcombine.low %v318_v31, %v318_v31 }
  0x7a   : > { %521 = vmatpush1.bf16.msra.mxu0 %v1910_v21  ;;  %v1931_v37 = vld [vmem:[#allocation10 + $0xf0] ss:$8 sps:$4 sm:$0xff]   ;;  %v1932_v38 = vld [vmem:[#allocation10 + $0xe4] ss:$8 sps:$4 sm:$0xff]   ;;  %v1934_v39 = vld [vmem:[#allocation10 + $0xe0] ss:$8 sps:$4 sm:$0xff]  }
  0x7b   : > { %522 = vmatprep.subr.bf16.mxu0 %v1911_v22  ;;  %550 = vmatprep.mubr.bf16.mxu0 %v1626_v32  ;;  %v1935_v40 = vld [vmem:[#allocation10 + $0xd4] ss:$8 sps:$4 sm:$0xff]   ;;  %v1937_v41 = vld [vmem:[#allocation10 + $0xd0] ss:$8 sps:$4 sm:$0xff]   ;;  %v1938_v42 = vld [vmem:[#allocation10 + $0xc4] ss:$8 sps:$4 sm:$0xff]  }
  0x7c   : > { %v1940_v43 = vld [vmem:[#allocation10 + $0xc0] ss:$8 sps:$4 sm:$0xff]   ;;  %v1941_v44 = vld [vmem:[#allocation10 + $0xb4] ss:$8 sps:$4 sm:$0xff]   ;;  %v1943_v45 = vld [vmem:[#allocation10 + $0xb0] ss:$8 sps:$4 sm:$0xff]  }
  0x7d   : > { %v1944_v46 = vld [vmem:[#allocation10 + $0xa4] ss:$8 sps:$4 sm:$0xff]   ;;  %v1946_v47 = vld [vmem:[#allocation10 + $0xa0] ss:$8 sps:$4 sm:$0xff]   ;;  %v1947_v48 = vld [vmem:[#allocation10 + $0x94] ss:$8 sps:$4 sm:$0xff]  }
  0x7e   : > { %523 = vmatpush1.bf16.msra.mxu0 %v1913_v23  ;;  %v1949_v49 = vld [vmem:[#allocation10 + $0x90] ss:$8 sps:$4 sm:$0xff]   ;;  %v1950_v50 = vld [vmem:[#allocation10 + $0x84] ss:$8 sps:$4 sm:$0xff]   ;;  %v1952_v51 = vld [vmem:[#allocation10 + $0x80] ss:$8 sps:$4 sm:$0xff]  }
  0x7f   : > { %524 = vmatprep.subr.bf16.mxu0 %v1914_v24  ;;  %v2389_v53 = vld [vmem:[#allocation6 + $0x20] sm:$0xff]  ;;  %v2391_v55 = vld [vmem:[#allocation6 + $0x30] sm:$0xff]  ;;  %v560_v57 = vld [vmem:[#allocation3] sm:$0xff]  ;;  %v2200_v23 = vmov 0.0  }
  0x80   : > { %v559_v54 = vld [vmem:[#allocation3 + $0x8] sm:$0xff]  ;;  %v2393_v56 = vld [vmem:[#allocation6 + $0x10] sm:$0xff]  ;;  %v2396_v60 = vld [vmem:[#allocation6 + $0x28] sm:$0xff] }
  0x81   : > { %v561_v58 = vmul.f32 %v559_v54, %v2389_v53  ;;  %v562_v62 = vmul.f32 %v560_v57, %v2393_v56  ;;  %v2400_v63 = vld [vmem:[#allocation6] sm:$0xff]  ;;  %v573_v1 = vld [vmem:[#allocation2] sm:$0xff]  ;;  %v2406_v6 = vld [vmem:[#allocation6 + $0x38] sm:$0xff] }
  0x82   : > { %525 = vmatpush1.bf16.msra.mxu0 %v1916_v25  ;;  %v569_v0 = vld [vmem:[%s2372_s6] sm:$0xff]  ;;  %v2403_v3 = vld [vmem:[#allocation6 + $0x8] sm:$0xff]  ;;  %v574_v8 = vld [vmem:[#allocation2 + $0x8] sm:$0xff]  ;;  %v575_v11 = vmul.f32 %v573_v1, %v2400_v63 }
  0x83   : > { %526 = vmatprep.subr.bf16.mxu0 %v1917_v26  ;;  %v570_v7 = vld [vmem:[%s2372_s6 + $0x8] sm:$0xff]  ;;  %v2410_v13 = vld [vmem:[#allocation6 + $0x18] sm:$0xff]  ;;  %v576_v17 = vmul.f32 %v574_v8, %v2406_v6  ;;  %v601_v25 = vld [vmem:[#allocation5] sm:$0xff] }
  0x84   : > { %v600_v20 = vld [vmem:[#allocation5 + $0x8] sm:$0xff] }
  0x86   : > { %527 = vmatpush1.bf16.msra.mxu0 %v1919_v27 }
  0x87   : > { %528 = vmatprep.subr.bf16.mxu0 %v1920_v28 }
  0x8a   : > { %529 = vmatpush1.bf16.msra.mxu0 %v1922_v29 }
  0x8b   : > { %530 = vmatprep.subr.bf16.mxu0 %v1923_v30 }
  0x8e   : > { %531 = vmatpush1.bf16.msra.mxu0 %v1925_v33 }
  0x8f   : > { %532 = vmatprep.subr.bf16.mxu0 %v1926_v34 }
  0x92   : > { %533 = vmatpush1.bf16.msra.mxu0 %v1928_v35 }
  0x93   : > { %534 = vmatprep.subr.bf16.mxu0 %v1929_v36 }
  0x96   : > { %535 = vmatpush2.bf16.msra.mxu0 %v1931_v37 }
  0x97   : > { %536 = vmatprep.subr.bf16.mxu0 %v1932_v38 }
  0x9a   : > { %537 = vmatpush2.bf16.msra.mxu0 %v1934_v39 }
  0x9b   : > { %538 = vmatprep.subr.bf16.mxu0 %v1935_v40 }
  0x9e   : > { %539 = vmatpush2.bf16.msra.mxu0 %v1937_v41 }
  0x9f   : > { %540 = vmatprep.subr.bf16.mxu0 %v1938_v42 }
  0xa2   : > { %541 = vmatpush2.bf16.msra.mxu0 %v1940_v43 }
  0xa3   : > { %542 = vmatprep.subr.bf16.mxu0 %v1941_v44 }
  0xa6   : > { %543 = vmatpush2.bf16.msra.mxu0 %v1943_v45 }
  0xa7   : > { %544 = vmatprep.subr.bf16.mxu0 %v1944_v46 }
  0xaa   : > { %545 = vmatpush2.bf16.msra.mxu0 %v1946_v47 }
  0xab   : > { %546 = vmatprep.subr.bf16.mxu0 %v1947_v48 }
  0xae   : > { %547 = vmatpush2.bf16.msra.mxu0 %v1949_v49 }
  0xaf   : > { %548 = vmatprep.subr.bf16.mxu0 %v1950_v50 }
  0xb2   : > { %549 = vmatpush2.bf16.msra.mxu0 %v1952_v51 }
  0xb5   : > { %551 = vmatmul.mubr.bf16.vlgmr.msra.gmra.mxu0 %v1625_v52 }
 0x175   : > { %v552_v59 = vpop.f32.mrf.mxu0 }
 0x176   : > { %v563_v61 = vmul.f32 %v552_v59, %v2391_v55 }
 0x177   : > { %v554_v2 = vpop.f32.mrf.mxu0 }
 0x178   : > { %v565_v4 = vadd.f32 %v563_v61, %v561_v58  ;;  %v564_v5 = vmul.f32 %v554_v2, %v2396_v60 }
 0x179   : > { %v556_v9 = vpop.f32.mrf.mxu0 }
 0x17a   : > { %567 = vst [vmem:[#allocation3 + $0x8] sm:$0xff] %v565_v4  ;;  %v571_v10 = vadd.f32 %v569_v0, %v565_v4  ;;  %v566_v12 = vadd.f32 %v564_v5, %v562_v62 }
 0x17b   : > { %v557_v14 = vpop.f32.mrf.mxu0 }
 0x17c   : > { %v577_v15 = vmul.f32 %v571_v10, %v2403_v3  ;;  %568 = vst [vmem:[#allocation3] sm:$0xff] %v566_v12  ;;  %v572_v16 = vadd.f32 %v570_v7, %v566_v12 }
 0x17e   : > { %v579_v18 = vadd.f32 %v577_v15, %v575_v11  ;;  %v578_v19 = vmul.f32 %v572_v16, %v2410_v13 }
 0x180   : > { %vm581_vm0 = vcmp.ge.f32.partialorder %v579_v18, 1.0  ;;  %v580_v21 = vadd.f32 %v578_v19, %v576_v17 }
 0x181   : > { %v583_v22 = vsel %vm581_vm0, 0.0, %v579_v18  ;;  %v1659_v24 = vsel %vm581_vm0, 1.0, %v2200_v23 }
 0x182   : > { %585 = vst [vmem:[#allocation2] sm:$0xff] %v583_v22  ;;  %v602_v26 = vadd.f32 %v1659_v24, %v600_v20  ;;  %vm582_vm1 = vcmp.ge.f32.partialorder %v580_v21, 1.0  ;;  %609 = sbr.rel (%p1662_p0) target bundleno = 399 (0x18f), region = 52 }
 0x183   : > { %v584_v27 = vsel %vm582_vm1, 0.0, %v580_v21  ;;  %v1660_v28 = vsel %vm582_vm1, 1.0, %v2200_v23 }
 0x184   : > { %604 = vst [vmem:[#allocation5 + $0x8] sm:$0xff] %v602_v26  ;;  %586 = vst [vmem:[#allocation2 + $0x8] sm:$0xff] %v584_v27  ;;  %v1798_v29 = vpack.c.bf16 %v1660_v28, %v1659_v24  ;;  %v603_v30 = vadd.f32 %v1660_v28, %v601_v25 }
 0x186   : > { %599 = vst [vmem:[#allocation4] sm:$0xff] %v1798_v29  ;;  %605 = vst [vmem:[#allocation5] sm:$0xff] %v603_v30 }
 0x187   : > { %v2201_v33 = vmov 0.0  }
 0x18b   : > { %v610_v31 = vld [vmem:[#allocation5 + $0x8] sm:$0xff] }
 0x18c   : > { %612 = vst [vmem:[%s2385_s9] sm:$0xff] %v610_v31  ;;  %614 = vst [vmem:[#allocation5 + $0x8] sm:$0xff] %v2201_v33 }
 0x18d   : > { %v611_v32 = vld [vmem:[#allocation5] sm:$0xff] }
 0x18e   : > { %613 = vst [vmem:[%s2385_s9 + $0x8] sm:$0xff] %v611_v32  ;;  %615 = vst [vmem:[#allocation5] sm:$0xff] %v2201_v33 }
 0x18f PF: > { %v2420_v34 = vld [vmem:[#allocation10 + $0x74] ss:$8 sps:$4 sm:$0xff]   ;;  %v2422_v35 = vld [vmem:[#allocation10 + $0x70] ss:$8 sps:$4 sm:$0xff]   ;;  %v2425_v36 = vld [vmem:[#allocation10 + $0x64] ss:$8 sps:$4 sm:$0xff]  }
 0x190   : > { %816 = vmatprep.subr.bf16.mxu1 %v2420_v34  ;;  %1105 = vmatprep.subr.bf16.mxu0 %v2420_v34  ;;  %v2429_v37 = vld [vmem:[#allocation10 + $0x60] ss:$8 sps:$4 sm:$0xff]   ;;  %v2433_v38 = vld [vmem:[#allocation10 + $0x54] ss:$8 sps:$4 sm:$0xff]   ;;  %v2437_v39 = vld [vmem:[#allocation10 + $0x50] ss:$8 sps:$4 sm:$0xff]  }
 0x191   : > { %817 = vmatpush1.bf16.msra.mxu1 %v2422_v35  ;;  %1106 = vmatpush1.bf16.msra.mxu0 %v2422_v35  ;;  %v2441_v40 = vld [vmem:[#allocation10 + $0x44] ss:$8 sps:$4 sm:$0xff]   ;;  %v2445_v41 = vld [vmem:[#allocation10 + $0x40] ss:$8 sps:$4 sm:$0xff]   ;;  %v2449_v42 = vld [vmem:[#allocation10 + $0x34] ss:$8 sps:$4 sm:$0xff]  }
 0x192   : > { %818 = vmatprep.subr.bf16.mxu1 %v2425_v36  ;;  %1107 = vmatprep.subr.bf16.mxu0 %v2425_v36  ;;  %v2453_v43 = vld [vmem:[#allocation10 + $0x30] ss:$8 sps:$4 sm:$0xff]   ;;  %v2457_v44 = vld [vmem:[#allocation10 + $0x24] ss:$8 sps:$4 sm:$0xff]   ;;  %v2461_v45 = vld [vmem:[#allocation10 + $0x20] ss:$8 sps:$4 sm:$0xff]  }
 0x193   : > { %v2465_v46 = vld [vmem:[#allocation10 + $0x14] ss:$8 sps:$4 sm:$0xff]   ;;  %v2473_v49 = vld [vmem:[#allocation10 + $0x10] ss:$8 sps:$4 sm:$0xff]   ;;  %v2477_v50 = vld [vmem:[#allocation10 + $0x4] ss:$8 sps:$4 sm:$0xff]  }
 0x194   : > { %v2481_v51 = vld [vmem:[#allocation10] ss:$8 sps:$4 sm:$0xff]   ;;  %v2485_v52 = vld [vmem:[#allocation10 + $0xf4] ss:$8 sps:$4 sm:$0xff]   ;;  %v2489_v54 = vld [vmem:[#allocation10 + $0xf0] ss:$8 sps:$4 sm:$0xff]  }
 0x195   : > { %819 = vmatpush1.bf16.msra.mxu1 %v2429_v37  ;;  %1108 = vmatpush1.bf16.msra.mxu0 %v2429_v37  ;;  %v2468_v47 = vld [vmem:[#allocation4] sm:$0xff]  ;;  %v1985_v59 = vld [vmem:[#allocation10 + $0xd4] ss:$8 sps:$4 sm:$0xff]   ;;  %v1987_v61 = vld [vmem:[#allocation10 + $0xd0] ss:$8 sps:$4 sm:$0xff]   ;;  %p1780_p11 = scmp.ne.s32.totalorder %s2259_s19, 2 }
 0x196   : > { %820 = vmatprep.subr.bf16.mxu1 %v2433_v38  ;;  %1109 = vmatprep.subr.bf16.mxu0 %v2433_v38  ;;  %v1664_v48 = vcombine.high %v2468_v47, %v2468_v47  ;;  %v2493_v57 = vld [vmem:[#allocation10 + $0xe4] ss:$8 sps:$4 sm:$0xff]   ;;  %v1984_v58 = vld [vmem:[#allocation10 + $0xe0] ss:$8 sps:$4 sm:$0xff]   ;;  %v1991_v1 = vld [vmem:[#allocation10 + $0xb4] ss:$8 sps:$4 sm:$0xff]   ;;  %v1663_v11 = vcombine.low %v2468_v47, %v2468_v47 }
 0x197   : > { %v1988_v62 = vld [vmem:[#allocation10 + $0xc4] ss:$8 sps:$4 sm:$0xff]   ;;  %v1990_v0 = vld [vmem:[#allocation10 + $0xc0] ss:$8 sps:$4 sm:$0xff]   ;;  %v1993_v2 = vld [vmem:[#allocation10 + $0xb0] ss:$8 sps:$4 sm:$0xff]  }
 0x198   : > { %848 = vmatprep.mubr.bf16.mxu1 %v1664_v48  ;;  %v1994_v4 = vld [vmem:[#allocation10 + $0xa4] ss:$8 sps:$4 sm:$0xff]   ;;  %v1996_v5 = vld [vmem:[#allocation10 + $0xa0] ss:$8 sps:$4 sm:$0xff]   ;;  %v1997_v7 = vld [vmem:[#allocation10 + $0x94] ss:$8 sps:$4 sm:$0xff]  }
 0x199   : > { %821 = vmatpush1.bf16.msra.mxu1 %v2437_v39  ;;  %1110 = vmatpush1.bf16.msra.mxu0 %v2437_v39  ;;  %v1999_v8 = vld [vmem:[#allocation10 + $0x90] ss:$8 sps:$4 sm:$0xff]   ;;  %v2000_v9 = vld [vmem:[#allocation10 + $0x84] ss:$8 sps:$4 sm:$0xff]   ;;  %v2002_v10 = vld [vmem:[#allocation10 + $0x80] ss:$8 sps:$4 sm:$0xff]  }
 0x19a   : > { %822 = vmatprep.subr.bf16.mxu1 %v2441_v40  ;;  %1111 = vmatprep.subr.bf16.mxu0 %v2441_v40  ;;  %v857_v12 = vld [vmem:[#allocation3 + $0x8] sm:$0xff]  ;;  %v858_v14 = vld [vmem:[#allocation3] sm:$0xff]  ;;  %v1697_v19 = vld [vmem:[%s2372_s6 + $0x10] sm:$0xff] }
 0x19b   : > { %v859_v15 = vmul.f32 %v857_v12, %v2389_v53  ;;  %v860_v18 = vmul.f32 %v858_v14, %v2393_v56  ;;  %v872_v20 = vld [vmem:[#allocation2] sm:$0xff]  ;;  %v1698_v25 = vld [vmem:[%s2372_s6 + $0x18] sm:$0xff]  ;;  %v873_v26 = vld [vmem:[#allocation2 + $0x8] sm:$0xff] }
 0x19c   : > { %v874_v29 = vmul.f32 %v872_v20, %v2400_v63  ;;  %v1775_v20 = vld [vmem:[%s2372_s6 + $0x30] sm:$0xff] }
 0x19d   : > { %823 = vmatpush1.bf16.msra.mxu1 %v2445_v41  ;;  %1112 = vmatpush1.bf16.msra.mxu0 %v2445_v41 }
 0x19e   : > { %824 = vmatprep.subr.bf16.mxu1 %v2449_v42  ;;  %1113 = vmatprep.subr.bf16.mxu0 %v2449_v42 }
 0x1a1   : > { %825 = vmatpush1.bf16.msra.mxu1 %v2453_v43  ;;  %1114 = vmatpush1.bf16.msra.mxu0 %v2453_v43 }
 0x1a2   : > { %826 = vmatprep.subr.bf16.mxu1 %v2457_v44  ;;  %1115 = vmatprep.subr.bf16.mxu0 %v2457_v44 }
 0x1a5   : > { %827 = vmatpush1.bf16.msra.mxu1 %v2461_v45  ;;  %1116 = vmatpush1.bf16.msra.mxu0 %v2461_v45 }
 0x1a6   : > { %828 = vmatprep.subr.bf16.mxu1 %v2465_v46  ;;  %1117 = vmatprep.subr.bf16.mxu0 %v2465_v46 }
 0x1a9   : > { %829 = vmatpush1.bf16.msra.mxu1 %v2473_v49  ;;  %1118 = vmatpush1.bf16.msra.mxu0 %v2473_v49 }
 0x1aa   : > { %830 = vmatprep.subr.bf16.mxu1 %v2477_v50  ;;  %1119 = vmatprep.subr.bf16.mxu0 %v2477_v50 }
 0x1ad   : > { %831 = vmatpush1.bf16.msra.mxu1 %v2481_v51  ;;  %1120 = vmatpush1.bf16.msra.mxu0 %v2481_v51 }
 0x1ae   : > { %832 = vmatprep.subr.bf16.mxu1 %v2485_v52  ;;  %1121 = vmatprep.subr.bf16.mxu0 %v2485_v52 }
 0x1b1   : > { %833 = vmatpush2.bf16.msra.mxu1 %v2489_v54  ;;  %1122 = vmatpush2.bf16.msra.mxu0 %v2489_v54 }
 0x1b2   : > { %834 = vmatprep.subr.bf16.mxu1 %v2493_v57  ;;  %1123 = vmatprep.subr.bf16.mxu0 %v2493_v57 }
 0x1b5   : > { %835 = vmatpush2.bf16.msra.mxu1 %v1984_v58  ;;  %1124 = vmatpush2.bf16.msra.mxu0 %v1984_v58 }
 0x1b6   : > { %836 = vmatprep.subr.bf16.mxu1 %v1985_v59  ;;  %1125 = vmatprep.subr.bf16.mxu0 %v1985_v59 }
 0x1b9   : > { %837 = vmatpush2.bf16.msra.mxu1 %v1987_v61  ;;  %1126 = vmatpush2.bf16.msra.mxu0 %v1987_v61 }
 0x1ba   : > { %838 = vmatprep.subr.bf16.mxu1 %v1988_v62  ;;  %1127 = vmatprep.subr.bf16.mxu0 %v1988_v62 }
 0x1bd   : > { %839 = vmatpush2.bf16.msra.mxu1 %v1990_v0  ;;  %1128 = vmatpush2.bf16.msra.mxu0 %v1990_v0 }
 0x1be   : > { %840 = vmatprep.subr.bf16.mxu1 %v1991_v1  ;;  %1129 = vmatprep.subr.bf16.mxu0 %v1991_v1 }
 0x1c1   : > { %841 = vmatpush2.bf16.msra.mxu1 %v1993_v2  ;;  %1130 = vmatpush2.bf16.msra.mxu0 %v1993_v2 }
 0x1c2   : > { %842 = vmatprep.subr.bf16.mxu1 %v1994_v4  ;;  %1131 = vmatprep.subr.bf16.mxu0 %v1994_v4 }
 0x1c5   : > { %843 = vmatpush2.bf16.msra.mxu1 %v1996_v5  ;;  %1132 = vmatpush2.bf16.msra.mxu0 %v1996_v5 }
 0x1c6   : > { %844 = vmatprep.subr.bf16.mxu1 %v1997_v7  ;;  %1133 = vmatprep.subr.bf16.mxu0 %v1997_v7 }
 0x1c9   : > { %845 = vmatpush2.bf16.msra.mxu1 %v1999_v8  ;;  %1134 = vmatpush2.bf16.msra.mxu0 %v1999_v8 }
 0x1ca   : > { %846 = vmatprep.subr.bf16.mxu1 %v2000_v9  ;;  %1135 = vmatprep.subr.bf16.mxu0 %v2000_v9 }
 0x1cd   : > { %847 = vmatpush2.bf16.msra.mxu1 %v2002_v10  ;;  %1136 = vmatpush2.bf16.msra.mxu0 %v2002_v10 }
 0x1ce   : > { %1394 = vmatprep.subr.bf16.mxu1 %v2420_v34  ;;  %v875_v34 = vmul.f32 %v873_v26, %v2406_v6  ;;  %v1776_v26 = vld [vmem:[%s2372_s6 + $0x38] sm:$0xff] }
 0x1d0   : > { %849 = vmatmul.mubr.bf16.vlgmr.msra.gmra.mxu1 %v1663_v11 }
 0x1d1   : > { %1395 = vmatpush1.bf16.msra.mxu1 %v2422_v35 }
 0x1d2   : > { %1396 = vmatprep.subr.bf16.mxu1 %v2425_v36 }
 0x1d5   : > { %1397 = vmatpush1.bf16.msra.mxu1 %v2429_v37 }
 0x1d6   : > { %1398 = vmatprep.subr.bf16.mxu1 %v2433_v38 }
 0x1d9   : > { %1399 = vmatpush1.bf16.msra.mxu1 %v2437_v39 }
 0x1da   : > { %1400 = vmatprep.subr.bf16.mxu1 %v2441_v40 }
 0x1dd   : > { %1401 = vmatpush1.bf16.msra.mxu1 %v2445_v41 }
 0x1de   : > { %1402 = vmatprep.subr.bf16.mxu1 %v2449_v42  ;;  %v2202_v42 = vmov 1.0|1.0  }
 0x1e1   : > { %1403 = vmatpush1.bf16.msra.mxu1 %v2453_v43 }
 0x1e2   : > { %1404 = vmatprep.subr.bf16.mxu1 %v2457_v44 }
 0x1e5   : > { %1405 = vmatpush1.bf16.msra.mxu1 %v2461_v45 }
 0x1e6   : > { %1406 = vmatprep.subr.bf16.mxu1 %v2465_v46  ;;  %v1736_v46 = vld [vmem:[%s2372_s6 + $0x20] sm:$0xff] }
 0x1e9   : > { %1407 = vmatpush1.bf16.msra.mxu1 %v2473_v49 }
 0x1ea   : > { %1408 = vmatprep.subr.bf16.mxu1 %v2477_v50 }
 0x1ed   : > { %1409 = vmatpush1.bf16.msra.mxu1 %v2481_v51  ;;  %v1737_v51 = vld [vmem:[%s2372_s6 + $0x28] sm:$0xff] }
 0x1ee   : > { %1410 = vmatprep.subr.bf16.mxu1 %v2485_v52 }
 0x1f1   : > { %1411 = vmatpush2.bf16.msra.mxu1 %v2489_v54 }
 0x1f2   : > { %1412 = vmatprep.subr.bf16.mxu1 %v2493_v57 }
 0x1f5   : > { %1413 = vmatpush2.bf16.msra.mxu1 %v1984_v58 }
 0x1f6   : > { %1414 = vmatprep.subr.bf16.mxu1 %v1985_v59 }
 0x1f9   : > { %1415 = vmatpush2.bf16.msra.mxu1 %v1987_v61 }
 0x1fa   : > { %1416 = vmatprep.subr.bf16.mxu1 %v1988_v62 }
 0x1fd   : > { %1417 = vmatpush2.bf16.msra.mxu1 %v1990_v0  ;;  %v899_v0 = vld [vmem:[#allocation5 + $0x8] sm:$0xff] }
 0x1fe   : > { %1418 = vmatprep.subr.bf16.mxu1 %v1991_v1 }
 0x201   : > { %1419 = vmatpush2.bf16.msra.mxu1 %v1993_v2 }
 0x202   : > { %1420 = vmatprep.subr.bf16.mxu1 %v1994_v4 }
 0x205   : > { %1421 = vmatpush2.bf16.msra.mxu1 %v1996_v5  ;;  %v900_v5 = vld [vmem:[#allocation5] sm:$0xff] }
 0x206   : > { %1422 = vmatprep.subr.bf16.mxu1 %v1997_v7 }
 0x209   : > { %1423 = vmatpush2.bf16.msra.mxu1 %v1999_v8 }
 0x20a   : > { %1424 = vmatprep.subr.bf16.mxu1 %v2000_v9 }
 0x20d   : > { %1425 = vmatpush2.bf16.msra.mxu1 %v2002_v10 }
 0x290   : > { %v850_v16 = vpop.f32.mrf.mxu1 }
 0x291   : > { %v861_v17 = vmul.f32 %v850_v16, %v2391_v55 }
 0x292   : > { %v852_v21 = vpop.f32.mrf.mxu1 }
 0x293   : > { %v863_v22 = vadd.f32 %v861_v17, %v859_v15  ;;  %v862_v24 = vmul.f32 %v852_v21, %v2396_v60 }
 0x294   : > { %v854_v27 = vpop.f32.mrf.mxu1 }
 0x295   : > { %v870_v28 = vadd.f32 %v1697_v19, %v863_v22  ;;  %v864_v30 = vadd.f32 %v862_v24, %v860_v18  ;;  %v1148_v44 = vmul.f32 %v863_v22, %v2389_v53 }
 0x296   : > { %v855_v31 = vpop.f32.mrf.mxu1 }
 0x297   : > { %v876_v32 = vmul.f32 %v870_v28, %v2403_v3  ;;  %v871_v33 = vadd.f32 %v1698_v25, %v864_v30  ;;  %v1149_v49 = vmul.f32 %v864_v30, %v2393_v56 }
 0x299   : > { %v878_v35 = vadd.f32 %v876_v32, %v874_v29  ;;  %v877_v36 = vmul.f32 %v871_v33, %v2410_v13 }
 0x29b   : > { %vm880_vm2 = vcmp.ge.f32.partialorder %v878_v35, 1.0  ;;  %v879_v37 = vadd.f32 %v877_v36, %v875_v34 }
 0x29c   : > { %v882_v38 = vsel %vm880_vm2, 0.0, %v878_v35  ;;  %v1699_v39 = vsel %vm880_vm2, 1.0, %v2200_v23  ;;  %vm2009_vm5 = vmpackc.low %vm880_vm2, %vm880_vm2 }
 0x29d   : > { %vm881_vm3 = vcmp.ge.f32.partialorder %v879_v37, 1.0  ;;  %v1163_v59 = vmul.f32 %v882_v38, %v2400_v63  ;;  %v901_v7 = vadd.f32 %v1699_v39, %v899_v0 }
 0x29e   : > { %v883_v40 = vsel %vm881_vm3, 0.0, %v879_v37  ;;  %v1700_v41 = vsel %vm881_vm3, 1.0, %v2200_v23  ;;  %vm2007_vm4 = vmpackc.low %vm881_vm3, %vm881_vm3 }
 0x29f   : > { %2008 = vmatprep.mubr.msk.bf16.mxu0 %vm2007_vm4, %v2202_v42  ;;  %v1164_v2 = vmul.f32 %v883_v40, %v2406_v6  ;;  %v902_v11 = vadd.f32 %v1700_v41, %v900_v5 }
 0x2a0   : > { %2010 = vmatmul.mubr.msk.bf16.vlgmr.msra.gmra.mxu0 %vm2009_vm5, %v2202_v42 }
 0x360   : > { %v1139_v43 = vpop.f32.mrf.mxu0 }
 0x361   : > { %v1150_v45 = vmul.f32 %v1139_v43, %v2391_v55 }
 0x362   : > { %v1141_v47 = vpop.f32.mrf.mxu0 }
 0x363   : > { %v1152_v48 = vadd.f32 %v1150_v45, %v1148_v44  ;;  %v1151_v50 = vmul.f32 %v1141_v47, %v2396_v60 }
 0x364   : > { %v1143_v52 = vpop.f32.mrf.mxu0 }
 0x365   : > { %v1159_v54 = vadd.f32 %v1736_v46, %v1152_v48  ;;  %v1153_v57 = vadd.f32 %v1151_v50, %v1149_v49  ;;  %v1437_v18 = vmul.f32 %v1152_v48, %v2389_v53 }
 0x366   : > { %v1144_v58 = vpop.f32.mrf.mxu0 }
 0x367   : > { %v1165_v61 = vmul.f32 %v1159_v54, %v2403_v3  ;;  %v1160_v62 = vadd.f32 %v1737_v51, %v1153_v57  ;;  %v1438_v24 = vmul.f32 %v1153_v57, %v2393_v56 }
 0x369   : > { %v1167_v1 = vadd.f32 %v1165_v61, %v1163_v59  ;;  %v1166_v4 = vmul.f32 %v1160_v62, %v2410_v13 }
 0x36b   : > { %vm1169_vm6 = vcmp.ge.f32.partialorder %v1167_v1, 1.0  ;;  %v1168_v8 = vadd.f32 %v1166_v4, %v1164_v2 }
 0x36c   : > { %v1171_v9 = vsel %vm1169_vm6, 0.0, %v1167_v1  ;;  %v1738_v10 = vsel %vm1169_vm6, 1.0, %v2200_v23  ;;  %vm2015_vm9 = vmpackc.low %vm1169_vm6, %vm1169_vm6 }
 0x36d   : > { %v1190_v12 = vadd.f32 %v1738_v10, %v901_v7  ;;  %vm1170_vm7 = vcmp.ge.f32.partialorder %v1168_v8, 1.0  ;;  %v1452_v31 = vmul.f32 %v1171_v9, %v2400_v63 }
 0x36e   : > { %v1172_v14 = vsel %vm1170_vm7, 0.0, %v1168_v8  ;;  %v1739_v15 = vsel %vm1170_vm7, 1.0, %v2200_v23  ;;  %vm2013_vm8 = vmpackc.low %vm1170_vm7, %vm1170_vm7 }
 0x36f   : > { %v1191_v16 = vadd.f32 %v1739_v15, %v902_v11  ;;  %2014 = vmatprep.mubr.msk.bf16.mxu1 %vm2013_vm8, %v2202_v42  ;;  %v1453_v33 = vmul.f32 %v1172_v14, %v2406_v6 }
 0x370   : > { %2016 = vmatmul.mubr.msk.bf16.vlgmr.msra.gmra.mxu1 %vm2015_vm9, %v2202_v42 }
 0x430   : > { %v1428_v17 = vpop.f32.mrf.mxu1 }
 0x431   : > { %v1439_v19 = vmul.f32 %v1428_v17, %v2391_v55 }
 0x432   : > { %v1430_v21 = vpop.f32.mrf.mxu1 }
 0x433   : > { %v1441_v22 = vadd.f32 %v1439_v19, %v1437_v18  ;;  %v1440_v25 = vmul.f32 %v1430_v21, %v2396_v60 }
 0x434   : > { %v1432_v27 = vpop.f32.mrf.mxu1 }
 0x435   : > { %1443 = vst [vmem:[#allocation3 + $0x8] sm:$0xff] %v1441_v22  ;;  %v1448_v28 = vadd.f32 %v1775_v20, %v1441_v22  ;;  %v1442_v29 = vadd.f32 %v1440_v25, %v1438_v24 }
 0x436   : > { %v1433_v30 = vpop.f32.mrf.mxu1 }
 0x437   : > { %v1454_v32 = vmul.f32 %v1448_v28, %v2403_v3  ;;  %1444 = vst [vmem:[#allocation3] sm:$0xff] %v1442_v29  ;;  %v1449_v53 = vadd.f32 %v1776_v26, %v1442_v29 }
 0x439   : > { %v1456_v55 = vadd.f32 %v1454_v32, %v1452_v31  ;;  %v1455_v34 = vmul.f32 %v1449_v53, %v2410_v13 }
 0x43b   : > { %vm1458_vm10 = vcmp.ge.f32.partialorder %v1456_v55, 1.0  ;;  %v1457_v56 = vadd.f32 %v1455_v34, %v1453_v33 }
 0x43c   : > { %v1460_v60 = vsel %vm1458_vm10, 0.0, %v1456_v55  ;;  %v1777_v35 = vsel %vm1458_vm10, 1.0, %v2200_v23 }
 0x43d   : > { %1462 = vst [vmem:[#allocation2] sm:$0xff] %v1460_v60  ;;  %v1479_v36 = vadd.f32 %v1777_v35, %v1190_v12  ;;  %vm1459_vm11 = vcmp.ge.f32.partialorder %v1457_v56, 1.0  ;;  %1486 = sbr.rel (%p1780_p11) target bundleno = 1092 (0x444), region = 56 }
 0x43e   : > { %v1461_v37 = vsel %vm1459_vm11, 0.0, %v1457_v56  ;;  %v1778_v63 = vsel %vm1459_vm11, 1.0, %v2200_v23 }
 0x43f   : > { %1481 = vst [vmem:[#allocation5 + $0x8] sm:$0xff] %v1479_v36  ;;  %1463 = vst [vmem:[#allocation2 + $0x8] sm:$0xff] %v1461_v37  ;;  %v1801_v3 = vpack.c.bf16 %v1778_v63, %v1777_v35  ;;  %v1480_v38 = vadd.f32 %v1778_v63, %v1191_v16 }
 0x441   : > { %1476 = vst [vmem:[#allocation4] sm:$0xff] %v1801_v3  ;;  %1482 = vst [vmem:[#allocation5] sm:$0xff] %v1480_v38 }
 0x442   : > { %v2203_v6 = vmov 0.0  }
 0x443   : > { %1487 = vst [vmem:[#allocation5 + $0x8] sm:$0xff] %v2203_v6  ;;  %1488 = vst [vmem:[#allocation5] sm:$0xff] %v2203_v6 }
 0x444 PF: > { %s1782_s23 = sadd.s32 4294967292, %s2259_s19  ;;  %s1509_s22 = sshll.u32 %s2385_s9, 4  ;;  %s1510_s22 = int_to_ptr.vmem [resolvable:$true] %s1509_s22 }
 0x445   : > { %p1498_p1 = scmp.gt.s32.totalorder %s1782_s23, 0  ;;  %p1783_p3 = scmp.lt.s32.totalorder %s1782_s23, 4 }
 0x446   : > { %s1490_s25 = scalar_lea.sflag [#allocation9], %s224_s30  ;;  %s2097_s4 = scalar_lea.vmem %s1510_s22, 256 }
 0x447   : > { %s2640_s23 = smov (!%p1498_p1, %s1782_s23), 0  ;;  %p2098_p12 = scmp.ne.s32.totalorder %s1510_s22, %s2097_s4 }
 0x448   : > { %s2642_s23 = smov (!%p1783_p3, %s2640_s23), 4  ;;  %p2622_p13 = scmp.ne.s32.totalorder %s2612_s27, 0 }
 0x449   : > { %s1804_s24 = sshll.u32 %s2642_s23, 8  ;;  %s2204_s7 = smov [#allocation13]  }
 0x44a   : > { %s1507_s26 = scalar_lea.hbm %s2606_s3, %s1804_s24  ;;  %p2099_p8 = pnand %p2098_p12, %p2622_p13 }
 0x44b   : > { %s2101_s19 = sshll.u32 %s2204_s7, 4  ;;  %s2102_s19 = int_to_ptr.vmem [resolvable:$false] %s2101_s19 }
 0x44c   : > { %p2100_p2 = pneg %p2099_p8  ;;  %s2103_s10 = scalar_lea.vmem %s2102_s19, 512 }
 0x44d   : > { %p2104_p9 = scmp.lt.s32.totalorder %s1510_s22, %s2102_s19  ;;  %p2105_p6 = scmp.lt.s32.totalorder %s2103_s10, %s2097_s4 }
 0x44f   : > { %p2106_p4 = por %p2105_p6, %p2104_p9 }
 0x451   : > { %p2107_p5 = pnand %p2106_p4, %p2100_p2 }
 0x453   : > { %2110 = shalt.err (!%p2107_p5)
}
 0x454   : > { %s2111_s11 = scalar_lea.hbm %s1507_s26, 256  ;;  %s2115_s20 = scalar_lea.hbm %s2606_s3, 1280 }
 0x455   : > { %p2112_p7 = scmp.ne.s32.totalorder %s1507_s26, %s2111_s11  ;;  %p2116_p11 = scmp.lt.s32.totalorder %s1507_s26, %s2606_s3 }
 0x456   : > { %p2117_p1 = scmp.lt.s32.totalorder %s2115_s20, %s2111_s11 }
 0x457   : > { %p2113_p10 = pnand %p2112_p7, %p2622_p13 }
 0x458   : > { %p2118_p3 = por %p2117_p1, %p2116_p11 }
 0x459   : > { %p2114_p0 = pneg %p2113_p10 }
 0x45b   : > { %p2119_p12 = pnand %p2118_p3, %p2114_p0 }
 0x45d   : > { %2122 = shalt.err (!%p2119_p12)
}
 0x45e   : > { %1815 = dma.vmem_to_hbm [thread:$0]  (%p2622_p13), %s1510_s22, 256, %s1507_s26, %s1490_s25  }
 0x45f PF: > { %p1837_p8 = scmp.ge.s32.totalorder %s2189_s18, 2  ;;  %s1521_s24 = sand.u32 1, %s2165_s12  }
 0x460   : > { %p2623_p2 = scmp.ne.s32.totalorder %s2613_s28, 0  ;;  %s1522_s15 = scalar_lea.sflag [#allocation9], %s1521_s24 }
 0x462   : > { %p1829_p9 = pnand %p1837_p8, %p2623_p2 }
 0x464   : > { %p1830_p6 = pneg %p1829_p9 }
 0x466   : > { %2160 = dma.done.wait (%p1830_p6), %s1522_s15, 256  }
 0x467   : > { %2162 = vsyncadd (%p1830_p6), %s1522_s15, 4294967040  ;;  %p17_p13 = scmp.ge.s32.totalorder %s2263_s21, 11   ;;  %s2624_s12 = smov %s2169_s13 }
 0x468   : > { %s2625_s13 = smov %s2173_s14  ;;  %s2626_s14 = smov %s2291_s29 }
 0x469   : > { %s2627_s15 = smov %s2181_s16  ;;  %s2628_s16 = smov %s2185_s17 }
 0x46a   : > { %s2629_s17 = smov %s2332_s5  ;;  %s2630_s18 = smov %s2263_s21 }
 0x46b   :  { %19 = sbr.rel (!%p17_p13) target bundleno = 8 (0x8), region = 109 }
 0x470   :  { %1527 = vsyncpa [#allocation8], 1 }
 0x471   :  { %1529 = vsyncpa [#allocation8 + $0x1], 1 }
 0x472   :  { %1530 = vsyncpa [#allocation11], 1 }
 0x473   :  { %1531 = vsyncpa [#allocation9], 1 }
 0x474   :  { %1533 = vsyncpa [#allocation9 + $0x1], 1 }

// kernel: tpu_custom_call.1
= control target key start
LH: loop header
LB: loop body
LE: loop exit
PB: predicated region body
PF: predicated region fallthrough
CT: control target
= control target key end

     0   :  { %8 = vsyncpa [#allocation8], 0  ;;  %s2603_s0 = inlined_call_operand.hbm [shape: f32[36,8,256], index: 0, kind: input, shape index: {}]   ;;  %s2604_s1 = inlined_call_operand.hbm [shape: bf16[256,256], index: 1, kind: input, shape index: {}]   ;;  %s2605_s2 = inlined_call_operand.hbm [shape: f32[4,256], index: 2, kind: input, shape index: {}]   ;;  %s2606_s3 = inlined_call_operand.hbm [shape: f32[5,8,256], index: 3, kind: output, shape index: {}]  }
   0x1   :  { %10 = vsyncpa [#allocation8 + $0x1], 0 }
   0x2   :  { %11 = vsyncpa [#allocation11], 0 }
   0x3   :  { %12 = vsyncpa [#allocation9], 0 }
   0x4   :  { %14 = vsyncpa [#allocation9 + $0x1], 0  ;;  %s2225_s12 = smov 0   ;;  %s2227_s13 = smov 0  }
   0x5   :  { %s2229_s14 = smov 0   ;;  %s2231_s15 = smov 0  }
   0x6   :  { %s2233_s16 = smov 0   ;;  %s2235_s17 = smov 0  }
   0x7   :  { %s2237_s18 = smov 0  }
   0x8 LB: > { %s2259_s19 = sadd.s32 4294967295, %s2189_s18   ;;  %s1598_s20 = sadd.s32 4294967294, %s2189_s18   ;;  %s2189_s18 = sphi %s2237_s18, %s2630_s18   ;;  %s2185_s17 = sphi %s2235_s17, %s2629_s17   ;;  %s2181_s16 = sphi %s2233_s16, %s2628_s16   ;;  %s2177_s15 = sphi %s2231_s15, %s2627_s15   ;;  %s2173_s14 = sphi %s2229_s14, %s2626_s14   ;;  %s2169_s13 = sphi %s2227_s13, %s2625_s13   ;;  %s2165_s12 = sphi %s2225_s12, %s2624_s12  }
   0x9   : > { %s2263_s21 = sadd.s32 1, %s2189_s18   ;;  %p40_p0 = scmp.ne.s32.totalorder %s2181_s16, %s2177_s15 }
   0xa   : > { %p2607_p1 = scmp.eq.s32.totalorder %s2259_s19, 0  ;;  %s1599_s22 = sadd.s32 4294967292, %s2189_s18 }
   0xb   : > { %p93_p2 = scmp.gt.s32.totalorder %s1599_s22, 0  ;;  %p1600_p3 = scmp.lt.s32.totalorder %s1599_s22, 4 }
   0xc   : > { %p2270_p4 = por %p2607_p1, %p40_p0  ;;  %s1605_s24 = sadd.s32 4294967292, %s2263_s21 }
   0xd   : > { %s2632_s22 = smov (!%p93_p2, %s1599_s22), 0  ;;  %p98_p5 = scmp.gt.s32.totalorder %s1605_s24, 0 }
   0xe   : > { %s2611_s23 = scalar_select %p2270_p4, 1, 0 }
   0xf   : > { %p1606_p6 = scmp.lt.s32.totalorder %s1605_s24, 4  ;;  %s2634_s22 = smov (!%p1600_p3, %s2632_s22), 4 }
  0x10   : > { %s2636_s24 = smov (!%p98_p5, %s1605_s24), 0  ;;  %s105_s25 = sadd.s32 1, %s2173_s14 }
  0x11   : > { %p115_p7 = scmp.ne.s32.totalorder %s2173_s14, %s2169_s13  ;;  %s2638_s24 = smov (!%p1606_p6, %s2636_s24), 4 }
  0x12   : > { %p116_p8 = scmp.eq.s32.totalorder %s2259_s19, 8  ;;  %p121_p9 = scmp.ne.s32.totalorder %s2169_s13, %s2165_s12 }
  0x13   : > { %s102_s26 = ssub.s32 %s2634_s22, %s2638_s24  ;;  %p122_p10 = scmp.eq.s32.totalorder %s1598_s20, 8 }
  0x14   : > { %p103_p11 = scmp.eq.s32.totalorder %s102_s26, 0  ;;  %p2281_p12 = por %p116_p8, %p115_p7 }
  0x15   : > { %p2285_p13 = por %p122_p10, %p121_p9  ;;  %p1611_p0 = scmp.ge.s32.totalorder %s2189_s18, 1 }
  0x16   : > { %s2612_s27 = scalar_select %p2281_p12, 1, 0 }
  0x17   : > { %s2613_s28 = scalar_select %p2285_p13, 1, 0 }
  0x18   : > { %s2291_s29 = scalar_select %p103_p11, %s2173_s14, %s105_s25  }
  0x19   : > { %p129_p2 = scmp.lt.s32.totalorder %s2189_s18, 10  ;;  %s2191_s4 = smov [#allocation10]  }
  0x1a   : > { %s141_s5 = sshll.u32 %s2191_s4, 4  ;;  %s2192_s7 = smov [#allocation12]   ;;  %s142_s5 = int_to_ptr.vmem [resolvable:$true] %s141_s5 }
  0x1b   : > { %p2295_p5 = pnand %p1611_p0, %p129_p2  ;;  %s155_s8 = sshll.u32 %s2192_s7, 4  ;;  %s156_s8 = int_to_ptr.vmem [resolvable:$true] %s155_s8 }
  0x1c   : > { %s24_s9 = ssub.s32 %s2189_s18, %s2263_s21  ;;  %s2028_s10 = scalar_lea.vmem %s142_s5, 4096 }
  0x1d   : > { %s2614_s30 = scalar_select %p2295_p5, 1, 0 }
  0x1e   : > { %p1817_p6 = pneg %p2295_p5  ;;  %p2029_p9 = scmp.ne.s32.totalorder %s142_s5, %s2028_s10 }
  0x1f   : > { %p2036_p0 = scmp.lt.s32.totalorder %s142_s5, %s142_s5  ;;  %p2037_p2 = scmp.lt.s32.totalorder %s2028_s10, %s2028_s10 }
  0x20   : > { %p2303_p7 = pnand %p1817_p6, %p2607_p1 }
  0x21   : > { %p2038_p6 = por %p2037_p2, %p2036_p0 }
  0x22   : > { %p2019_p8 = pneg %p2303_p7 }
  0x24   : > { %p2031_p10 = pnand %p2029_p9, %p2019_p8 }
  0x26   : > { %p2032_p11 = pneg %p2031_p10 }
  0x28   : > { %p2039_p3 = pnand %p2038_p6, %p2032_p11 }
  0x2a   : > { %2042 = shalt.err (!%p2039_p3)
}
  0x2b   : > { %s2193_s11 = smov 128   ;;  %s2194_s15 = smov 8  }
  0x2c   : > { %1820 = dma.hbm_to_vmem [thread:$0]  (!%p2303_p7), %s2604_s1, 4096, %s142_s5, [#allocation11], %s2193_s11, %s2193_s11, %s2194_s15  }
  0x2d   : > { %s2054_s24 = scalar_lea.vmem %s156_s8, 128  ;;  %p2062_p13 = scmp.lt.s32.totalorder %s156_s8, %s156_s8 }
  0x2e   : > { %p2055_p1 = scmp.ne.s32.totalorder %s156_s8, %s2054_s24  ;;  %p2063_p12 = scmp.lt.s32.totalorder %s2054_s24, %s2054_s24 }
  0x30   : > { %p2057_p9 = pnand %p2055_p1, %p2019_p8  ;;  %p2064_p0 = por %p2063_p12, %p2062_p13 }
  0x32   : > { %p2058_p10 = pneg %p2057_p9 }
  0x34   : > { %p2065_p11 = pnand %p2064_p0, %p2058_p10 }
  0x36   : > { %2068 = shalt.err (!%p2065_p11)
}
  0x37   : > { %1823 = dma.hbm_to_vmem [thread:$0]  (!%p2303_p7), %s2605_s2, 128, %s156_s8, [#allocation11]  }
  0x38   : > { %p25_p1 = scmp.eq.s32.totalorder %s24_s9, 0  ;;  %s27_s4 = sadd.s32 1, %s2185_s17 }
  0x39   : > { %p34_p3 = scmp.ne.s32.totalorder %s2185_s17, %s2181_s16  ;;  %p35_p12 = scmp.eq.s32.totalorder %s2189_s18, 0 }
  0x3a   : > { %s2332_s5 = scalar_select %p25_p1, %s2185_s17, %s27_s4  }
  0x3b   : > { %p36_p13 = por %p35_p12, %p34_p3  ;;  %p1834_p8 = scmp.lt.s32.totalorder %s2189_s18, 9 }
  0x3c   : > { %s166_s6 = sand.u32 1, %s2185_s17   ;;  %s1797_s7 = sshll.u32 %s2189_s18, 10 }
  0x3d   : > { %s1615_s10 = sshll.u32 %s166_s6, 6  ;;  %s2340_s20 = scalar_lea.hbm %s2603_s0, %s1797_s7 }
  0x3e   : > { %s170_s8 = scalar_lea.vmem [#allocation7], %s1615_s10  ;;  %p2342_p7 = pnand %p1834_p8, %p36_p13 }
  0x3f   : > { %s178_s9 = sshll.u32 %s170_s8, 4  ;;  %s2348_s24 = scalar_lea.sflag [#allocation8], %s166_s6  ;;  %s2346_s9 = int_to_ptr.vmem [resolvable:$true] %s178_s9 }
  0x40   : > { %s2069_s25 = scalar_lea.hbm %s2340_s20, 1024  ;;  %p2071_p6 = pneg %p2342_p7 }
  0x41   : > { %p2070_p2 = scmp.ne.s32.totalorder %s2340_s20, %s2069_s25  ;;  %s2074_s7 = scalar_lea.hbm %s2603_s0, 9216 }
  0x42   : > { %p2075_p0 = scmp.lt.s32.totalorder %s2340_s20, %s2603_s0  ;;  %p2076_p11 = scmp.lt.s32.totalorder %s2074_s7, %s2069_s25 }
  0x43   : > { %p2072_p9 = pnand %p2071_p6, %p2070_p2 }
  0x44   : > { %p2077_p1 = por %p2076_p11, %p2075_p0 }
  0x45   : > { %p2073_p10 = pneg %p2072_p9 }
  0x47   : > { %p2078_p3 = pnand %p2077_p1, %p2073_p10 }
  0x49   : > { %2081 = shalt.err (!%p2078_p3)
}
  0x4a   : > { %s2082_s6 = scalar_lea.vmem %s2346_s9, 1024  ;;  %s2195_s15 = smov [#allocation7]  }
  0x4b   : > { %p2083_p12 = scmp.ne.s32.totalorder %s2346_s9, %s2082_s6  ;;  %s2087_s8 = sshll.u32 %s2195_s15, 4  ;;  %s2088_s8 = int_to_ptr.vmem [resolvable:$false] %s2087_s8 }
  0x4c   : > { %s2089_s26 = scalar_lea.vmem %s2088_s8, 2048  ;;  %p2090_p2 = scmp.lt.s32.totalorder %s2346_s9, %s2088_s8 }
  0x4d   : > { %p2085_p13 = pnand %p2083_p12, %p2071_p6  ;;  %p2091_p9 = scmp.lt.s32.totalorder %s2089_s26, %s2082_s6 }
  0x4f   : > { %p2086_p8 = pneg %p2085_p13  ;;  %p2092_p4 = por %p2091_p9, %p2090_p2 }
  0x51   : > { %p2093_p5 = pnand %p2092_p4, %p2086_p8 }
  0x53   : > { %2096 = shalt.err (!%p2093_p5)
}
  0x54   : > { %s2196_s25 = smov 256   ;;  %s2197_s4 = smov 16  }
  0x55   : > { %1827 = dma.hbm_to_vmem [thread:$0]  (!%p2342_p7), %s2340_s20, 1024, %s2346_s9, %s2348_s24, %s2196_s25, %s2196_s25, %s2197_s4  }
  0x56   : > { %p2617_p6 = scmp.ne.s32.totalorder %s2614_s30, 0 }
  0x57   : > { %s192_s7 = sand.u32 (!%p2617_p6), 1, %s2181_s16   ;;  %p2618_p4 = scmp.ne.s32.totalorder (!%p2617_p6), %s2611_s23, 0 }
  0x58   : > { %190 = sbr.rel (%p2617_p6) target bundleno = 1119 (0x45f), region = 32  ;;  %s1620_s10 = sshll.u32 (!%p2617_p6), %s192_s7, 6 }
  0x59   : > { %s193_s11 = scalar_lea.sflag (!%p2617_p6), [#allocation8], %s192_s7  ;;  %s2372_s6 = scalar_lea.vmem (!%p2617_p6), [#allocation7], %s1620_s10 }
  0x5d   : > { %2152 = dma.done.wait (%p2618_p4), %s193_s11, 1024  }
  0x5e   : > { %2154 = vsyncadd (%p2618_p4), %s193_s11, 4294966272  ;;  %p2619_p5 = scmp.eq.s32.totalorder %s2259_s19, 0 }
  0x60   : > { %2156 = dma.done.wait (%p2619_p5), [#allocation11], 4224   ;;  %p2620_p7 = pmov %p2619_p5 }
  0x61   : > { %s224_s30 = sand.u32 1, %s2169_s13   ;;  %p2621_p10 = scmp.ne.s32.totalorder %s2259_s19, 0 }
  0x62   : > { %2158 = vsyncadd (%p2620_p7), [#allocation11], 4294963072  ;;  %s1623_s20 = sshll.u32 %s224_s30, 4 }
  0x63   : > { %s2385_s9 = scalar_lea.vmem [#allocation13], %s1623_s20  ;;  %237 = sbr.rel (%p2621_p10) target bundleno = 116 (0x74), region = 48 }
  0x68   : > { %v247_v0 = vlaneseq  ;;  %v2198_v1 = vmov 0.0   ;;  %v2199_v2 = vmov 0   ;;  %v245_v3 = vld [vmem:[#allocation12] ss:$4 sm:$0x3] }
  0x69   : > { %238 = vst [vmem:[#allocation2] sm:$0xff] %v2198_v1  ;;  %239 = vst [vmem:[#allocation2 + $0x8] sm:$0xff] %v2198_v1  ;;  %v260_v5 = vld [vmem:[#allocation12 + $0x1] ss:$4 sm:$0x3] }
  0x6a   : > { %240 = vst [vmem:[#allocation3 + $0x8] sm:$0xff] %v2198_v1  ;;  %241 = vst [vmem:[#allocation3] sm:$0xff] %v2198_v1  ;;  %v248_v4 = vshrl.u32 %v247_v0, 7  ;;  %v276_v6 = vld [vmem:[#allocation12 + $0x2] ss:$4 sm:$0x3] }
  0x6b   : > { %243 = vst [vmem:[#allocation5 + $0x8] sm:$0xff] %v2198_v1  ;;  %244 = vst [vmem:[#allocation5] sm:$0xff] %v2198_v1  ;;  %v292_v9 = vld [vmem:[#allocation12 + $0x3] ss:$4 sm:$0x3] }
  0x6c   : > { %242 = vst [vmem:[#allocation4] sm:$0xff] %v2199_v2  ;;  %v249_v7 = vsub.s32 0, %v248_v4  ;;  %v253_v8 = vsub.s32 1, %v248_v4 }
  0x6e   : > { %v250_v10 = vrot.slane %v245_v3, %v249_v7  ;;  %v254_v11 = vrot.slane %v245_v3, %v253_v8  ;;  %v265_v12 = vrot.slane %v260_v5, %v249_v7  ;;  %v269_v13 = vrot.slane %v260_v5, %v253_v8 }
  0x6f   : > { %v281_v14 = vrot.slane %v276_v6, %v249_v7  ;;  %v285_v15 = vrot.slane %v276_v6, %v253_v8  ;;  %v297_v16 = vrot.slane %v292_v9, %v249_v7  ;;  %v301_v17 = vrot.slane %v292_v9, %v253_v8 }
  0x70   : > { %257 = vst [vmem:[#allocation6] sm:$0xff] %v250_v10  ;;  %258 = vst [vmem:[#allocation6 + $0x38] sm:$0xff] %v254_v11 }
  0x71   : > { %273 = vst [vmem:[#allocation6 + $0x8] sm:$0xff] %v265_v12  ;;  %274 = vst [vmem:[#allocation6 + $0x18] sm:$0xff] %v269_v13 }
  0x72   : > { %289 = vst [vmem:[#allocation6 + $0x20] sm:$0xff] %v281_v14  ;;  %290 = vst [vmem:[#allocation6 + $0x10] sm:$0xff] %v285_v15 }
  0x73   : > { %305 = vst [vmem:[#allocation6 + $0x30] sm:$0xff] %v297_v16  ;;  %306 = vst [vmem:[#allocation6 + $0x28] sm:$0xff] %v301_v17 }
  0x74 PF: > { %v1905_v18 = vld [vmem:[#allocation10 + $0x74] ss:$8 sps:$4 sm:$0xff]   ;;  %v1907_v19 = vld [vmem:[#allocation10 + $0x70] ss:$8 sps:$4 sm:$0xff]   ;;  %v1908_v20 = vld [vmem:[#allocation10 + $0x64] ss:$8 sps:$4 sm:$0xff]  }
  0x75   : > { %518 = vmatprep.subr.bf16.mxu0 %v1905_v18  ;;  %v1910_v21 = vld [vmem:[#allocation10 + $0x60] ss:$8 sps:$4 sm:$0xff]   ;;  %v1911_v22 = vld [vmem:[#allocation10 + $0x54] ss:$8 sps:$4 sm:$0xff]   ;;  %v1913_v23 = vld [vmem:[#allocation10 + $0x50] ss:$8 sps:$4 sm:$0xff]  }
  0x76   : > { %519 = vmatpush1.bf16.msra.mxu0 %v1907_v19  ;;  %v1914_v24 = vld [vmem:[#allocation10 + $0x44] ss:$8 sps:$4 sm:$0xff]   ;;  %v1916_v25 = vld [vmem:[#allocation10 + $0x40] ss:$8 sps:$4 sm:$0xff]   ;;  %v1917_v26 = vld [vmem:[#allocation10 + $0x34] ss:$8 sps:$4 sm:$0xff]  }
  0x77   : > { %520 = vmatprep.subr.bf16.mxu0 %v1908_v20  ;;  %v1919_v27 = vld [vmem:[#allocation10 + $0x30] ss:$8 sps:$4 sm:$0xff]   ;;  %v1920_v28 = vld [vmem:[#allocation10 + $0x24] ss:$8 sps:$4 sm:$0xff]   ;;  %v1922_v29 = vld [vmem:[#allocation10 + $0x20] ss:$8 sps:$4 sm:$0xff]  }
  0x78   : > { %v1923_v30 = vld [vmem:[#allocation10 + $0x14] ss:$8 sps:$4 sm:$0xff]   ;;  %v318_v31 = vld [vmem:[#allocation4] sm:$0xff]  ;;  %v1925_v33 = vld [vmem:[#allocation10 + $0x10] ss:$8 sps:$4 sm:$0xff]   ;;  %p1662_p0 = scmp.lt.s32.totalorder %s2259_s19, 4 }
  0x79   : > { %v1626_v32 = vcombine.high %v318_v31, %v318_v31  ;;  %v1926_v34 = vld [vmem:[#allocation10 + $0x4] ss:$8 sps:$4 sm:$0xff]   ;;  %v1928_v35 = vld [vmem:[#allocation10] ss:$8 sps:$4 sm:$0xff]   ;;  %v1929_v36 = vld [vmem:[#allocation10 + $0xf4] ss:$8 sps:$4 sm:$0xff]   ;;  %v1625_v52 = vcombine.low %v318_v31, %v318_v31 }
  0x7a   : > { %521 = vmatpush1.bf16.msra.mxu0 %v1910_v21  ;;  %v1931_v37 = vld [vmem:[#allocation10 + $0xf0] ss:$8 sps:$4 sm:$0xff]   ;;  %v1932_v38 = vld [vmem:[#allocation10 + $0xe4] ss:$8 sps:$4 sm:$0xff]   ;;  %v1934_v39 = vld [vmem:[#allocation10 + $0xe0] ss:$8 sps:$4 sm:$0xff]  }
  0x7b   : > { %522 = vmatprep.subr.bf16.mxu0 %v1911_v22  ;;  %550 = vmatprep.mubr.bf16.mxu0 %v1626_v32  ;;  %v1935_v40 = vld [vmem:[#allocation10 + $0xd4] ss:$8 sps:$4 sm:$0xff]   ;;  %v1937_v41 = vld [vmem:[#allocation10 + $0xd0] ss:$8 sps:$4 sm:$0xff]   ;;  %v1938_v42 = vld [vmem:[#allocation10 + $0xc4] ss:$8 sps:$4 sm:$0xff]  }
  0x7c   : > { %v1940_v43 = vld [vmem:[#allocation10 + $0xc0] ss:$8 sps:$4 sm:$0xff]   ;;  %v1941_v44 = vld [vmem:[#allocation10 + $0xb4] ss:$8 sps:$4 sm:$0xff]   ;;  %v1943_v45 = vld [vmem:[#allocation10 + $0xb0] ss:$8 sps:$4 sm:$0xff]  }
  0x7d   : > { %v1944_v46 = vld [vmem:[#allocation10 + $0xa4] ss:$8 sps:$4 sm:$0xff]   ;;  %v1946_v47 = vld [vmem:[#allocation10 + $0xa0] ss:$8 sps:$4 sm:$0xff]   ;;  %v1947_v48 = vld [vmem:[#allocation10 + $0x94] ss:$8 sps:$4 sm:$0xff]  }
  0x7e   : > { %523 = vmatpush1.bf16.msra.mxu0 %v1913_v23  ;;  %v1949_v49 = vld [vmem:[#allocation10 + $0x90] ss:$8 sps:$4 sm:$0xff]   ;;  %v1950_v50 = vld [vmem:[#allocation10 + $0x84] ss:$8 sps:$4 sm:$0xff]   ;;  %v1952_v51 = vld [vmem:[#allocation10 + $0x80] ss:$8 sps:$4 sm:$0xff]  }
  0x7f   : > { %524 = vmatprep.subr.bf16.mxu0 %v1914_v24  ;;  %v2389_v53 = vld [vmem:[#allocation6 + $0x20] sm:$0xff]  ;;  %v2391_v55 = vld [vmem:[#allocation6 + $0x30] sm:$0xff]  ;;  %v560_v57 = vld [vmem:[#allocation3] sm:$0xff]  ;;  %v2200_v23 = vmov 0.0  }
  0x80   : > { %v559_v54 = vld [vmem:[#allocation3 + $0x8] sm:$0xff]  ;;  %v2393_v56 = vld [vmem:[#allocation6 + $0x10] sm:$0xff]  ;;  %v2396_v60 = vld [vmem:[#allocation6 + $0x28] sm:$0xff] }
  0x81   : > { %v561_v58 = vmul.f32 %v559_v54, %v2389_v53  ;;  %v562_v62 = vmul.f32 %v560_v57, %v2393_v56  ;;  %v2400_v63 = vld [vmem:[#allocation6] sm:$0xff]  ;;  %v573_v1 = vld [vmem:[#allocation2] sm:$0xff]  ;;  %v2406_v6 = vld [vmem:[#allocation6 + $0x38] sm:$0xff] }
  0x82   : > { %525 = vmatpush1.bf16.msra.mxu0 %v1916_v25  ;;  %v569_v0 = vld [vmem:[%s2372_s6] sm:$0xff]  ;;  %v2403_v3 = vld [vmem:[#allocation6 + $0x8] sm:$0xff]  ;;  %v574_v8 = vld [vmem:[#allocation2 + $0x8] sm:$0xff]  ;;  %v575_v11 = vmul.f32 %v573_v1, %v2400_v63 }
  0x83   : > { %526 = vmatprep.subr.bf16.mxu0 %v1917_v26  ;;  %v570_v7 = vld [vmem:[%s2372_s6 + $0x8] sm:$0xff]  ;;  %v2410_v13 = vld [vmem:[#allocation6 + $0x18] sm:$0xff]  ;;  %v576_v17 = vmul.f32 %v574_v8, %v2406_v6  ;;  %v601_v25 = vld [vmem:[#allocation5] sm:$0xff] }
  0x84   : > { %v600_v20 = vld [vmem:[#allocation5 + $0x8] sm:$0xff] }
  0x86   : > { %527 = vmatpush1.bf16.msra.mxu0 %v1919_v27 }
  0x87   : > { %528 = vmatprep.subr.bf16.mxu0 %v1920_v28 }
  0x8a   : > { %529 = vmatpush1.bf16.msra.mxu0 %v1922_v29 }
  0x8b   : > { %530 = vmatprep.subr.bf16.mxu0 %v1923_v30 }
  0x8e   : > { %531 = vmatpush1.bf16.msra.mxu0 %v1925_v33 }
  0x8f   : > { %532 = vmatprep.subr.bf16.mxu0 %v1926_v34 }
  0x92   : > { %533 = vmatpush1.bf16.msra.mxu0 %v1928_v35 }
  0x93   : > { %534 = vmatprep.subr.bf16.mxu0 %v1929_v36 }
  0x96   : > { %535 = vmatpush2.bf16.msra.mxu0 %v1931_v37 }
  0x97   : > { %536 = vmatprep.subr.bf16.mxu0 %v1932_v38 }
  0x9a   : > { %537 = vmatpush2.bf16.msra.mxu0 %v1934_v39 }
  0x9b   : > { %538 = vmatprep.subr.bf16.mxu0 %v1935_v40 }
  0x9e   : > { %539 = vmatpush2.bf16.msra.mxu0 %v1937_v41 }
  0x9f   : > { %540 = vmatprep.subr.bf16.mxu0 %v1938_v42 }
  0xa2   : > { %541 = vmatpush2.bf16.msra.mxu0 %v1940_v43 }
  0xa3   : > { %542 = vmatprep.subr.bf16.mxu0 %v1941_v44 }
  0xa6   : > { %543 = vmatpush2.bf16.msra.mxu0 %v1943_v45 }
  0xa7   : > { %544 = vmatprep.subr.bf16.mxu0 %v1944_v46 }
  0xaa   : > { %545 = vmatpush2.bf16.msra.mxu0 %v1946_v47 }
  0xab   : > { %546 = vmatprep.subr.bf16.mxu0 %v1947_v48 }
  0xae   : > { %547 = vmatpush2.bf16.msra.mxu0 %v1949_v49 }
  0xaf   : > { %548 = vmatprep.subr.bf16.mxu0 %v1950_v50 }
  0xb2   : > { %549 = vmatpush2.bf16.msra.mxu0 %v1952_v51 }
  0xb5   : > { %551 = vmatmul.mubr.bf16.vlgmr.msra.gmra.mxu0 %v1625_v52 }
 0x175   : > { %v552_v59 = vpop.f32.mrf.mxu0 }
 0x176   : > { %v563_v61 = vmul.f32 %v552_v59, %v2391_v55 }
 0x177   : > { %v554_v2 = vpop.f32.mrf.mxu0 }
 0x178   : > { %v565_v4 = vadd.f32 %v563_v61, %v561_v58  ;;  %v564_v5 = vmul.f32 %v554_v2, %v2396_v60 }
 0x179   : > { %v556_v9 = vpop.f32.mrf.mxu0 }
 0x17a   : > { %567 = vst [vmem:[#allocation3 + $0x8] sm:$0xff] %v565_v4  ;;  %v571_v10 = vadd.f32 %v569_v0, %v565_v4  ;;  %v566_v12 = vadd.f32 %v564_v5, %v562_v62 }
 0x17b   : > { %v557_v14 = vpop.f32.mrf.mxu0 }
 0x17c   : > { %v577_v15 = vmul.f32 %v571_v10, %v2403_v3  ;;  %568 = vst [vmem:[#allocation3] sm:$0xff] %v566_v12  ;;  %v572_v16 = vadd.f32 %v570_v7, %v566_v12 }
 0x17e   : > { %v579_v18 = vadd.f32 %v577_v15, %v575_v11  ;;  %v578_v19 = vmul.f32 %v572_v16, %v2410_v13 }
 0x180   : > { %vm581_vm0 = vcmp.ge.f32.partialorder %v579_v18, 1.0  ;;  %v580_v21 = vadd.f32 %v578_v19, %v576_v17 }
 0x181   : > { %v583_v22 = vsel %vm581_vm0, 0.0, %v579_v18  ;;  %v1659_v24 = vsel %vm581_vm0, 1.0, %v2200_v23 }
 0x182   : > { %585 = vst [vmem:[#allocation2] sm:$0xff] %v583_v22  ;;  %v602_v26 = vadd.f32 %v1659_v24, %v600_v20  ;;  %vm582_vm1 = vcmp.ge.f32.partialorder %v580_v21, 1.0  ;;  %609 = sbr.rel (%p1662_p0) target bundleno = 399 (0x18f), region = 52 }
 0x183   : > { %v584_v27 = vsel %vm582_vm1, 0.0, %v580_v21  ;;  %v1660_v28 = vsel %vm582_vm1, 1.0, %v2200_v23 }
 0x184   : > { %604 = vst [vmem:[#allocation5 + $0x8] sm:$0xff] %v602_v26  ;;  %586 = vst [vmem:[#allocation2 + $0x8] sm:$0xff] %v584_v27  ;;  %v1798_v29 = vpack.c.bf16 %v1660_v28, %v1659_v24  ;;  %v603_v30 = vadd.f32 %v1660_v28, %v601_v25 }
 0x186   : > { %599 = vst [vmem:[#allocation4] sm:$0xff] %v1798_v29  ;;  %605 = vst [vmem:[#allocation5] sm:$0xff] %v603_v30 }
 0x187   : > { %v2201_v33 = vmov 0.0  }
 0x18b   : > { %v610_v31 = vld [vmem:[#allocation5 + $0x8] sm:$0xff] }
 0x18c   : > { %612 = vst [vmem:[%s2385_s9] sm:$0xff] %v610_v31  ;;  %614 = vst [vmem:[#allocation5 + $0x8] sm:$0xff] %v2201_v33 }
 0x18d   : > { %v611_v32 = vld [vmem:[#allocation5] sm:$0xff] }
 0x18e   : > { %613 = vst [vmem:[%s2385_s9 + $0x8] sm:$0xff] %v611_v32  ;;  %615 = vst [vmem:[#allocation5] sm:$0xff] %v2201_v33 }
 0x18f PF: > { %v2420_v34 = vld [vmem:[#allocation10 + $0x74] ss:$8 sps:$4 sm:$0xff]   ;;  %v2422_v35 = vld [vmem:[#allocation10 + $0x70] ss:$8 sps:$4 sm:$0xff]   ;;  %v2425_v36 = vld [vmem:[#allocation10 + $0x64] ss:$8 sps:$4 sm:$0xff]  }
 0x190   : > { %816 = vmatprep.subr.bf16.mxu1 %v2420_v34  ;;  %1105 = vmatprep.subr.bf16.mxu0 %v2420_v34  ;;  %v2429_v37 = vld [vmem:[#allocation10 + $0x60] ss:$8 sps:$4 sm:$0xff]   ;;  %v2433_v38 = vld [vmem:[#allocation10 + $0x54] ss:$8 sps:$4 sm:$0xff]   ;;  %v2437_v39 = vld [vmem:[#allocation10 + $0x50] ss:$8 sps:$4 sm:$0xff]  }
 0x191   : > { %817 = vmatpush1.bf16.msra.mxu1 %v2422_v35  ;;  %1106 = vmatpush1.bf16.msra.mxu0 %v2422_v35  ;;  %v2441_v40 = vld [vmem:[#allocation10 + $0x44] ss:$8 sps:$4 sm:$0xff]   ;;  %v2445_v41 = vld [vmem:[#allocation10 + $0x40] ss:$8 sps:$4 sm:$0xff]   ;;  %v2449_v42 = vld [vmem:[#allocation10 + $0x34] ss:$8 sps:$4 sm:$0xff]  }
 0x192   : > { %818 = vmatprep.subr.bf16.mxu1 %v2425_v36  ;;  %1107 = vmatprep.subr.bf16.mxu0 %v2425_v36  ;;  %v2453_v43 = vld [vmem:[#allocation10 + $0x30] ss:$8 sps:$4 sm:$0xff]   ;;  %v2457_v44 = vld [vmem:[#allocation10 + $0x24] ss:$8 sps:$4 sm:$0xff]   ;;  %v2461_v45 = vld [vmem:[#allocation10 + $0x20] ss:$8 sps:$4 sm:$0xff]  }
 0x193   : > { %v2465_v46 = vld [vmem:[#allocation10 + $0x14] ss:$8 sps:$4 sm:$0xff]   ;;  %v2473_v49 = vld [vmem:[#allocation10 + $0x10] ss:$8 sps:$4 sm:$0xff]   ;;  %v2477_v50 = vld [vmem:[#allocation10 + $0x4] ss:$8 sps:$4 sm:$0xff]  }
 0x194   : > { %v2481_v51 = vld [vmem:[#allocation10] ss:$8 sps:$4 sm:$0xff]   ;;  %v2485_v52 = vld [vmem:[#allocation10 + $0xf4] ss:$8 sps:$4 sm:$0xff]   ;;  %v2489_v54 = vld [vmem:[#allocation10 + $0xf0] ss:$8 sps:$4 sm:$0xff]  }
 0x195   : > { %819 = vmatpush1.bf16.msra.mxu1 %v2429_v37  ;;  %1108 = vmatpush1.bf16.msra.mxu0 %v2429_v37  ;;  %v2468_v47 = vld [vmem:[#allocation4] sm:$0xff]  ;;  %v1985_v59 = vld [vmem:[#allocation10 + $0xd4] ss:$8 sps:$4 sm:$0xff]   ;;  %v1987_v61 = vld [vmem:[#allocation10 + $0xd0] ss:$8 sps:$4 sm:$0xff]   ;;  %p1780_p11 = scmp.ne.s32.totalorder %s2259_s19, 2 }
 0x196   : > { %820 = vmatprep.subr.bf16.mxu1 %v2433_v38  ;;  %1109 = vmatprep.subr.bf16.mxu0 %v2433_v38  ;;  %v1664_v48 = vcombine.high %v2468_v47, %v2468_v47  ;;  %v2493_v57 = vld [vmem:[#allocation10 + $0xe4] ss:$8 sps:$4 sm:$0xff]   ;;  %v1984_v58 = vld [vmem:[#allocation10 + $0xe0] ss:$8 sps:$4 sm:$0xff]   ;;  %v1991_v1 = vld [vmem:[#allocation10 + $0xb4] ss:$8 sps:$4 sm:$0xff]   ;;  %v1663_v11 = vcombine.low %v2468_v47, %v2468_v47 }
 0x197   : > { %v1988_v62 = vld [vmem:[#allocation10 + $0xc4] ss:$8 sps:$4 sm:$0xff]   ;;  %v1990_v0 = vld [vmem:[#allocation10 + $0xc0] ss:$8 sps:$4 sm:$0xff]   ;;  %v1993_v2 = vld [vmem:[#allocation10 + $0xb0] ss:$8 sps:$4 sm:$0xff]  }
 0x198   : > { %848 = vmatprep.mubr.bf16.mxu1 %v1664_v48  ;;  %v1994_v4 = vld [vmem:[#allocation10 + $0xa4] ss:$8 sps:$4 sm:$0xff]   ;;  %v1996_v5 = vld [vmem:[#allocation10 + $0xa0] ss:$8 sps:$4 sm:$0xff]   ;;  %v1997_v7 = vld [vmem:[#allocation10 + $0x94] ss:$8 sps:$4 sm:$0xff]  }
 0x199   : > { %821 = vmatpush1.bf16.msra.mxu1 %v2437_v39  ;;  %1110 = vmatpush1.bf16.msra.mxu0 %v2437_v39  ;;  %v1999_v8 = vld [vmem:[#allocation10 + $0x90] ss:$8 sps:$4 sm:$0xff]   ;;  %v2000_v9 = vld [vmem:[#allocation10 + $0x84] ss:$8 sps:$4 sm:$0xff]   ;;  %v2002_v10 = vld [vmem:[#allocation10 + $0x80] ss:$8 sps:$4 sm:$0xff]  }
 0x19a   : > { %822 = vmatprep.subr.bf16.mxu1 %v2441_v40  ;;  %1111 = vmatprep.subr.bf16.mxu0 %v2441_v40  ;;  %v857_v12 = vld [vmem:[#allocation3 + $0x8] sm:$0xff]  ;;  %v858_v14 = vld [vmem:[#allocation3] sm:$0xff]  ;;  %v1697_v19 = vld [vmem:[%s2372_s6 + $0x10] sm:$0xff] }
 0x19b   : > { %v859_v15 = vmul.f32 %v857_v12, %v2389_v53  ;;  %v860_v18 = vmul.f32 %v858_v14, %v2393_v56  ;;  %v872_v20 = vld [vmem:[#allocation2] sm:$0xff]  ;;  %v1698_v25 = vld [vmem:[%s2372_s6 + $0x18] sm:$0xff]  ;;  %v873_v26 = vld [vmem:[#allocation2 + $0x8] sm:$0xff] }
 0x19c   : > { %v874_v29 = vmul.f32 %v872_v20, %v2400_v63  ;;  %v1775_v20 = vld [vmem:[%s2372_s6 + $0x30] sm:$0xff] }
 0x19d   : > { %823 = vmatpush1.bf16.msra.mxu1 %v2445_v41  ;;  %1112 = vmatpush1.bf16.msra.mxu0 %v2445_v41 }
 0x19e   : > { %824 = vmatprep.subr.bf16.mxu1 %v2449_v42  ;;  %1113 = vmatprep.subr.bf16.mxu0 %v2449_v42 }
 0x1a1   : > { %825 = vmatpush1.bf16.msra.mxu1 %v2453_v43  ;;  %1114 = vmatpush1.bf16.msra.mxu0 %v2453_v43 }
 0x1a2   : > { %826 = vmatprep.subr.bf16.mxu1 %v2457_v44  ;;  %1115 = vmatprep.subr.bf16.mxu0 %v2457_v44 }
 0x1a5   : > { %827 = vmatpush1.bf16.msra.mxu1 %v2461_v45  ;;  %1116 = vmatpush1.bf16.msra.mxu0 %v2461_v45 }
 0x1a6   : > { %828 = vmatprep.subr.bf16.mxu1 %v2465_v46  ;;  %1117 = vmatprep.subr.bf16.mxu0 %v2465_v46 }
 0x1a9   : > { %829 = vmatpush1.bf16.msra.mxu1 %v2473_v49  ;;  %1118 = vmatpush1.bf16.msra.mxu0 %v2473_v49 }
 0x1aa   : > { %830 = vmatprep.subr.bf16.mxu1 %v2477_v50  ;;  %1119 = vmatprep.subr.bf16.mxu0 %v2477_v50 }
 0x1ad   : > { %831 = vmatpush1.bf16.msra.mxu1 %v2481_v51  ;;  %1120 = vmatpush1.bf16.msra.mxu0 %v2481_v51 }
 0x1ae   : > { %832 = vmatprep.subr.bf16.mxu1 %v2485_v52  ;;  %1121 = vmatprep.subr.bf16.mxu0 %v2485_v52 }
 0x1b1   : > { %833 = vmatpush2.bf16.msra.mxu1 %v2489_v54  ;;  %1122 = vmatpush2.bf16.msra.mxu0 %v2489_v54 }
 0x1b2   : > { %834 = vmatprep.subr.bf16.mxu1 %v2493_v57  ;;  %1123 = vmatprep.subr.bf16.mxu0 %v2493_v57 }
 0x1b5   : > { %835 = vmatpush2.bf16.msra.mxu1 %v1984_v58  ;;  %1124 = vmatpush2.bf16.msra.mxu0 %v1984_v58 }
 0x1b6   : > { %836 = vmatprep.subr.bf16.mxu1 %v1985_v59  ;;  %1125 = vmatprep.subr.bf16.mxu0 %v1985_v59 }
 0x1b9   : > { %837 = vmatpush2.bf16.msra.mxu1 %v1987_v61  ;;  %1126 = vmatpush2.bf16.msra.mxu0 %v1987_v61 }
 0x1ba   : > { %838 = vmatprep.subr.bf16.mxu1 %v1988_v62  ;;  %1127 = vmatprep.subr.bf16.mxu0 %v1988_v62 }
 0x1bd   : > { %839 = vmatpush2.bf16.msra.mxu1 %v1990_v0  ;;  %1128 = vmatpush2.bf16.msra.mxu0 %v1990_v0 }
 0x1be   : > { %840 = vmatprep.subr.bf16.mxu1 %v1991_v1  ;;  %1129 = vmatprep.subr.bf16.mxu0 %v1991_v1 }
 0x1c1   : > { %841 = vmatpush2.bf16.msra.mxu1 %v1993_v2  ;;  %1130 = vmatpush2.bf16.msra.mxu0 %v1993_v2 }
 0x1c2   : > { %842 = vmatprep.subr.bf16.mxu1 %v1994_v4  ;;  %1131 = vmatprep.subr.bf16.mxu0 %v1994_v4 }
 0x1c5   : > { %843 = vmatpush2.bf16.msra.mxu1 %v1996_v5  ;;  %1132 = vmatpush2.bf16.msra.mxu0 %v1996_v5 }
 0x1c6   : > { %844 = vmatprep.subr.bf16.mxu1 %v1997_v7  ;;  %1133 = vmatprep.subr.bf16.mxu0 %v1997_v7 }
 0x1c9   : > { %845 = vmatpush2.bf16.msra.mxu1 %v1999_v8  ;;  %1134 = vmatpush2.bf16.msra.mxu0 %v1999_v8 }
 0x1ca   : > { %846 = vmatprep.subr.bf16.mxu1 %v2000_v9  ;;  %1135 = vmatprep.subr.bf16.mxu0 %v2000_v9 }
 0x1cd   : > { %847 = vmatpush2.bf16.msra.mxu1 %v2002_v10  ;;  %1136 = vmatpush2.bf16.msra.mxu0 %v2002_v10 }
 0x1ce   : > { %1394 = vmatprep.subr.bf16.mxu1 %v2420_v34  ;;  %v875_v34 = vmul.f32 %v873_v26, %v2406_v6  ;;  %v1776_v26 = vld [vmem:[%s2372_s6 + $0x38] sm:$0xff] }
 0x1d0   : > { %849 = vmatmul.mubr.bf16.vlgmr.msra.gmra.mxu1 %v1663_v11 }
 0x1d1   : > { %1395 = vmatpush1.bf16.msra.mxu1 %v2422_v35 }
 0x1d2   : > { %1396 = vmatprep.subr.bf16.mxu1 %v2425_v36 }
 0x1d5   : > { %1397 = vmatpush1.bf16.msra.mxu1 %v2429_v37 }
 0x1d6   : > { %1398 = vmatprep.subr.bf16.mxu1 %v2433_v38 }
 0x1d9   : > { %1399 = vmatpush1.bf16.msra.mxu1 %v2437_v39 }
 0x1da   : > { %1400 = vmatprep.subr.bf16.mxu1 %v2441_v40 }
 0x1dd   : > { %1401 = vmatpush1.bf16.msra.mxu1 %v2445_v41 }
 0x1de   : > { %1402 = vmatprep.subr.bf16.mxu1 %v2449_v42  ;;  %v2202_v42 = vmov 1.0|1.0  }
 0x1e1   : > { %1403 = vmatpush1.bf16.msra.mxu1 %v2453_v43 }
 0x1e2   : > { %1404 = vmatprep.subr.bf16.mxu1 %v2457_v44 }
 0x1e5   : > { %1405 = vmatpush1.bf16.msra.mxu1 %v2461_v45 }
 0x1e6   : > { %1406 = vmatprep.subr.bf16.mxu1 %v2465_v46  ;;  %v1736_v46 = vld [vmem:[%s2372_s6 + $0x20] sm:$0xff] }
 0x1e9   : > { %1407 = vmatpush1.bf16.msra.mxu1 %v2473_v49 }
 0x1ea   : > { %1408 = vmatprep.subr.bf16.mxu1 %v2477_v50 }
 0x1ed   : > { %1409 = vmatpush1.bf16.msra.mxu1 %v2481_v51  ;;  %v1737_v51 = vld [vmem:[%s2372_s6 + $0x28] sm:$0xff] }
 0x1ee   : > { %1410 = vmatprep.subr.bf16.mxu1 %v2485_v52 }
 0x1f1   : > { %1411 = vmatpush2.bf16.msra.mxu1 %v2489_v54 }
 0x1f2   : > { %1412 = vmatprep.subr.bf16.mxu1 %v2493_v57 }
 0x1f5   : > { %1413 = vmatpush2.bf16.msra.mxu1 %v1984_v58 }
 0x1f6   : > { %1414 = vmatprep.subr.bf16.mxu1 %v1985_v59 }
 0x1f9   : > { %1415 = vmatpush2.bf16.msra.mxu1 %v1987_v61 }
 0x1fa   : > { %1416 = vmatprep.subr.bf16.mxu1 %v1988_v62 }
 0x1fd   : > { %1417 = vmatpush2.bf16.msra.mxu1 %v1990_v0  ;;  %v899_v0 = vld [vmem:[#allocation5 + $0x8] sm:$0xff] }
 0x1fe   : > { %1418 = vmatprep.subr.bf16.mxu1 %v1991_v1 }
 0x201   : > { %1419 = vmatpush2.bf16.msra.mxu1 %v1993_v2 }
 0x202   : > { %1420 = vmatprep.subr.bf16.mxu1 %v1994_v4 }
 0x205   : > { %1421 = vmatpush2.bf16.msra.mxu1 %v1996_v5  ;;  %v900_v5 = vld [vmem:[#allocation5] sm:$0xff] }
 0x206   : > { %1422 = vmatprep.subr.bf16.mxu1 %v1997_v7 }
 0x209   : > { %1423 = vmatpush2.bf16.msra.mxu1 %v1999_v8 }
 0x20a   : > { %1424 = vmatprep.subr.bf16.mxu1 %v2000_v9 }
 0x20d   : > { %1425 = vmatpush2.bf16.msra.mxu1 %v2002_v10 }
 0x290   : > { %v850_v16 = vpop.f32.mrf.mxu1 }
 0x291   : > { %v861_v17 = vmul.f32 %v850_v16, %v2391_v55 }
 0x292   : > { %v852_v21 = vpop.f32.mrf.mxu1 }
 0x293   : > { %v863_v22 = vadd.f32 %v861_v17, %v859_v15  ;;  %v862_v24 = vmul.f32 %v852_v21, %v2396_v60 }
 0x294   : > { %v854_v27 = vpop.f32.mrf.mxu1 }
 0x295   : > { %v870_v28 = vadd.f32 %v1697_v19, %v863_v22  ;;  %v864_v30 = vadd.f32 %v862_v24, %v860_v18  ;;  %v1148_v44 = vmul.f32 %v863_v22, %v2389_v53 }
 0x296   : > { %v855_v31 = vpop.f32.mrf.mxu1 }
 0x297   : > { %v876_v32 = vmul.f32 %v870_v28, %v2403_v3  ;;  %v871_v33 = vadd.f32 %v1698_v25, %v864_v30  ;;  %v1149_v49 = vmul.f32 %v864_v30, %v2393_v56 }
 0x299   : > { %v878_v35 = vadd.f32 %v876_v32, %v874_v29  ;;  %v877_v36 = vmul.f32 %v871_v33, %v2410_v13 }
 0x29b   : > { %vm880_vm2 = vcmp.ge.f32.partialorder %v878_v35, 1.0  ;;  %v879_v37 = vadd.f32 %v877_v36, %v875_v34 }
 0x29c   : > { %v882_v38 = vsel %vm880_vm2, 0.0, %v878_v35  ;;  %v1699_v39 = vsel %vm880_vm2, 1.0, %v2200_v23  ;;  %vm2009_vm5 = vmpackc.low %vm880_vm2, %vm880_vm2 }
 0x29d   : > { %vm881_vm3 = vcmp.ge.f32.partialorder %v879_v37, 1.0  ;;  %v1163_v59 = vmul.f32 %v882_v38, %v2400_v63  ;;  %v901_v7 = vadd.f32 %v1699_v39, %v899_v0 }
 0x29e   : > { %v883_v40 = vsel %vm881_vm3, 0.0, %v879_v37  ;;  %v1700_v41 = vsel %vm881_vm3, 1.0, %v2200_v23  ;;  %vm2007_vm4 = vmpackc.low %vm881_vm3, %vm881_vm3 }
 0x29f   : > { %2008 = vmatprep.mubr.msk.bf16.mxu0 %vm2007_vm4, %v2202_v42  ;;  %v1164_v2 = vmul.f32 %v883_v40, %v2406_v6  ;;  %v902_v11 = vadd.f32 %v1700_v41, %v900_v5 }
 0x2a0   : > { %2010 = vmatmul.mubr.msk.bf16.vlgmr.msra.gmra.mxu0 %vm2009_vm5, %v2202_v42 }
 0x360   : > { %v1139_v43 = vpop.f32.mrf.mxu0 }
 0x361   : > { %v1150_v45 = vmul.f32 %v1139_v43, %v2391_v55 }
 0x362   : > { %v1141_v47 = vpop.f32.mrf.mxu0 }
 0x363   : > { %v1152_v48 = vadd.f32 %v1150_v45, %v1148_v44  ;;  %v1151_v50 = vmul.f32 %v1141_v47, %v2396_v60 }
 0x364   : > { %v1143_v52 = vpop.f32.mrf.mxu0 }
 0x365   : > { %v1159_v54 = vadd.f32 %v1736_v46, %v1152_v48  ;;  %v1153_v57 = vadd.f32 %v1151_v50, %v1149_v49  ;;  %v1437_v18 = vmul.f32 %v1152_v48, %v2389_v53 }
 0x366   : > { %v1144_v58 = vpop.f32.mrf.mxu0 }
 0x367   : > { %v1165_v61 = vmul.f32 %v1159_v54, %v2403_v3  ;;  %v1160_v62 = vadd.f32 %v1737_v51, %v1153_v57  ;;  %v1438_v24 = vmul.f32 %v1153_v57, %v2393_v56 }
 0x369   : > { %v1167_v1 = vadd.f32 %v1165_v61, %v1163_v59  ;;  %v1166_v4 = vmul.f32 %v1160_v62, %v2410_v13 }
 0x36b   : > { %vm1169_vm6 = vcmp.ge.f32.partialorder %v1167_v1, 1.0  ;;  %v1168_v8 = vadd.f32 %v1166_v4, %v1164_v2 }
 0x36c   : > { %v1171_v9 = vsel %vm1169_vm6, 0.0, %v1167_v1  ;;  %v1738_v10 = vsel %vm1169_vm6, 1.0, %v2200_v23  ;;  %vm2015_vm9 = vmpackc.low %vm1169_vm6, %vm1169_vm6 }
 0x36d   : > { %v1190_v12 = vadd.f32 %v1738_v10, %v901_v7  ;;  %vm1170_vm7 = vcmp.ge.f32.partialorder %v1168_v8, 1.0  ;;  %v1452_v31 = vmul.f32 %v1171_v9, %v2400_v63 }
 0x36e   : > { %v1172_v14 = vsel %vm1170_vm7, 0.0, %v1168_v8  ;;  %v1739_v15 = vsel %vm1170_vm7, 1.0, %v2200_v23  ;;  %vm2013_vm8 = vmpackc.low %vm1170_vm7, %vm1170_vm7 }
 0x36f   : > { %v1191_v16 = vadd.f32 %v1739_v15, %v902_v11  ;;  %2014 = vmatprep.mubr.msk.bf16.mxu1 %vm2013_vm8, %v2202_v42  ;;  %v1453_v33 = vmul.f32 %v1172_v14, %v2406_v6 }
 0x370   : > { %2016 = vmatmul.mubr.msk.bf16.vlgmr.msra.gmra.mxu1 %vm2015_vm9, %v2202_v42 }
 0x430   : > { %v1428_v17 = vpop.f32.mrf.mxu1 }
 0x431   : > { %v1439_v19 = vmul.f32 %v1428_v17, %v2391_v55 }
 0x432   : > { %v1430_v21 = vpop.f32.mrf.mxu1 }
 0x433   : > { %v1441_v22 = vadd.f32 %v1439_v19, %v1437_v18  ;;  %v1440_v25 = vmul.f32 %v1430_v21, %v2396_v60 }
 0x434   : > { %v1432_v27 = vpop.f32.mrf.mxu1 }
 0x435   : > { %1443 = vst [vmem:[#allocation3 + $0x8] sm:$0xff] %v1441_v22  ;;  %v1448_v28 = vadd.f32 %v1775_v20, %v1441_v22  ;;  %v1442_v29 = vadd.f32 %v1440_v25, %v1438_v24 }
 0x436   : > { %v1433_v30 = vpop.f32.mrf.mxu1 }
 0x437   : > { %v1454_v32 = vmul.f32 %v1448_v28, %v2403_v3  ;;  %1444 = vst [vmem:[#allocation3] sm:$0xff] %v1442_v29  ;;  %v1449_v53 = vadd.f32 %v1776_v26, %v1442_v29 }
 0x439   : > { %v1456_v55 = vadd.f32 %v1454_v32, %v1452_v31  ;;  %v1455_v34 = vmul.f32 %v1449_v53, %v2410_v13 }
 0x43b   : > { %vm1458_vm10 = vcmp.ge.f32.partialorder %v1456_v55, 1.0  ;;  %v1457_v56 = vadd.f32 %v1455_v34, %v1453_v33 }
 0x43c   : > { %v1460_v60 = vsel %vm1458_vm10, 0.0, %v1456_v55  ;;  %v1777_v35 = vsel %vm1458_vm10, 1.0, %v2200_v23 }
 0x43d   : > { %1462 = vst [vmem:[#allocation2] sm:$0xff] %v1460_v60  ;;  %v1479_v36 = vadd.f32 %v1777_v35, %v1190_v12  ;;  %vm1459_vm11 = vcmp.ge.f32.partialorder %v1457_v56, 1.0  ;;  %1486 = sbr.rel (%p1780_p11) target bundleno = 1092 (0x444), region = 56 }
 0x43e   : > { %v1461_v37 = vsel %vm1459_vm11, 0.0, %v1457_v56  ;;  %v1778_v63 = vsel %vm1459_vm11, 1.0, %v2200_v23 }
 0x43f   : > { %1481 = vst [vmem:[#allocation5 + $0x8] sm:$0xff] %v1479_v36  ;;  %1463 = vst [vmem:[#allocation2 + $0x8] sm:$0xff] %v1461_v37  ;;  %v1801_v3 = vpack.c.bf16 %v1778_v63, %v1777_v35  ;;  %v1480_v38 = vadd.f32 %v1778_v63, %v1191_v16 }
 0x441   : > { %1476 = vst [vmem:[#allocation4] sm:$0xff] %v1801_v3  ;;  %1482 = vst [vmem:[#allocation5] sm:$0xff] %v1480_v38 }
 0x442   : > { %v2203_v6 = vmov 0.0  }
 0x443   : > { %1487 = vst [vmem:[#allocation5 + $0x8] sm:$0xff] %v2203_v6  ;;  %1488 = vst [vmem:[#allocation5] sm:$0xff] %v2203_v6 }
 0x444 PF: > { %s1782_s23 = sadd.s32 4294967292, %s2259_s19  ;;  %s1509_s22 = sshll.u32 %s2385_s9, 4  ;;  %s1510_s22 = int_to_ptr.vmem [resolvable:$true] %s1509_s22 }
 0x445   : > { %p1498_p1 = scmp.gt.s32.totalorder %s1782_s23, 0  ;;  %p1783_p3 = scmp.lt.s32.totalorder %s1782_s23, 4 }
 0x446   : > { %s1490_s25 = scalar_lea.sflag [#allocation9], %s224_s30  ;;  %s2097_s4 = scalar_lea.vmem %s1510_s22, 256 }
 0x447   : > { %s2640_s23 = smov (!%p1498_p1, %s1782_s23), 0  ;;  %p2098_p12 = scmp.ne.s32.totalorder %s1510_s22, %s2097_s4 }
 0x448   : > { %s2642_s23 = smov (!%p1783_p3, %s2640_s23), 4  ;;  %p2622_p13 = scmp.ne.s32.totalorder %s2612_s27, 0 }
 0x449   : > { %s1804_s24 = sshll.u32 %s2642_s23, 8  ;;  %s2204_s7 = smov [#allocation13]  }
 0x44a   : > { %s1507_s26 = scalar_lea.hbm %s2606_s3, %s1804_s24  ;;  %p2099_p8 = pnand %p2098_p12, %p2622_p13 }
 0x44b   : > { %s2101_s19 = sshll.u32 %s2204_s7, 4  ;;  %s2102_s19 = int_to_ptr.vmem [resolvable:$false] %s2101_s19 }
 0x44c   : > { %p2100_p2 = pneg %p2099_p8  ;;  %s2103_s10 = scalar_lea.vmem %s2102_s19, 512 }
 0x44d   : > { %p2104_p9 = scmp.lt.s32.totalorder %s1510_s22, %s2102_s19  ;;  %p2105_p6 = scmp.lt.s32.totalorder %s2103_s10, %s2097_s4 }
 0x44f   : > { %p2106_p4 = por %p2105_p6, %p2104_p9 }
 0x451   : > { %p2107_p5 = pnand %p2106_p4, %p2100_p2 }
 0x453   : > { %2110 = shalt.err (!%p2107_p5)
}
 0x454   : > { %s2111_s11 = scalar_lea.hbm %s1507_s26, 256  ;;  %s2115_s20 = scalar_lea.hbm %s2606_s3, 1280 }
 0x455   : > { %p2112_p7 = scmp.ne.s32.totalorder %s1507_s26, %s2111_s11  ;;  %p2116_p11 = scmp.lt.s32.totalorder %s1507_s26, %s2606_s3 }
 0x456   : > { %p2117_p1 = scmp.lt.s32.totalorder %s2115_s20, %s2111_s11 }
 0x457   : > { %p2113_p10 = pnand %p2112_p7, %p2622_p13 }
 0x458   : > { %p2118_p3 = por %p2117_p1, %p2116_p11 }
 0x459   : > { %p2114_p0 = pneg %p2113_p10 }
 0x45b   : > { %p2119_p12 = pnand %p2118_p3, %p2114_p0 }
 0x45d   : > { %2122 = shalt.err (!%p2119_p12)
}
 0x45e   : > { %1815 = dma.vmem_to_hbm [thread:$0]  (%p2622_p13), %s1510_s22, 256, %s1507_s26, %s1490_s25  }
 0x45f PF: > { %p1837_p8 = scmp.ge.s32.totalorder %s2189_s18, 2  ;;  %s1521_s24 = sand.u32 1, %s2165_s12  }
 0x460   : > { %p2623_p2 = scmp.ne.s32.totalorder %s2613_s28, 0  ;;  %s1522_s15 = scalar_lea.sflag [#allocation9], %s1521_s24 }
 0x462   : > { %p1829_p9 = pnand %p1837_p8, %p2623_p2 }
 0x464   : > { %p1830_p6 = pneg %p1829_p9 }
 0x466   : > { %2160 = dma.done.wait (%p1830_p6), %s1522_s15, 256  }
 0x467   : > { %2162 = vsyncadd (%p1830_p6), %s1522_s15, 4294967040  ;;  %p17_p13 = scmp.ge.s32.totalorder %s2263_s21, 11   ;;  %s2624_s12 = smov %s2169_s13 }
 0x468   : > { %s2625_s13 = smov %s2173_s14  ;;  %s2626_s14 = smov %s2291_s29 }
 0x469   : > { %s2627_s15 = smov %s2181_s16  ;;  %s2628_s16 = smov %s2185_s17 }
 0x46a   : > { %s2629_s17 = smov %s2332_s5  ;;  %s2630_s18 = smov %s2263_s21 }
 0x46b   :  { %19 = sbr.rel (!%p17_p13) target bundleno = 8 (0x8), region = 109 }
 0x470   :  { %1527 = vsyncpa [#allocation8], 1 }
 0x471   :  { %1529 = vsyncpa [#allocation8 + $0x1], 1 }
 0x472   :  { %1530 = vsyncpa [#allocation11], 1 }
 0x473   :  { %1531 = vsyncpa [#allocation9], 1 }
 0x474   :  { %1533 = vsyncpa [#allocation9 + $0x1], 1 }

</bundles_post_ra>
